<compile_context>
chip_gen: v7x
topology: tpu7x:2x2x1
jax: 0.10.0
libtpu: 0.0.40
codegen_flags: <defaults>
</compile_context>

<pallas_src>
import functools

import jax
import jax.numpy as jnp
from jax import lax
from jax.experimental import pallas as pl
from jax.experimental.pallas import tpu as pltpu

PAD_IDX = 0


# ----------------------------------------------------------------------------
# helpers
# ----------------------------------------------------------------------------
def _round_up(x, m):
    return -(-x // m) * m


def _pick_tile(dim, target, align):
    """Largest tile <= target that is a multiple of `align` and divides `dim`
    (falls back to the full dimension; weight axes are pre-padded to `align`
    so the fallback never produces a huge unaligned weight block)."""
    if dim <= target:
        return dim
    t = (target // align) * align
    while t >= align:
        if dim % t == 0:
            return t
        t -= align
    return dim


def _pick_time_chunk(T, B, G, target=32, budget_bytes=4 << 20):
    """Time steps per LSTM grid step: amortize ~0.35us per-grid-step overhead
    while keeping the per-chunk f32 gate pre-activations (Tc*B*4H) within
    ~budget and the (Bb, Tc, H) output block (8,128)-tileable."""
    cap = max(1, budget_bytes // max(1, B * G * 4))
    t = min(T, target, cap)
    best = T                           # full T always satisfies the tiling rule
    while t >= 1:
        if T % t == 0 and (t % 8 == 0 or t == T):
            best = t
            break
        t -= 1
    return best


def _vmem_limit(nbytes):
    """Explicit scoped-VMEM limit: raise v5e's 16 MiB default, never ask for more
    than v7x's 64 MiB physical VMEM."""
    return int(min(max(nbytes + (8 << 20), 32 << 20), 64 << 20))


# ----------------------------------------------------------------------------
# Kernel 1: tiled linear  y = x @ W + b   (vocabulary decoder)
# ----------------------------------------------------------------------------
def linear_kernel(x_ref, w_ref, b_ref, o_ref):
    o_ref[...] = (
        jnp.dot(x_ref[...], w_ref[...], preferred_element_type=jnp.float32)
        + b_ref[...]
    ).astype(o_ref.dtype)


def run_linear(x, w_t, b, out_dtype=jnp.float32, tm_target=512, tn_target=512):
    """x:(N,K) @ w_t:(K,V) + b:(1,V) -> (N,V).  bf16 operands, f32 MXU accumulation.

    V must be a multiple of 128 (weights are padded once in prepare_params).
    Rows are zero-padded here to a sublane multiple.  tm_target is large so that
    for small N the grid is (1, V//tn) and the weight streams from HBM once.
    """
    N, K = x.shape
    V = w_t.shape[1]
    assert V % 128 == 0, "pad the vocab dimension to a multiple of 128 (prepare_params)"
    Np = _round_up(N, 8)
    if Np != N:
        x = jnp.pad(x, ((0, Np - N), (0, 0)))
    row_align = 256 if Np % 256 == 0 else 8       # 256-aligned tiles keep the v6e/v7x
    tm = _pick_tile(Np, tm_target, row_align)     # 2x256^2 MXUs fully fed
    tn = _pick_tile(V, tn_target, 128)            # lane-dense vocab tile

    vmem = _vmem_limit(2 * (tm * K + K * tn) * x.dtype.itemsize
                       + 2 * tn * 4
                       + 2 * tm * tn * jnp.dtype(out_dtype).itemsize)

    out = pl.pallas_call(
        linear_kernel,
        out_shape=jax.ShapeDtypeStruct((Np, V), out_dtype),
        grid_spec=pltpu.PrefetchScalarGridSpec(
            num_scalar_prefetch=0,
            grid=(Np // tm, V // tn),             # vocab is the inner axis
            in_specs=[
                pl.BlockSpec((tm, K), lambda i, j: (i, 0)),
                pl.BlockSpec((K, tn), lambda i, j: (0, j)),
                pl.BlockSpec((1, tn), lambda i, j: (0, j)),
            ],
            out_specs=pl.BlockSpec((tm, tn), lambda i, j: (i, j)),
        ),
        compiler_params=pltpu.CompilerParams(
            dimension_semantics=("parallel", "parallel"),   # megacore-shardable
            vmem_limit_bytes=vmem),
    )(x, w_t, b)
    return out[:N] if Np != N else out


# ----------------------------------------------------------------------------
# Kernel 2: LSTM recurrence with fused input projection, batch-major output
# ----------------------------------------------------------------------------
def lstm_kernel(emb_ref, len_ref, wih_ref, bias_ref, whh_ref, out_ref, h_ref, c_ref):
    """One grid step == one (batch-block, Tc time-chunk) tile of the recurrence.

    emb_ref : (Tc, Bb, nx) bf16  embedding chunk (time-major gather)
    len_ref : (Bb, 1)      i32   sequence lengths for this batch block
    wih_ref : (nx, 4H)     bf16  input weights      (loop-invariant, single buffer)
    bias_ref: (1, 4H)      f32   b_ih + b_hh        (loop-invariant, single buffer)
    whh_ref : (H, 4H)      bf16  recurrent weights  (loop-invariant, single buffer)
    out_ref : (Bb, Tc, H)  bf16  batch-major per-step outputs (zeros past length)
    h_ref   : (Bb, H)      f32   resident output block == recurrent h state -> h_n
    c_ref   : (Bb, H)      f32   resident output block == recurrent c state -> c_n

    The time grid axis MUST stay "arbitrary": h_ref / c_ref are resident
    constant-index output blocks carrying the recurrent state across chunks.
    """
    t_blk = pl.program_id(1)
    Tc, Bb, _ = emb_ref.shape
    G = whh_ref.shape[1]
    H = G // 4

    @pl.when(t_blk == 0)
    def _():
        h_ref[...] = jnp.zeros_like(h_ref)
        c_ref[...] = jnp.zeros_like(c_ref)

    # Fused input projection: one MXU matmul for the whole chunk (no xg HBM trip).
    xg = (jnp.dot(emb_ref[...].reshape(Tc * Bb, -1), wih_ref[...],
                  preferred_element_type=jnp.float32)
          + bias_ref[...]).reshape(Tc, Bb, G)

    # Packed-sequence mask, hoisted out of the per-step loop.
    t_idx = t_blk * Tc + lax.broadcasted_iota(jnp.int32, (Tc, Bb, H), 0)
    live = (len_ref[...][None, :, :] > t_idx).astype(jnp.float32)     # (Tc, Bb, H)
    dead = 1.0 - live

    whh = whh_ref[...]
    h = h_ref[...]
    c = c_ref[...]
    # Fully unrolled (Tc <= 32): static time indices -> static-offset stores into
    # the batch-major output block; keeps the serial critical path short.
    for i in range(Tc):
        # gates (Bb, 4H), PyTorch gate order [i, f, g, o]; bf16 MXU, f32 accumulate.
        gates = xg[i] + jnp.dot(h.astype(whh.dtype), whh,
                                preferred_element_type=jnp.float32)
        i_g = jax.nn.sigmoid(gates[:, 0 * H:1 * H])
        f_g = jax.nn.sigmoid(gates[:, 1 * H:2 * H])
        g_g = jnp.tanh(gates[:, 2 * H:3 * H])
        o_g = jax.nn.sigmoid(gates[:, 3 * H:4 * H])
        c_new = f_g * c + i_g * g_g
        h_new = o_g * jnp.tanh(c_new)
        m, d = live[i], dead[i]
        out_ref[:, i, :] = (m * h_new).astype(out_ref.dtype)   # batch-major store
        h = m * h_new + d * h
        c = m * c_new + d * c
    h_ref[...] = h
    c_ref[...] = c


def run_lstm(embs_tm, lengths, wih_bf16, whh_bf16, rnn_bias):
    """Returns (output (B,T,H) bf16 batch-major, h_n (B,H) f32, c_n (B,H) f32)."""
    T, B, NX = embs_tm.shape
    H = whh_bf16.shape[0]
    G = 4 * H
    # v7x megacore: split the batch across the two TensorCores when it is big
    # enough to keep (8,128)-aligned blocks; v5e/v6e (1 TC) are unaffected.
    nb = 2 if (B >= 16 and B % 16 == 0) else 1
    Bb = B // nb
    Tc = _pick_time_chunk(T, Bb, G)
    lengths_2d = lengths.reshape(B, 1).astype(jnp.int32)
    single = pl.Buffered(1)     # loop-invariant operands: one VMEM buffer, one DMA

    vmem = _vmem_limit(
        2 * Tc * Bb * NX * 2                 # emb chunk (double-buffered, bf16)
        + NX * G * 2 + G * 4 + H * G * 2     # W_ih, bias, W_hh (single-buffered)
        + 2 * Bb * Tc * H * 2                # output chunk (bf16)
        + 4 * Bb * H * 4                     # resident h / c blocks
        + Tc * Bb * G * 4                    # per-chunk gate pre-activations (f32)
        + 2 * Tc * Bb * H * 4)               # hoisted live / dead masks (f32)

    grid_spec = pltpu.PrefetchScalarGridSpec(
        num_scalar_prefetch=0,
        grid=(nb, T // Tc),
        in_specs=[
            pl.BlockSpec((Tc, Bb, NX), lambda b, t: (t, b, 0)),
            pl.BlockSpec((Bb, 1), lambda b, t: (b, 0)),
            pl.BlockSpec((NX, G), lambda b, t: (0, 0), pipeline_mode=single),
            pl.BlockSpec((1, G), lambda b, t: (0, 0), pipeline_mode=single),
            pl.BlockSpec((H, G), lambda b, t: (0, 0), pipeline_mode=single),
        ],
        out_specs=[
            pl.BlockSpec((Bb, Tc, H), lambda b, t: (b, t, 0)),   # batch-major output
            pl.BlockSpec((Bb, H), lambda b, t: (b, 0)),          # resident h -> h_n
            pl.BlockSpec((Bb, H), lambda b, t: (b, 0)),          # resident c -> c_n
        ],
    )
    return pl.pallas_call(
        lstm_kernel,
        out_shape=(
            jax.ShapeDtypeStruct((B, T, H), jnp.bfloat16),
            jax.ShapeDtypeStruct((B, H), jnp.float32),
            jax.ShapeDtypeStruct((B, H), jnp.float32),
        ),
        grid_spec=grid_spec,
        compiler_params=pltpu.CompilerParams(
            dimension_semantics=("parallel", "arbitrary"),   # batch ||, time sequential
            vmem_limit_bytes=vmem),
    )(embs_tm, lengths_2d, wih_bf16, rnn_bias, whh_bf16)


# ----------------------------------------------------------------------------
# One-time parameter preparation (outside jit / outside the per-step forward):
# bf16 copies of all weights + 128-padded decoder so no per-forward casts.
# ----------------------------------------------------------------------------
def prepare_params(params):
    ntokens = params["w_lin_t"].shape[1]
    v_pad = _round_up(ntokens, 128)
    w_lin_t, b_lin = params["w_lin_t"], params["b_lin"]
    if v_pad != ntokens:
        w_lin_t = jnp.pad(w_lin_t, ((0, 0), (0, v_pad - ntokens)))
        b_lin = jnp.pad(b_lin, ((0, 0), (0, v_pad - ntokens)))
    return {
        "emb_table_bf16": params["emb_table"].astype(jnp.bfloat16),
        "w_ih_t_bf16": params["w_ih_t"].astype(jnp.bfloat16),
        "w_hh_t_bf16": params["w_hh_t"].astype(jnp.bfloat16),
        "rnn_bias": params["rnn_bias"].astype(jnp.float32),
        "w_lin_t_bf16": w_lin_t.astype(jnp.bfloat16),
        "b_lin": b_lin.astype(jnp.float32),
    }


# ----------------------------------------------------------------------------
# Full forward (pretrain path).  Static shapes -> jit-compiled, no host sync.
# ----------------------------------------------------------------------------
@functools.partial(jax.jit, static_argnames=("ntokens",))
def definition_modeling_forward(x, prepared, *, ntokens):
    B, T = x.shape
    H = prepared["w_hh_t_bf16"].shape[0]

    lengths = jnp.sum((x != PAD_IDX).astype(jnp.int32), axis=1)          # (B,)

    # Embedding gathered directly time-major from the pre-cast bf16 table
    # (the transpose lives on the tiny int32 index array).
    embs_tm = jnp.take(prepared["emb_table_bf16"], x.T, axis=0)          # (T, B, nx)

    out_bm, h_n, c_n = run_lstm(embs_tm, lengths,
                                prepared["w_ih_t_bf16"],
                                prepared["w_hh_t_bf16"],
                                prepared["rnn_bias"])

    # unpack(batch_first=True): already (B, T, H) batch-major from the kernel,
    # pads already zero.  Static T plays the role of maxlen inside jit
    # (data-dependent maxlen slicing would live outside the jit boundary).
    # dropout: p == rnn_dropout == 0 -> identity.
    h_flat = out_bm.reshape(B * T, H)            # contiguous reshape, no relayout

    # TODO(synk): emit bf16 logits / fuse log-softmax into the decoder tile loop if
    # the downstream loss tolerates it (halves / removes the largest HBM write).
    decoded = run_linear(h_flat, prepared["w_lin_t_bf16"], prepared["b_lin"],
                         out_dtype=jnp.float32)[:, :ntokens]             # (B*T, V)
    hidden = (h_n[None, ...], c_n[None, ...])    # (nlayers=1, B, nhid)
    return decoded, hidden


# ----------------------------------------------------------------------------
# Pure-JAX f32 reference (mirrors the PyTorch forward) for validation.
# ----------------------------------------------------------------------------
def reference_forward(x, params):
    emb_table = params["emb_table"]
    w_ih_t, w_hh_t = params["w_ih_t"], params["w_hh_t"]
    bias, w_lin_t, b_lin = params["rnn_bias"], params["w_lin_t"], params["b_lin"]
    B, T = x.shape
    H = w_hh_t.shape[0]
    lengths = jnp.sum((x != PAD_IDX).astype(jnp.int32), axis=1)
    embs_tm = jnp.take(emb_table, x.T, axis=0)                          # (T, B, nx)
    mask_tm = (jnp.arange(T)[:, None] < lengths[None, :]
               ).astype(jnp.float32)[..., None]                         # (T, B, 1)

    def step(carry, inp):
        h, c = carry
        x_t, m_t = inp
        g = x_t @ w_ih_t + h @ w_hh_t + bias
        i_g = jax.nn.sigmoid(g[:, 0 * H:1 * H])
        f_g = jax.nn.sigmoid(g[:, 1 * H:2 * H])
        g_g = jnp.tanh(g[:, 2 * H:3 * H])
        o_g = jax.nn.sigmoid(g[:, 3 * H:4 * H])
        c_new = f_g * c + i_g * g_g
        h_new = o_g * jnp.tanh(c_new)
        h = m_t * h_new + (1.0 - m_t) * h
        c = m_t * c_new + (1.0 - m_t) * c
        return (h, c), m_t * h_new

    (h_n, c_n), out_tm = lax.scan(
        step, (jnp.zeros((B, H), jnp.float32), jnp.zeros((B, H), jnp.float32)),
        (embs_tm, mask_tm))
    output = jnp.transpose(out_tm, (1, 0, 2)).reshape(B * T, H)
    decoded = output @ w_lin_t + b_lin
    return decoded, (h_n[None, ...], c_n[None, ...])


# ----------------------------------------------------------------------------
# Deterministic parameter init (mirrors init_weights for pretrain=True)
# ----------------------------------------------------------------------------
def xavier_uniform(key, shape):
    fan_out, fan_in = shape
    bound = jnp.sqrt(6.0 / (fan_in + fan_out))
    return jax.random.uniform(key, shape, jnp.float32, -bound, bound)


def init_params(key, ntokens, nx, nhid):
    k_emb, k_ih, k_hh, k_lin = jax.random.split(key, 4)
    initrange = 0.5 / nx
    emb_table = jax.random.uniform(k_emb, (ntokens, nx), jnp.float32,
                                   -initrange, initrange)
    w_ih = xavier_uniform(k_ih, (4 * nhid, nx))      # weight_ih_l0
    w_hh = xavier_uniform(k_hh, (4 * nhid, nhid))    # weight_hh_l0
    w_lin = xavier_uniform(k_lin, (ntokens, nhid))   # linear.weight
    return {
        "emb_table": emb_table,
        "w_ih_t": w_ih.T,                                    # (nx, 4*nhid)
        "w_hh_t": w_hh.T,                                    # (nhid, 4*nhid)
        "rnn_bias": jnp.zeros((1, 4 * nhid), jnp.float32),   # b_ih + b_hh = 0
        "w_lin_t": w_lin.T,                                  # (nhid, ntokens)
        "b_lin": jnp.zeros((1, ntokens), jnp.float32),
    }


# ----------------------------------------------------------------------------
if __name__ == "__main__":
    # Lane/sublane-aligned small shapes: H multiple of 128, B multiple of 8.
    ntokens, nx, nhid = 256, 128, 128
    B, T = 8, 8

    key = jax.random.PRNGKey(0)
    k_params, k_x = jax.random.split(key)
    params = init_params(k_params, ntokens, nx, nhid)
    prepared = prepare_params(params)            # one-time bf16 / padded copies

    # token ids in [1, ntokens); sequence 0 keeps full length T so maxlen == T.
    x = jax.random.randint(k_x, (B, T), 1, ntokens, dtype=jnp.int32)
    x = x.at[1, 5:].set(PAD_IDX)
    x = x.at[3, 2:].set(PAD_IDX)
    x = x.at[6, 7:].set(PAD_IDX)

    decoded, (h_n, c_n) = definition_modeling_forward(x, prepared, ntokens=ntokens)
    decoded = jax.block_until_ready(decoded)
    jax.block_until_ready(h_n)
    jax.block_until_ready(c_n)

    assert decoded.shape == (B * T, ntokens)     # maxlen == T here
    assert h_n.shape == (1, B, nhid) and c_n.shape == (1, B, nhid)

    # Validate against the pure-f32 reference (bf16 weights/activations -> finite
    # but tight tolerance; values here have ~1e-3 magnitude, errors ~1e-4).
    ref_dec, (ref_h, ref_c) = reference_forward(x, params)
    assert jnp.allclose(decoded, ref_dec, rtol=5e-2, atol=5e-3)
    assert jnp.allclose(h_n, ref_h, rtol=5e-2, atol=5e-3)
    assert jnp.allclose(c_n, ref_c, rtol=5e-2, atol=5e-3)

    print("KERNEL_OK")
</pallas_src>

<mosaic_0001>
module attributes {stable_mosaic.version = 11 : i64} {
  func.func @linear_kernel(%arg0: i32, %arg1: i32, %arg2: memref<64x128xbf16, #tpu.memory_space<vmem>>, %arg3: memref<128x256xbf16, #tpu.memory_space<vmem>>, %arg4: memref<1x256xf32, #tpu.memory_space<vmem>>, %arg5: memref<64x256xf32, #tpu.memory_space<vmem>>) attributes {dimension_semantics = [#tpu.dimension_semantics<parallel>, #tpu.dimension_semantics<parallel>], iteration_bounds = array<i64: 1, 1>, scalar_prefetch = 0 : i64, scratch_operands = 0 : i64, tpu.core_type = #tpu.core_type<tc>, window_params = [{transform_indices = @transform_0, window_bounds = array<i64: 64, 128>}, {transform_indices = @transform_1, window_bounds = array<i64: 128, 256>}, {transform_indices = @transform_2, window_bounds = array<i64: 1, 256>}, {transform_indices = @transform_3, window_bounds = array<i64: 64, 256>}]} {
    %c0 = arith.constant 0 : index
    %c0_0 = arith.constant 0 : index
    %0 = vector.load %arg2[%c0, %c0_0] : memref<64x128xbf16, #tpu.memory_space<vmem>>, vector<64x128xbf16>
    %c0_1 = arith.constant 0 : index
    %c0_2 = arith.constant 0 : index
    %1 = vector.load %arg3[%c0_1, %c0_2] : memref<128x256xbf16, #tpu.memory_space<vmem>>, vector<128x256xbf16>
    %cst = arith.constant dense<0.000000e+00> : vector<64x256xf32>
    %2 = tpu.matmul %0, %1, %cst {dimension_numbers = #tpu.dot_dimension_numbers<[1], [0], [0], [1], [0, 0, 1, 1], [], []>} : vector<64x128xbf16>, vector<128x256xbf16>, vector<64x256xf32> -> vector<64x256xf32>
    %c0_3 = arith.constant 0 : index
    %c0_4 = arith.constant 0 : index
    %3 = vector.load %arg4[%c0_3, %c0_4] : memref<1x256xf32, #tpu.memory_space<vmem>>, vector<1x256xf32>
    %4 = vector.broadcast %3 : vector<1x256xf32> to vector<64x256xf32>
    %5 = arith.addf %2, %4 : vector<64x256xf32>
    %c0_5 = arith.constant 0 : index
    %c0_6 = arith.constant 0 : index
    %6 = vector.load %arg5[%c0_5, %c0_6] : memref<64x256xf32, #tpu.memory_space<vmem>>, vector<64x256xf32>
    tpu.vector_store %arg5[%c0_5, %c0_6], %5 {strides = array<i32>} : memref<64x256xf32, #tpu.memory_space<vmem>>, vector<64x256xf32>,
    return
  }
  func.func @transform_0(%arg0: i32, %arg1: i32) -> (i32, i32) {
    %c0_i32 = arith.constant 0 : i32
    %c0_i32_0 = arith.constant 0 : i32
    return %arg0, %c0_i32 : i32, i32
  }
  func.func @transform_1(%arg0: i32, %arg1: i32) -> (i32, i32) {
    %c0_i32 = arith.constant 0 : i32
    %c0_i32_0 = arith.constant 0 : i32
    return %c0_i32, %arg1 : i32, i32
  }
  func.func @transform_2(%arg0: i32, %arg1: i32) -> (i32, i32) {
    %c0_i32 = arith.constant 0 : i32
    %c0_i32_0 = arith.constant 0 : i32
    return %c0_i32, %arg1 : i32, i32
  }
  func.func @transform_3(%arg0: i32, %arg1: i32) -> (i32, i32) {
    %c0_i32 = arith.constant 0 : i32
    return %arg0, %arg1 : i32, i32
  }
}

module attributes {stable_mosaic.version = 11 : i64} {
  func.func @lstm_kernel(%arg0: i32, %arg1: i32, %arg2: memref<8x8x128xbf16, #tpu.memory_space<vmem>>, %arg3: memref<8x1xi32, #tpu.memory_space<vmem>>, %arg4: memref<128x512xbf16, #tpu.memory_space<vmem>>, %arg5: memref<1x512xf32, #tpu.memory_space<vmem>>, %arg6: memref<128x512xbf16, #tpu.memory_space<vmem>>, %arg7: memref<8x8x128xbf16, #tpu.memory_space<vmem>>, %arg8: memref<8x128xf32, #tpu.memory_space<vmem>>, %arg9: memref<8x128xf32, #tpu.memory_space<vmem>>) attributes {dimension_semantics = [#tpu.dimension_semantics<parallel>, #tpu.dimension_semantics<arbitrary>], iteration_bounds = array<i64: 1, 1>, scalar_prefetch = 0 : i64, scratch_operands = 0 : i64, tpu.core_type = #tpu.core_type<tc>, window_params = [{transform_indices = @transform_0, window_bounds = array<i64: 8, 8, 128>}, {transform_indices = @transform_1, window_bounds = array<i64: 8, 1>}, {pipeline_mode = #tpu.pipeline_mode<synchronous>, transform_indices = @transform_2, window_bounds = array<i64: 128, 512>}, {pipeline_mode = #tpu.pipeline_mode<synchronous>, transform_indices = @transform_3, window_bounds = array<i64: 1, 512>}, {pipeline_mode = #tpu.pipeline_mode<synchronous>, transform_indices = @transform_4, window_bounds = array<i64: 128, 512>}, {transform_indices = @transform_5, window_bounds = array<i64: 8, 8, 128>}, {transform_indices = @transform_6, window_bounds = array<i64: 8, 128>}, {transform_indices = @transform_7, window_bounds = array<i64: 8, 128>}]} {
    %c0_i32 = arith.constant 0 : i32
    %0 = arith.cmpi eq, %arg1, %c0_i32 : i32
    %1 = arith.extui %0 : i1 to i32
    %c0_i32_0 = arith.constant 0 : i32
    %2 = arith.cmpi ne, %1, %c0_i32_0 : i32
    scf.if %2 {
      %cst_69 = arith.constant 0.000000e+00 : f32
      %388 = vector.broadcast %cst_69 : f32 to vector<8x128xf32>
      %c0_70 = arith.constant 0 : index
      %c0_71 = arith.constant 0 : index
      %389 = vector.load %arg8[%c0_70, %c0_71] : memref<8x128xf32, #tpu.memory_space<vmem>>, vector<8x128xf32>
      tpu.vector_store %arg8[%c0_70, %c0_71], %388 {strides = array<i32>} : memref<8x128xf32, #tpu.memory_space<vmem>>, vector<8x128xf32>,
      %cst_72 = arith.constant 0.000000e+00 : f32
      %390 = vector.broadcast %cst_72 : f32 to vector<8x128xf32>
      %c0_73 = arith.constant 0 : index
      %c0_74 = arith.constant 0 : index
      %391 = vector.load %arg9[%c0_73, %c0_74] : memref<8x128xf32, #tpu.memory_space<vmem>>, vector<8x128xf32>
      tpu.vector_store %arg9[%c0_73, %c0_74], %390 {strides = array<i32>} : memref<8x128xf32, #tpu.memory_space<vmem>>, vector<8x128xf32>,
    } else {
    }
    %c0 = arith.constant 0 : index
    %c0_1 = arith.constant 0 : index
    %c0_2 = arith.constant 0 : index
    %3 = vector.load %arg2[%c0, %c0_1, %c0_2] : memref<8x8x128xbf16, #tpu.memory_space<vmem>>, vector<8x8x128xbf16>
    %4 = vector.shape_cast %3 : vector<8x8x128xbf16> to vector<64x128xbf16>
    %c0_3 = arith.constant 0 : index
    %c0_4 = arith.constant 0 : index
    %5 = vector.load %arg4[%c0_3, %c0_4] : memref<128x512xbf16, #tpu.memory_space<vmem>>, vector<128x512xbf16>
    %cst = arith.constant dense<0.000000e+00> : vector<64x512xf32>
    %6 = tpu.matmul %4, %5, %cst {dimension_numbers = #tpu.dot_dimension_numbers<[1], [0], [0], [1], [0, 0, 1, 1], [], []>} : vector<64x128xbf16>, vector<128x512xbf16>, vector<64x512xf32> -> vector<64x512xf32>
    %c0_5 = arith.constant 0 : index
    %c0_6 = arith.constant 0 : index
    %7 = vector.load %arg5[%c0_5, %c0_6] : memref<1x512xf32, #tpu.memory_space<vmem>>, vector<1x512xf32>
    %8 = vector.broadcast %7 : vector<1x512xf32> to vector<64x512xf32>
    %9 = arith.addf %6, %8 : vector<64x512xf32>
    %10 = vector.shape_cast %9 : vector<64x512xf32> to vector<8x8x512xf32>
    %c8_i32 = arith.constant 8 : i32
    %11 = arith.muli %arg1, %c8_i32 : i32
    %12 = tpu.iota {dimensions = array<i32: 0>} : vector<8x8x128xi32>
    %13 = vector.broadcast %11 : i32 to vector<8x8x128xi32>
    %14 = arith.addi %13, %12 : vector<8x8x128xi32>
    %c0_7 = arith.constant 0 : index
    %c0_8 = arith.constant 0 : index
    %15 = vector.load %arg3[%c0_7, %c0_8] : memref<8x1xi32, #tpu.memory_space<vmem>>, vector<8x1xi32>
    %16 = vector.shape_cast %15 : vector<8x1xi32> to vector<1x8x1xi32>
    %17 = vector.broadcast %16 : vector<1x8x1xi32> to vector<8x8x128xi32>
    %18 = arith.cmpi sgt, %17, %14 : vector<8x8x128xi32>
    %19 = arith.extui %18 : vector<8x8x128xi1> to vector<8x8x128xi32>
    %20 = arith.sitofp %19 : vector<8x8x128xi32> to vector<8x8x128xf32>
    %cst_9 = arith.constant 1.000000e+00 : f32
    %21 = vector.broadcast %cst_9 : f32 to vector<8x8x128xf32>
    %22 = arith.subf %21, %20 : vector<8x8x128xf32>
    %c0_10 = arith.constant 0 : index
    %c0_11 = arith.constant 0 : index
    %23 = vector.load %arg6[%c0_10, %c0_11] : memref<128x512xbf16, #tpu.memory_space<vmem>>, vector<128x512xbf16>
    %c0_12 = arith.constant 0 : index
    %c0_13 = arith.constant 0 : index
    %24 = vector.load %arg8[%c0_12, %c0_13] : memref<8x128xf32, #tpu.memory_space<vmem>>, vector<8x128xf32>
    %c0_14 = arith.constant 0 : index
    %c0_15 = arith.constant 0 : index
    %25 = vector.load %arg9[%c0_14, %c0_15] : memref<8x128xf32, #tpu.memory_space<vmem>>, vector<8x128xf32>
    %26 = vector.extract_strided_slice %10 {offsets = [0, 0, 0], sizes = [1, 8, 512], strides = [1, 1, 1]} : vector<8x8x512xf32> to vector<1x8x512xf32>
    %27 = vector.shape_cast %26 : vector<1x8x512xf32> to vector<8x512xf32>
    %28 = arith.truncf %24 : vector<8x128xf32> to vector<8x128xbf16>
    %cst_16 = arith.constant dense<0.000000e+00> : vector<8x512xf32>
    %29 = tpu.matmul %28, %23, %cst_16 {dimension_numbers = #tpu.dot_dimension_numbers<[1], [0], [0], [1], [0, 0, 1, 1], [], []>} : vector<8x128xbf16>, vector<128x512xbf16>, vector<8x512xf32> -> vector<8x512xf32>
    %30 = arith.addf %27, %29 : vector<8x512xf32>
    %31 = vector.extract_strided_slice %30 {offsets = [0, 0], sizes = [8, 128], strides = [1, 1]} : vector<8x512xf32> to vector<8x128xf32>
    %32 = arith.negf %31 : vector<8x128xf32>
    %33 = math.exp %32 : vector<8x128xf32>
    %cst_17 = arith.constant 1.000000e+00 : f32
    %34 = vector.broadcast %cst_17 : f32 to vector<8x128xf32>
    %35 = arith.addf %34, %33 : vector<8x128xf32>
    %36 = arith.divf %34, %35 : vector<8x128xf32>
    %37 = vector.extract_strided_slice %30 {offsets = [0, 128], sizes = [8, 128], strides = [1, 1]} : vector<8x512xf32> to vector<8x128xf32>
    %38 = arith.negf %37 : vector<8x128xf32>
    %39 = math.exp %38 : vector<8x128xf32>
    %cst_18 = arith.constant 1.000000e+00 : f32
    %40 = vector.broadcast %cst_18 : f32 to vector<8x128xf32>
    %41 = arith.addf %40, %39 : vector<8x128xf32>
    %42 = arith.divf %40, %41 : vector<8x128xf32>
    %43 = vector.extract_strided_slice %30 {offsets = [0, 256], sizes = [8, 128], strides = [1, 1]} : vector<8x512xf32> to vector<8x128xf32>
    %44 = math.tanh %43 : vector<8x128xf32>
    %45 = vector.extract_strided_slice %30 {offsets = [0, 384], sizes = [8, 128], strides = [1, 1]} : vector<8x512xf32> to vector<8x128xf32>
    %46 = arith.negf %45 : vector<8x128xf32>
    %47 = math.exp %46 : vector<8x128xf32>
    %cst_19 = arith.constant 1.000000e+00 : f32
    %48 = vector.broadcast %cst_19 : f32 to vector<8x128xf32>
    %49 = arith.addf %48, %47 : vector<8x128xf32>
    %50 = arith.divf %48, %49 : vector<8x128xf32>
    %51 = arith.mulf %42, %25 : vector<8x128xf32>
    %52 = arith.mulf %36, %44 : vector<8x128xf32>
    %53 = arith.addf %51, %52 : vector<8x128xf32>
    %54 = math.tanh %53 : vector<8x128xf32>
    %55 = arith.mulf %50, %54 : vector<8x128xf32>
    %56 = vector.extract_strided_slice %20 {offsets = [0, 0, 0], sizes = [1, 8, 128], strides = [1, 1, 1]} : vector<8x8x128xf32> to vector<1x8x128xf32>
    %57 = vector.shape_cast %56 : vector<1x8x128xf32> to vector<8x128xf32>
    %58 = vector.extract_strided_slice %22 {offsets = [0, 0, 0], sizes = [1, 8, 128], strides = [1, 1, 1]} : vector<8x8x128xf32> to vector<1x8x128xf32>
    %59 = vector.shape_cast %58 : vector<1x8x128xf32> to vector<8x128xf32>
    %60 = arith.mulf %57, %55 : vector<8x128xf32>
    %61 = arith.truncf %60 : vector<8x128xf32> to vector<8x128xbf16>
    %c0_20 = arith.constant 0 : index
    %c0_21 = arith.constant 0 : index
    %c0_22 = arith.constant 0 : index
    %62 = vector.load %arg7[%c0_20, %c0_21, %c0_22] : memref<8x8x128xbf16, #tpu.memory_space<vmem>>, vector<8x1x128xbf16>
    %63 = vector.shape_cast %62 : vector<8x1x128xbf16> to vector<8x128xbf16>
    %64 = vector.shape_cast %61 : vector<8x128xbf16> to vector<8x1x128xbf16>
    tpu.vector_store %arg7[%c0_20, %c0_21, %c0_22], %64 {strides = array<i32>} : memref<8x8x128xbf16, #tpu.memory_space<vmem>>, vector<8x1x128xbf16>,
    %65 = arith.mulf %57, %55 : vector<8x128xf32>
    %66 = arith.mulf %59, %24 : vector<8x128xf32>
    %67 = arith.addf %65, %66 : vector<8x128xf32>
    %68 = arith.mulf %57, %53 : vector<8x128xf32>
    %69 = arith.mulf %59, %25 : vector<8x128xf32>
    %70 = arith.addf %68, %69 : vector<8x128xf32>
    %71 = vector.extract_strided_slice %10 {offsets = [1, 0, 0], sizes = [1, 8, 512], strides = [1, 1, 1]} : vector<8x8x512xf32> to vector<1x8x512xf32>
    %72 = vector.shape_cast %71 : vector<1x8x512xf32> to vector<8x512xf32>
    %73 = arith.truncf %67 : vector<8x128xf32> to vector<8x128xbf16>
    %cst_23 = arith.constant dense<0.000000e+00> : vector<8x512xf32>
    %74 = tpu.matmul %73, %23, %cst_23 {dimension_numbers = #tpu.dot_dimension_numbers<[1], [0], [0], [1], [0, 0, 1, 1], [], []>} : vector<8x128xbf16>, vector<128x512xbf16>, vector<8x512xf32> -> vector<8x512xf32>
    %75 = arith.addf %72, %74 : vector<8x512xf32>
    %76 = vector.extract_strided_slice %75 {offsets = [0, 0], sizes = [8, 128], strides = [1, 1]} : vector<8x512xf32> to vector<8x128xf32>
    %77 = arith.negf %76 : vector<8x128xf32>
    %78 = math.exp %77 : vector<8x128xf32>
    %cst_24 = arith.constant 1.000000e+00 : f32
    %79 = vector.broadcast %cst_24 : f32 to vector<8x128xf32>
    %80 = arith.addf %79, %78 : vector<8x128xf32>
    %81 = arith.divf %79, %80 : vector<8x128xf32>
    %82 = vector.extract_strided_slice %75 {offsets = [0, 128], sizes = [8, 128], strides = [1, 1]} : vector<8x512xf32> to vector<8x128xf32>
    %83 = arith.negf %82 : vector<8x128xf32>
    %84 = math.exp %83 : vector<8x128xf32>
    %cst_25 = arith.constant 1.000000e+00 : f32
    %85 = vector.broadcast %cst_25 : f32 to vector<8x128xf32>
    %86 = arith.addf %85, %84 : vector<8x128xf32>
    %87 = arith.divf %85, %86 : vector<8x128xf32>
    %88 = vector.extract_strided_slice %75 {offsets = [0, 256], sizes = [8, 128], strides = [1, 1]} : vector<8x512xf32> to vector<8x128xf32>
    %89 = math.tanh %88 : vector<8x128xf32>
    %90 = vector.extract_strided_slice %75 {offsets = [0, 384], sizes = [8, 128], strides = [1, 1]} : vector<8x512xf32> to vector<8x128xf32>
    %91 = arith.negf %90 : vector<8x128xf32>
    %92 = math.exp %91 : vector<8x128xf32>
    %cst_26 = arith.constant 1.000000e+00 : f32
    %93 = vector.broadcast %cst_26 : f32 to vector<8x128xf32>
    %94 = arith.addf %93, %92 : vector<8x128xf32>
    %95 = arith.divf %93, %94 : vector<8x128xf32>
    %96 = arith.mulf %87, %70 : vector<8x128xf32>
    %97 = arith.mulf %81, %89 : vector<8x128xf32>
    %98 = arith.addf %96, %97 : vector<8x128xf32>
    %99 = math.tanh %98 : vector<8x128xf32>
    %100 = arith.mulf %95, %99 : vector<8x128xf32>
    %101 = vector.extract_strided_slice %20 {offsets = [1, 0, 0], sizes = [1, 8, 128], strides = [1, 1, 1]} : vector<8x8x128xf32> to vector<1x8x128xf32>
    %102 = vector.shape_cast %101 : vector<1x8x128xf32> to vector<8x128xf32>
    %103 = vector.extract_strided_slice %22 {offsets = [1, 0, 0], sizes = [1, 8, 128], strides = [1, 1, 1]} : vector<8x8x128xf32> to vector<1x8x128xf32>
    %104 = vector.shape_cast %103 : vector<1x8x128xf32> to vector<8x128xf32>
    %105 = arith.mulf %102, %100 : vector<8x128xf32>
    %106 = arith.truncf %105 : vector<8x128xf32> to vector<8x128xbf16>
    %c0_27 = arith.constant 0 : index
    %c1 = arith.constant 1 : index
    %c0_28 = arith.constant 0 : index
    %107 = vector.load %arg7[%c0_27, %c1, %c0_28] : memref<8x8x128xbf16, #tpu.memory_space<vmem>>, vector<8x1x128xbf16>
    %108 = vector.shape_cast %107 : vector<8x1x128xbf16> to vector<8x128xbf16>
    %109 = vector.shape_cast %106 : vector<8x128xbf16> to vector<8x1x128xbf16>
    tpu.vector_store %arg7[%c0_27, %c1, %c0_28], %109 {strides = array<i32>} : memref<8x8x128xbf16, #tpu.memory_space<vmem>>, vector<8x1x128xbf16>,
    %110 = arith.mulf %102, %100 : vector<8x128xf32>
    %111 = arith.mulf %104, %67 : vector<8x128xf32>
    %112 = arith.addf %110, %111 : vector<8x128xf32>
    %113 = arith.mulf %102, %98 : vector<8x128xf32>
    %114 = arith.mulf %104, %70 : vector<8x128xf32>
    %115 = arith.addf %113, %114 : vector<8x128xf32>
    %116 = vector.extract_strided_slice %10 {offsets = [2, 0, 0], sizes = [1, 8, 512], strides = [1, 1, 1]} : vector<8x8x512xf32> to vector<1x8x512xf32>
    %117 = vector.shape_cast %116 : vector<1x8x512xf32> to vector<8x512xf32>
    %118 = arith.truncf %112 : vector<8x128xf32> to vector<8x128xbf16>
    %cst_29 = arith.constant dense<0.000000e+00> : vector<8x512xf32>
    %119 = tpu.matmul %118, %23, %cst_29 {dimension_numbers = #tpu.dot_dimension_numbers<[1], [0], [0], [1], [0, 0, 1, 1], [], []>} : vector<8x128xbf16>, vector<128x512xbf16>, vector<8x512xf32> -> vector<8x512xf32>
    %120 = arith.addf %117, %119 : vector<8x512xf32>
    %121 = vector.extract_strided_slice %120 {offsets = [0, 0], sizes = [8, 128], strides = [1, 1]} : vector<8x512xf32> to vector<8x128xf32>
    %122 = arith.negf %121 : vector<8x128xf32>
    %123 = math.exp %122 : vector<8x128xf32>
    %cst_30 = arith.constant 1.000000e+00 : f32
    %124 = vector.broadcast %cst_30 : f32 to vector<8x128xf32>
    %125 = arith.addf %124, %123 : vector<8x128xf32>
    %126 = arith.divf %124, %125 : vector<8x128xf32>
    %127 = vector.extract_strided_slice %120 {offsets = [0, 128], sizes = [8, 128], strides = [1, 1]} : vector<8x512xf32> to vector<8x128xf32>
    %128 = arith.negf %127 : vector<8x128xf32>
    %129 = math.exp %128 : vector<8x128xf32>
    %cst_31 = arith.constant 1.000000e+00 : f32
    %130 = vector.broadcast %cst_31 : f32 to vector<8x128xf32>
    %131 = arith.addf %130, %129 : vector<8x128xf32>
    %132 = arith.divf %130, %131 : vector<8x128xf32>
    %133 = vector.extract_strided_slice %120 {offsets = [0, 256], sizes = [8, 128], strides = [1, 1]} : vector<8x512xf32> to vector<8x128xf32>
    %134 = math.tanh %133 : vector<8x128xf32>
    %135 = vector.extract_strided_slice %120 {offsets = [0, 384], sizes = [8, 128], strides = [1, 1]} : vector<8x512xf32> to vector<8x128xf32>
    %136 = arith.negf %135 : vector<8x128xf32>
    %137 = math.exp %136 : vector<8x128xf32>
    %cst_32 = arith.constant 1.000000e+00 : f32
    %138 = vector.broadcast %cst_32 : f32 to vector<8x128xf32>
    %139 = arith.addf %138, %137 : vector<8x128xf32>
    %140 = arith.divf %138, %139 : vector<8x128xf32>
    %141 = arith.mulf %132, %115 : vector<8x128xf32>
    %142 = arith.mulf %126, %134 : vector<8x128xf32>
    %143 = arith.addf %141, %142 : vector<8x128xf32>
    %144 = math.tanh %143 : vector<8x128xf32>
    %145 = arith.mulf %140, %144 : vector<8x128xf32>
    %146 = vector.extract_strided_slice %20 {offsets = [2, 0, 0], sizes = [1, 8, 128], strides = [1, 1, 1]} : vector<8x8x128xf32> to vector<1x8x128xf32>
    %147 = vector.shape_cast %146 : vector<1x8x128xf32> to vector<8x128xf32>
    %148 = vector.extract_strided_slice %22 {offsets = [2, 0, 0], sizes = [1, 8, 128], strides = [1, 1, 1]} : vector<8x8x128xf32> to vector<1x8x128xf32>
    %149 = vector.shape_cast %148 : vector<1x8x128xf32> to vector<8x128xf32>
    %150 = arith.mulf %147, %145 : vector<8x128xf32>
    %151 = arith.truncf %150 : vector<8x128xf32> to vector<8x128xbf16>
    %c0_33 = arith.constant 0 : index
    %c2 = arith.constant 2 : index
    %c0_34 = arith.constant 0 : index
    %152 = vector.load %arg7[%c0_33, %c2, %c0_34] : memref<8x8x128xbf16, #tpu.memory_space<vmem>>, vector<8x1x128xbf16>
    %153 = vector.shape_cast %152 : vector<8x1x128xbf16> to vector<8x128xbf16>
    %154 = vector.shape_cast %151 : vector<8x128xbf16> to vector<8x1x128xbf16>
    tpu.vector_store %arg7[%c0_33, %c2, %c0_34], %154 {strides = array<i32>} : memref<8x8x128xbf16, #tpu.memory_space<vmem>>, vector<8x1x128xbf16>,
    %155 = arith.mulf %147, %145 : vector<8x128xf32>
    %156 = arith.mulf %149, %112 : vector<8x128xf32>
    %157 = arith.addf %155, %156 : vector<8x128xf32>
    %158 = arith.mulf %147, %143 : vector<8x128xf32>
    %159 = arith.mulf %149, %115 : vector<8x128xf32>
    %160 = arith.addf %158, %159 : vector<8x128xf32>
    %161 = vector.extract_strided_slice %10 {offsets = [3, 0, 0], sizes = [1, 8, 512], strides = [1, 1, 1]} : vector<8x8x512xf32> to vector<1x8x512xf32>
    %162 = vector.shape_cast %161 : vector<1x8x512xf32> to vector<8x512xf32>
    %163 = arith.truncf %157 : vector<8x128xf32> to vector<8x128xbf16>
    %cst_35 = arith.constant dense<0.000000e+00> : vector<8x512xf32>
    %164 = tpu.matmul %163, %23, %cst_35 {dimension_numbers = #tpu.dot_dimension_numbers<[1], [0], [0], [1], [0, 0, 1, 1], [], []>} : vector<8x128xbf16>, vector<128x512xbf16>, vector<8x512xf32> -> vector<8x512xf32>
    %165 = arith.addf %162, %164 : vector<8x512xf32>
    %166 = vector.extract_strided_slice %165 {offsets = [0, 0], sizes = [8, 128], strides = [1, 1]} : vector<8x512xf32> to vector<8x128xf32>
    %167 = arith.negf %166 : vector<8x128xf32>
    %168 = math.exp %167 : vector<8x128xf32>
    %cst_36 = arith.constant 1.000000e+00 : f32
    %169 = vector.broadcast %cst_36 : f32 to vector<8x128xf32>
    %170 = arith.addf %169, %168 : vector<8x128xf32>
    %171 = arith.divf %169, %170 : vector<8x128xf32>
    %172 = vector.extract_strided_slice %165 {offsets = [0, 128], sizes = [8, 128], strides = [1, 1]} : vector<8x512xf32> to vector<8x128xf32>
    %173 = arith.negf %172 : vector<8x128xf32>
    %174 = math.exp %173 : vector<8x128xf32>
    %cst_37 = arith.constant 1.000000e+00 : f32
    %175 = vector.broadcast %cst_37 : f32 to vector<8x128xf32>
    %176 = arith.addf %175, %174 : vector<8x128xf32>
    %177 = arith.divf %175, %176 : vector<8x128xf32>
    %178 = vector.extract_strided_slice %165 {offsets = [0, 256], sizes = [8, 128], strides = [1, 1]} : vector<8x512xf32> to vector<8x128xf32>
    %179 = math.tanh %178 : vector<8x128xf32>
    %180 = vector.extract_strided_slice %165 {offsets = [0, 384], sizes = [8, 128], strides = [1, 1]} : vector<8x512xf32> to vector<8x128xf32>
    %181 = arith.negf %180 : vector<8x128xf32>
    %182 = math.exp %181 : vector<8x128xf32>
    %cst_38 = arith.constant 1.000000e+00 : f32
    %183 = vector.broadcast %cst_38 : f32 to vector<8x128xf32>
    %184 = arith.addf %183, %182 : vector<8x128xf32>
    %185 = arith.divf %183, %184 : vector<8x128xf32>
    %186 = arith.mulf %177, %160 : vector<8x128xf32>
    %187 = arith.mulf %171, %179 : vector<8x128xf32>
    %188 = arith.addf %186, %187 : vector<8x128xf32>
    %189 = math.tanh %188 : vector<8x128xf32>
    %190 = arith.mulf %185, %189 : vector<8x128xf32>
    %191 = vector.extract_strided_slice %20 {offsets = [3, 0, 0], sizes = [1, 8, 128], strides = [1, 1, 1]} : vector<8x8x128xf32> to vector<1x8x128xf32>
    %192 = vector.shape_cast %191 : vector<1x8x128xf32> to vector<8x128xf32>
    %193 = vector.extract_strided_slice %22 {offsets = [3, 0, 0], sizes = [1, 8, 128], strides = [1, 1, 1]} : vector<8x8x128xf32> to vector<1x8x128xf32>
    %194 = vector.shape_cast %193 : vector<1x8x128xf32> to vector<8x128xf32>
    %195 = arith.mulf %192, %190 : vector<8x128xf32>
    %196 = arith.truncf %195 : vector<8x128xf32> to vector<8x128xbf16>
    %c0_39 = arith.constant 0 : index
    %c3 = arith.constant 3 : index
    %c0_40 = arith.constant 0 : index
    %197 = vector.load %arg7[%c0_39, %c3, %c0_40] : memref<8x8x128xbf16, #tpu.memory_space<vmem>>, vector<8x1x128xbf16>
    %198 = vector.shape_cast %197 : vector<8x1x128xbf16> to vector<8x128xbf16>
    %199 = vector.shape_cast %196 : vector<8x128xbf16> to vector<8x1x128xbf16>
    tpu.vector_store %arg7[%c0_39, %c3, %c0_40], %199 {strides = array<i32>} : memref<8x8x128xbf16, #tpu.memory_space<vmem>>, vector<8x1x128xbf16>,
    %200 = arith.mulf %192, %190 : vector<8x128xf32>
    %201 = arith.mulf %194, %157 : vector<8x128xf32>
    %202 = arith.addf %200, %201 : vector<8x128xf32>
    %203 = arith.mulf %192, %188 : vector<8x128xf32>
    %204 = arith.mulf %194, %160 : vector<8x128xf32>
    %205 = arith.addf %203, %204 : vector<8x128xf32>
    %206 = vector.extract_strided_slice %10 {offsets = [4, 0, 0], sizes = [1, 8, 512], strides = [1, 1, 1]} : vector<8x8x512xf32> to vector<1x8x512xf32>
    %207 = vector.shape_cast %206 : vector<1x8x512xf32> to vector<8x512xf32>
    %208 = arith.truncf %202 : vector<8x128xf32> to vector<8x128xbf16>
    %cst_41 = arith.constant dense<0.000000e+00> : vector<8x512xf32>
    %209 = tpu.matmul %208, %23, %cst_41 {dimension_numbers = #tpu.dot_dimension_numbers<[1], [0], [0], [1], [0, 0, 1, 1], [], []>} : vector<8x128xbf16>, vector<128x512xbf16>, vector<8x512xf32> -> vector<8x512xf32>
    %210 = arith.addf %207, %209 : vector<8x512xf32>
    %211 = vector.extract_strided_slice %210 {offsets = [0, 0], sizes = [8, 128], strides = [1, 1]} : vector<8x512xf32> to vector<8x128xf32>
    %212 = arith.negf %211 : vector<8x128xf32>
    %213 = math.exp %212 : vector<8x128xf32>
    %cst_42 = arith.constant 1.000000e+00 : f32
    %214 = vector.broadcast %cst_42 : f32 to vector<8x128xf32>
    %215 = arith.addf %214, %213 : vector<8x128xf32>
    %216 = arith.divf %214, %215 : vector<8x128xf32>
    %217 = vector.extract_strided_slice %210 {offsets = [0, 128], sizes = [8, 128], strides = [1, 1]} : vector<8x512xf32> to vector<8x128xf32>
    %218 = arith.negf %217 : vector<8x128xf32>
    %219 = math.exp %218 : vector<8x128xf32>
    %cst_43 = arith.constant 1.000000e+00 : f32
    %220 = vector.broadcast %cst_43 : f32 to vector<8x128xf32>
    %221 = arith.addf %220, %219 : vector<8x128xf32>
    %222 = arith.divf %220, %221 : vector<8x128xf32>
    %223 = vector.extract_strided_slice %210 {offsets = [0, 256], sizes = [8, 128], strides = [1, 1]} : vector<8x512xf32> to vector<8x128xf32>
    %224 = math.tanh %223 : vector<8x128xf32>
    %225 = vector.extract_strided_slice %210 {offsets = [0, 384], sizes = [8, 128], strides = [1, 1]} : vector<8x512xf32> to vector<8x128xf32>
    %226 = arith.negf %225 : vector<8x128xf32>
    %227 = math.exp %226 : vector<8x128xf32>
    %cst_44 = arith.constant 1.000000e+00 : f32
    %228 = vector.broadcast %cst_44 : f32 to vector<8x128xf32>
    %229 = arith.addf %228, %227 : vector<8x128xf32>
    %230 = arith.divf %228, %229 : vector<8x128xf32>
    %231 = arith.mulf %222, %205 : vector<8x128xf32>
    %232 = arith.mulf %216, %224 : vector<8x128xf32>
    %233 = arith.addf %231, %232 : vector<8x128xf32>
    %234 = math.tanh %233 : vector<8x128xf32>
    %235 = arith.mulf %230, %234 : vector<8x128xf32>
    %236 = vector.extract_strided_slice %20 {offsets = [4, 0, 0], sizes = [1, 8, 128], strides = [1, 1, 1]} : vector<8x8x128xf32> to vector<1x8x128xf32>
    %237 = vector.shape_cast %236 : vector<1x8x128xf32> to vector<8x128xf32>
    %238 = vector.extract_strided_slice %22 {offsets = [4, 0, 0], sizes = [1, 8, 128], strides = [1, 1, 1]} : vector<8x8x128xf32> to vector<1x8x128xf32>
    %239 = vector.shape_cast %238 : vector<1x8x128xf32> to vector<8x128xf32>
    %240 = arith.mulf %237, %235 : vector<8x128xf32>
    %241 = arith.truncf %240 : vector<8x128xf32> to vector<8x128xbf16>
    %c0_45 = arith.constant 0 : index
    %c4 = arith.constant 4 : index
    %c0_46 = arith.constant 0 : index
    %242 = vector.load %arg7[%c0_45, %c4, %c0_46] : memref<8x8x128xbf16, #tpu.memory_space<vmem>>, vector<8x1x128xbf16>
    %243 = vector.shape_cast %242 : vector<8x1x128xbf16> to vector<8x128xbf16>
    %244 = vector.shape_cast %241 : vector<8x128xbf16> to vector<8x1x128xbf16>
    tpu.vector_store %arg7[%c0_45, %c4, %c0_46], %244 {strides = array<i32>} : memref<8x8x128xbf16, #tpu.memory_space<vmem>>, vector<8x1x128xbf16>,
    %245 = arith.mulf %237, %235 : vector<8x128xf32>
    %246 = arith.mulf %239, %202 : vector<8x128xf32>
    %247 = arith.addf %245, %246 : vector<8x128xf32>
    %248 = arith.mulf %237, %233 : vector<8x128xf32>
    %249 = arith.mulf %239, %205 : vector<8x128xf32>
    %250 = arith.addf %248, %249 : vector<8x128xf32>
    %251 = vector.extract_strided_slice %10 {offsets = [5, 0, 0], sizes = [1, 8, 512], strides = [1, 1, 1]} : vector<8x8x512xf32> to vector<1x8x512xf32>
    %252 = vector.shape_cast %251 : vector<1x8x512xf32> to vector<8x512xf32>
    %253 = arith.truncf %247 : vector<8x128xf32> to vector<8x128xbf16>
    %cst_47 = arith.constant dense<0.000000e+00> : vector<8x512xf32>
    %254 = tpu.matmul %253, %23, %cst_47 {dimension_numbers = #tpu.dot_dimension_numbers<[1], [0], [0], [1], [0, 0, 1, 1], [], []>} : vector<8x128xbf16>, vector<128x512xbf16>, vector<8x512xf32> -> vector<8x512xf32>
    %255 = arith.addf %252, %254 : vector<8x512xf32>
    %256 = vector.extract_strided_slice %255 {offsets = [0, 0], sizes = [8, 128], strides = [1, 1]} : vector<8x512xf32> to vector<8x128xf32>
    %257 = arith.negf %256 : vector<8x128xf32>
    %258 = math.exp %257 : vector<8x128xf32>
    %cst_48 = arith.constant 1.000000e+00 : f32
    %259 = vector.broadcast %cst_48 : f32 to vector<8x128xf32>
    %260 = arith.addf %259, %258 : vector<8x128xf32>
    %261 = arith.divf %259, %260 : vector<8x128xf32>
    %262 = vector.extract_strided_slice %255 {offsets = [0, 128], sizes = [8, 128], strides = [1, 1]} : vector<8x512xf32> to vector<8x128xf32>
    %263 = arith.negf %262 : vector<8x128xf32>
    %264 = math.exp %263 : vector<8x128xf32>
    %cst_49 = arith.constant 1.000000e+00 : f32
    %265 = vector.broadcast %cst_49 : f32 to vector<8x128xf32>
    %266 = arith.addf %265, %264 : vector<8x128xf32>
    %267 = arith.divf %265, %266 : vector<8x128xf32>
    %268 = vector.extract_strided_slice %255 {offsets = [0, 256], sizes = [8, 128], strides = [1, 1]} : vector<8x512xf32> to vector<8x128xf32>
    %269 = math.tanh %268 : vector<8x128xf32>
    %270 = vector.extract_strided_slice %255 {offsets = [0, 384], sizes = [8, 128], strides = [1, 1]} : vector<8x512xf32> to vector<8x128xf32>
    %271 = arith.negf %270 : vector<8x128xf32>
    %272 = math.exp %271 : vector<8x128xf32>
    %cst_50 = arith.constant 1.000000e+00 : f32
    %273 = vector.broadcast %cst_50 : f32 to vector<8x128xf32>
    %274 = arith.addf %273, %272 : vector<8x128xf32>
    %275 = arith.divf %273, %274 : vector<8x128xf32>
    %276 = arith.mulf %267, %250 : vector<8x128xf32>
    %277 = arith.mulf %261, %269 : vector<8x128xf32>
    %278 = arith.addf %276, %277 : vector<8x128xf32>
    %279 = math.tanh %278 : vector<8x128xf32>
    %280 = arith.mulf %275, %279 : vector<8x128xf32>
    %281 = vector.extract_strided_slice %20 {offsets = [5, 0, 0], sizes = [1, 8, 128], strides = [1, 1, 1]} : vector<8x8x128xf32> to vector<1x8x128xf32>
    %282 = vector.shape_cast %281 : vector<1x8x128xf32> to vector<8x128xf32>
    %283 = vector.extract_strided_slice %22 {offsets = [5, 0, 0], sizes = [1, 8, 128], strides = [1, 1, 1]} : vector<8x8x128xf32> to vector<1x8x128xf32>
    %284 = vector.shape_cast %283 : vector<1x8x128xf32> to vector<8x128xf32>
    %285 = arith.mulf %282, %280 : vector<8x128xf32>
    %286 = arith.truncf %285 : vector<8x128xf32> to vector<8x128xbf16>
    %c0_51 = arith.constant 0 : index
    %c5 = arith.constant 5 : index
    %c0_52 = arith.constant 0 : index
    %287 = vector.load %arg7[%c0_51, %c5, %c0_52] : memref<8x8x128xbf16, #tpu.memory_space<vmem>>, vector<8x1x128xbf16>
    %288 = vector.shape_cast %287 : vector<8x1x128xbf16> to vector<8x128xbf16>
    %289 = vector.shape_cast %286 : vector<8x128xbf16> to vector<8x1x128xbf16>
    tpu.vector_store %arg7[%c0_51, %c5, %c0_52], %289 {strides = array<i32>} : memref<8x8x128xbf16, #tpu.memory_space<vmem>>, vector<8x1x128xbf16>,
    %290 = arith.mulf %282, %280 : vector<8x128xf32>
    %291 = arith.mulf %284, %247 : vector<8x128xf32>
    %292 = arith.addf %290, %291 : vector<8x128xf32>
    %293 = arith.mulf %282, %278 : vector<8x128xf32>
    %294 = arith.mulf %284, %250 : vector<8x128xf32>
    %295 = arith.addf %293, %294 : vector<8x128xf32>
    %296 = vector.extract_strided_slice %10 {offsets = [6, 0, 0], sizes = [1, 8, 512], strides = [1, 1, 1]} : vector<8x8x512xf32> to vector<1x8x512xf32>
    %297 = vector.shape_cast %296 : vector<1x8x512xf32> to vector<8x512xf32>
    %298 = arith.truncf %292 : vector<8x128xf32> to vector<8x128xbf16>
    %cst_53 = arith.constant dense<0.000000e+00> : vector<8x512xf32>
    %299 = tpu.matmul %298, %23, %cst_53 {dimension_numbers = #tpu.dot_dimension_numbers<[1], [0], [0], [1], [0, 0, 1, 1], [], []>} : vector<8x128xbf16>, vector<128x512xbf16>, vector<8x512xf32> -> vector<8x512xf32>
    %300 = arith.addf %297, %299 : vector<8x512xf32>
    %301 = vector.extract_strided_slice %300 {offsets = [0, 0], sizes = [8, 128], strides = [1, 1]} : vector<8x512xf32> to vector<8x128xf32>
    %302 = arith.negf %301 : vector<8x128xf32>
    %303 = math.exp %302 : vector<8x128xf32>
    %cst_54 = arith.constant 1.000000e+00 : f32
    %304 = vector.broadcast %cst_54 : f32 to vector<8x128xf32>
    %305 = arith.addf %304, %303 : vector<8x128xf32>
    %306 = arith.divf %304, %305 : vector<8x128xf32>
    %307 = vector.extract_strided_slice %300 {offsets = [0, 128], sizes = [8, 128], strides = [1, 1]} : vector<8x512xf32> to vector<8x128xf32>
    %308 = arith.negf %307 : vector<8x128xf32>
    %309 = math.exp %308 : vector<8x128xf32>
    %cst_55 = arith.constant 1.000000e+00 : f32
    %310 = vector.broadcast %cst_55 : f32 to vector<8x128xf32>
    %311 = arith.addf %310, %309 : vector<8x128xf32>
    %312 = arith.divf %310, %311 : vector<8x128xf32>
    %313 = vector.extract_strided_slice %300 {offsets = [0, 256], sizes = [8, 128], strides = [1, 1]} : vector<8x512xf32> to vector<8x128xf32>
    %314 = math.tanh %313 : vector<8x128xf32>
    %315 = vector.extract_strided_slice %300 {offsets = [0, 384], sizes = [8, 128], strides = [1, 1]} : vector<8x512xf32> to vector<8x128xf32>
    %316 = arith.negf %315 : vector<8x128xf32>
    %317 = math.exp %316 : vector<8x128xf32>
    %cst_56 = arith.constant 1.000000e+00 : f32
    %318 = vector.broadcast %cst_56 : f32 to vector<8x128xf32>
    %319 = arith.addf %318, %317 : vector<8x128xf32>
    %320 = arith.divf %318, %319 : vector<8x128xf32>
    %321 = arith.mulf %312, %295 : vector<8x128xf32>
    %322 = arith.mulf %306, %314 : vector<8x128xf32>
    %323 = arith.addf %321, %322 : vector<8x128xf32>
    %324 = math.tanh %323 : vector<8x128xf32>
    %325 = arith.mulf %320, %324 : vector<8x128xf32>
    %326 = vector.extract_strided_slice %20 {offsets = [6, 0, 0], sizes = [1, 8, 128], strides = [1, 1, 1]} : vector<8x8x128xf32> to vector<1x8x128xf32>
    %327 = vector.shape_cast %326 : vector<1x8x128xf32> to vector<8x128xf32>
    %328 = vector.extract_strided_slice %22 {offsets = [6, 0, 0], sizes = [1, 8, 128], strides = [1, 1, 1]} : vector<8x8x128xf32> to vector<1x8x128xf32>
    %329 = vector.shape_cast %328 : vector<1x8x128xf32> to vector<8x128xf32>
    %330 = arith.mulf %327, %325 : vector<8x128xf32>
    %331 = arith.truncf %330 : vector<8x128xf32> to vector<8x128xbf16>
    %c0_57 = arith.constant 0 : index
    %c6 = arith.constant 6 : index
    %c0_58 = arith.constant 0 : index
    %332 = vector.load %arg7[%c0_57, %c6, %c0_58] : memref<8x8x128xbf16, #tpu.memory_space<vmem>>, vector<8x1x128xbf16>
    %333 = vector.shape_cast %332 : vector<8x1x128xbf16> to vector<8x128xbf16>
    %334 = vector.shape_cast %331 : vector<8x128xbf16> to vector<8x1x128xbf16>
    tpu.vector_store %arg7[%c0_57, %c6, %c0_58], %334 {strides = array<i32>} : memref<8x8x128xbf16, #tpu.memory_space<vmem>>, vector<8x1x128xbf16>,
    %335 = arith.mulf %327, %325 : vector<8x128xf32>
    %336 = arith.mulf %329, %292 : vector<8x128xf32>
    %337 = arith.addf %335, %336 : vector<8x128xf32>
    %338 = arith.mulf %327, %323 : vector<8x128xf32>
    %339 = arith.mulf %329, %295 : vector<8x128xf32>
    %340 = arith.addf %338, %339 : vector<8x128xf32>
    %341 = vector.extract_strided_slice %10 {offsets = [7, 0, 0], sizes = [1, 8, 512], strides = [1, 1, 1]} : vector<8x8x512xf32> to vector<1x8x512xf32>
    %342 = vector.shape_cast %341 : vector<1x8x512xf32> to vector<8x512xf32>
    %343 = arith.truncf %337 : vector<8x128xf32> to vector<8x128xbf16>
    %cst_59 = arith.constant dense<0.000000e+00> : vector<8x512xf32>
    %344 = tpu.matmul %343, %23, %cst_59 {dimension_numbers = #tpu.dot_dimension_numbers<[1], [0], [0], [1], [0, 0, 1, 1], [], []>} : vector<8x128xbf16>, vector<128x512xbf16>, vector<8x512xf32> -> vector<8x512xf32>
    %345 = arith.addf %342, %344 : vector<8x512xf32>
    %346 = vector.extract_strided_slice %345 {offsets = [0, 0], sizes = [8, 128], strides = [1, 1]} : vector<8x512xf32> to vector<8x128xf32>
    %347 = arith.negf %346 : vector<8x128xf32>
    %348 = math.exp %347 : vector<8x128xf32>
    %cst_60 = arith.constant 1.000000e+00 : f32
    %349 = vector.broadcast %cst_60 : f32 to vector<8x128xf32>
    %350 = arith.addf %349, %348 : vector<8x128xf32>
    %351 = arith.divf %349, %350 : vector<8x128xf32>
    %352 = vector.extract_strided_slice %345 {offsets = [0, 128], sizes = [8, 128], strides = [1, 1]} : vector<8x512xf32> to vector<8x128xf32>
    %353 = arith.negf %352 : vector<8x128xf32>
    %354 = math.exp %353 : vector<8x128xf32>
    %cst_61 = arith.constant 1.000000e+00 : f32
    %355 = vector.broadcast %cst_61 : f32 to vector<8x128xf32>
    %356 = arith.addf %355, %354 : vector<8x128xf32>
    %357 = arith.divf %355, %356 : vector<8x128xf32>
    %358 = vector.extract_strided_slice %345 {offsets = [0, 256], sizes = [8, 128], strides = [1, 1]} : vector<8x512xf32> to vector<8x128xf32>
    %359 = math.tanh %358 : vector<8x128xf32>
    %360 = vector.extract_strided_slice %345 {offsets = [0, 384], sizes = [8, 128], strides = [1, 1]} : vector<8x512xf32> to vector<8x128xf32>
    %361 = arith.negf %360 : vector<8x128xf32>
    %362 = math.exp %361 : vector<8x128xf32>
    %cst_62 = arith.constant 1.000000e+00 : f32
    %363 = vector.broadcast %cst_62 : f32 to vector<8x128xf32>
    %364 = arith.addf %363, %362 : vector<8x128xf32>
    %365 = arith.divf %363, %364 : vector<8x128xf32>
    %366 = arith.mulf %357, %340 : vector<8x128xf32>
    %367 = arith.mulf %351, %359 : vector<8x128xf32>
    %368 = arith.addf %366, %367 : vector<8x128xf32>
    %369 = math.tanh %368 : vector<8x128xf32>
    %370 = arith.mulf %365, %369 : vector<8x128xf32>
    %371 = vector.extract_strided_slice %20 {offsets = [7, 0, 0], sizes = [1, 8, 128], strides = [1, 1, 1]} : vector<8x8x128xf32> to vector<1x8x128xf32>
    %372 = vector.shape_cast %371 : vector<1x8x128xf32> to vector<8x128xf32>
    %373 = vector.extract_strided_slice %22 {offsets = [7, 0, 0], sizes = [1, 8, 128], strides = [1, 1, 1]} : vector<8x8x128xf32> to vector<1x8x128xf32>
    %374 = vector.shape_cast %373 : vector<1x8x128xf32> to vector<8x128xf32>
    %375 = arith.mulf %372, %370 : vector<8x128xf32>
    %376 = arith.truncf %375 : vector<8x128xf32> to vector<8x128xbf16>
    %c0_63 = arith.constant 0 : index
    %c7 = arith.constant 7 : index
    %c0_64 = arith.constant 0 : index
    %377 = vector.load %arg7[%c0_63, %c7, %c0_64] : memref<8x8x128xbf16, #tpu.memory_space<vmem>>, vector<8x1x128xbf16>
    %378 = vector.shape_cast %377 : vector<8x1x128xbf16> to vector<8x128xbf16>
    %379 = vector.shape_cast %376 : vector<8x128xbf16> to vector<8x1x128xbf16>
    tpu.vector_store %arg7[%c0_63, %c7, %c0_64], %379 {strides = array<i32>} : memref<8x8x128xbf16, #tpu.memory_space<vmem>>, vector<8x1x128xbf16>,
    %380 = arith.mulf %372, %370 : vector<8x128xf32>
    %381 = arith.mulf %374, %337 : vector<8x128xf32>
    %382 = arith.addf %380, %381 : vector<8x128xf32>
    %383 = arith.mulf %372, %368 : vector<8x128xf32>
    %384 = arith.mulf %374, %340 : vector<8x128xf32>
    %385 = arith.addf %383, %384 : vector<8x128xf32>
    %c0_65 = arith.constant 0 : index
    %c0_66 = arith.constant 0 : index
    %386 = vector.load %arg8[%c0_65, %c0_66] : memref<8x128xf32, #tpu.memory_space<vmem>>, vector<8x128xf32>
    tpu.vector_store %arg8[%c0_65, %c0_66], %382 {strides = array<i32>} : memref<8x128xf32, #tpu.memory_space<vmem>>, vector<8x128xf32>,
    %c0_67 = arith.constant 0 : index
    %c0_68 = arith.constant 0 : index
    %387 = vector.load %arg9[%c0_67, %c0_68] : memref<8x128xf32, #tpu.memory_space<vmem>>, vector<8x128xf32>
    tpu.vector_store %arg9[%c0_67, %c0_68], %385 {strides = array<i32>} : memref<8x128xf32, #tpu.memory_space<vmem>>, vector<8x128xf32>,
    return
  }
  func.func @transform_0(%arg0: i32, %arg1: i32) -> (i32, i32, i32) {
    %c0_i32 = arith.constant 0 : i32
    %c0_i32_0 = arith.constant 0 : i32
    return %arg1, %arg0, %c0_i32 : i32, i32, i32
  }
  func.func @transform_1(%arg0: i32, %arg1: i32) -> (i32, i32) {
    %c0_i32 = arith.constant 0 : i32
    %c0_i32_0 = arith.constant 0 : i32
    return %arg0, %c0_i32 : i32, i32
  }
  func.func @transform_2(%arg0: i32, %arg1: i32) -> (i32, i32) {
    %c0_i32 = arith.constant 0 : i32
    %c0_i32_0 = arith.constant 0 : i32
    %c0_i32_1 = arith.constant 0 : i32
    return %c0_i32, %c0_i32_0 : i32, i32
  }
  func.func @transform_3(%arg0: i32, %arg1: i32) -> (i32, i32) {
    %c0_i32 = arith.constant 0 : i32
    %c0_i32_0 = arith.constant 0 : i32
    %c0_i32_1 = arith.constant 0 : i32
    return %c0_i32, %c0_i32_0 : i32, i32
  }
  func.func @transform_4(%arg0: i32, %arg1: i32) -> (i32, i32) {
    %c0_i32 = arith.constant 0 : i32
    %c0_i32_0 = arith.constant 0 : i32
    %c0_i32_1 = arith.constant 0 : i32
    return %c0_i32, %c0_i32_0 : i32, i32
  }
  func.func @transform_5(%arg0: i32, %arg1: i32) -> (i32, i32, i32) {
    %c0_i32 = arith.constant 0 : i32
    %c0_i32_0 = arith.constant 0 : i32
    return %arg0, %arg1, %c0_i32 : i32, i32, i32
  }
  func.func @transform_6(%arg0: i32, %arg1: i32) -> (i32, i32) {
    %c0_i32 = arith.constant 0 : i32
    %c0_i32_0 = arith.constant 0 : i32
    return %arg0, %c0_i32 : i32, i32
  }
  func.func @transform_7(%arg0: i32, %arg1: i32) -> (i32, i32) {
    %c0_i32 = arith.constant 0 : i32
    %c0_i32_0 = arith.constant 0 : i32
    return %arg0, %c0_i32 : i32, i32
  }
}

</mosaic_0001>

<bundles_post_ra>
// kernel: definition_modeling_forward.3
= control target key start
LH: loop header
LB: loop body
LE: loop exit
PB: predicated region body
PF: predicated region fallthrough
CT: control target
= control target key end

     0   :  { %v353_v2 = vmov 0   ;;  %s452_s0 = inlined_call_operand.vmem [shape: bf16[64,128], index: 0, kind: input, shape index: {}]   ;;  %s453_s1 = inlined_call_operand.vmem [shape: bf16[128,256], index: 1, kind: input, shape index: {}]   ;;  %s454_s2 = inlined_call_operand.vmem [shape: f32[1,256], index: 2, kind: input, shape index: {}]   ;;  %s455_s3 = inlined_call_operand.hbm [shape: f32[64,256], index: 3, kind: output, shape index: {}]  }
   0x1   :  { %v301_v0 = vld [vmem:[%s453_s1 + $0x4] ss:$8 sps:$4 sm:$0xff]   ;;  %v303_v1 = vld [vmem:[%s453_s1] ss:$8 sps:$4 sm:$0xff]   ;;  %188 = vmatprep.mubr.bf16.mxu0 %v353_v2  ;;  %208 = vmatprep.mubr.bf16.mxu1 %v353_v2  ;;  %v304_v3 = vld [vmem:[%s453_s1 + $0x14] ss:$8 sps:$4 sm:$0xff]  }
   0x2   :  { %156 = vmatprep.subr.bf16.mxu0 %v301_v0  ;;  %281 = vmatprep.subr.bf16.mxu1 %v301_v0  ;;  %v306_v4 = vld [vmem:[%s453_s1 + $0x10] ss:$8 sps:$4 sm:$0xff]   ;;  %v307_v5 = vld [vmem:[%s453_s1 + $0x24] ss:$8 sps:$4 sm:$0xff]   ;;  %v309_v6 = vld [vmem:[%s453_s1 + $0x20] ss:$8 sps:$4 sm:$0xff]  }
   0x3   :  { %157 = vmatpush1.bf16.msra.mxu0 %v303_v1  ;;  %289 = vmatpush1.bf16.msra.mxu1 %v303_v1  ;;  %v310_v7 = vld [vmem:[%s453_s1 + $0x34] ss:$8 sps:$4 sm:$0xff]   ;;  %v312_v8 = vld [vmem:[%s453_s1 + $0x30] ss:$8 sps:$4 sm:$0xff]   ;;  %v313_v9 = vld [vmem:[%s453_s1 + $0x44] ss:$8 sps:$4 sm:$0xff]  }
   0x4   :  { %158 = vmatprep.subr.bf16.mxu0 %v304_v3  ;;  %282 = vmatprep.subr.bf16.mxu1 %v304_v3  ;;  %v315_v10 = vld [vmem:[%s453_s1 + $0x40] ss:$8 sps:$4 sm:$0xff]  }
   0x7   :  { %159 = vmatpush1.bf16.msra.mxu0 %v306_v4  ;;  %290 = vmatpush1.bf16.msra.mxu1 %v306_v4 }
   0x8   :  { %160 = vmatprep.subr.bf16.mxu0 %v307_v5  ;;  %283 = vmatprep.subr.bf16.mxu1 %v307_v5 }
   0xb   :  { %161 = vmatpush1.bf16.msra.mxu0 %v309_v6  ;;  %291 = vmatpush1.bf16.msra.mxu1 %v309_v6 }
   0xc   :  { %162 = vmatprep.subr.bf16.mxu0 %v310_v7  ;;  %284 = vmatprep.subr.bf16.mxu1 %v310_v7 }
   0xf   :  { %163 = vmatpush1.bf16.msra.mxu0 %v312_v8  ;;  %292 = vmatpush1.bf16.msra.mxu1 %v312_v8 }
  0x10   :  { %8 = vsyncpa [#allocation3], 0  ;;  %164 = vmatprep.subr.bf16.mxu0 %v313_v9  ;;  %285 = vmatprep.subr.bf16.mxu1 %v313_v9  ;;  %v316_v11 = vld [vmem:[%s453_s1 + $0x54] ss:$8 sps:$4 sm:$0xff]   ;;  %v318_v12 = vld [vmem:[%s453_s1 + $0x50] ss:$8 sps:$4 sm:$0xff]   ;;  %v42_v21 = vlaneseq }
  0x11   :  { %v319_v13 = vld [vmem:[%s453_s1 + $0x64] ss:$8 sps:$4 sm:$0xff]   ;;  %v321_v14 = vld [vmem:[%s453_s1 + $0x60] ss:$8 sps:$4 sm:$0xff]   ;;  %v322_v15 = vld [vmem:[%s453_s1 + $0x74] ss:$8 sps:$4 sm:$0xff]  }
  0x12   :  { %v324_v16 = vld [vmem:[%s453_s1 + $0x70] ss:$8 sps:$4 sm:$0xff]   ;;  %v325_v17 = vld [vmem:[%s452_s0] sm:$0xff]   ;;  %v327_v19 = vld [vmem:[%s452_s0 + $0x8] sm:$0xff]   ;;  %v43_v22 = vshrl.u32 %v42_v21, 7 }
  0x13   :  { %165 = vmatpush1.bf16.msra.mxu0 %v315_v10  ;;  %293 = vmatpush1.bf16.msra.mxu1 %v315_v10  ;;  %v326_v18 = vld [vmem:[%s452_s0 + $0x10] sm:$0xff]   ;;  %v328_v20 = vld [vmem:[%s452_s0 + $0x18] sm:$0xff]   ;;  %v40_v24 = vld [vmem:[%s454_s2] sm:$0x3]  ;;  %s354_s0 = smov [#allocation2]  }
  0x14   :  { %166 = vmatprep.subr.bf16.mxu0 %v316_v11  ;;  %286 = vmatprep.subr.bf16.mxu1 %v316_v11  ;;  %v44_v23 = vsub.s32 0, %v43_v22  ;;  %v48_v25 = vsub.s32 1, %v43_v22  ;;  %s250_s2 = sshll.u32 %s354_s0, 4  ;;  %s251_s2 = int_to_ptr.vmem [resolvable:$true] %s250_s2 }
  0x15   :  { %s329_s26 = scalar_lea.vmem %s251_s2, 2048  ;;  %p334_p1 = scmp.lt.s32.totalorder %s251_s2, %s251_s2 }
  0x16   :  { %v45_v26 = vrot.slane %v40_v24, %v44_v23  ;;  %v49_v27 = vrot.slane %v40_v24, %v48_v25  ;;  %p330_p0 = scmp.ne.s32.totalorder %s251_s2, %s329_s26  ;;  %p335_p2 = scmp.lt.s32.totalorder %s329_s26, %s329_s26 }
  0x17   :  { %167 = vmatpush1.bf16.msra.mxu0 %v318_v12  ;;  %294 = vmatpush1.bf16.msra.mxu1 %v318_v12 }
  0x18   :  { %168 = vmatprep.subr.bf16.mxu0 %v319_v13  ;;  %287 = vmatprep.subr.bf16.mxu1 %v319_v13  ;;  %p336_p3 = por %p335_p2, %p334_p1 }
  0x1a   :  { %p337_p4 = pnand %p336_p3, %p330_p0 }
  0x1b   :  { %169 = vmatpush1.bf16.msra.mxu0 %v321_v14  ;;  %295 = vmatpush1.bf16.msra.mxu1 %v321_v14 }
  0x1c   :  { %170 = vmatprep.subr.bf16.mxu0 %v322_v15  ;;  %288 = vmatprep.subr.bf16.mxu1 %v322_v15 }
  0x1f   :  { %171 = vmatpush1.bf16.msra.mxu0 %v324_v16  ;;  %296 = vmatpush1.bf16.msra.mxu1 %v324_v16 }
  0x22   :  { %189 = vmatmul.mubr.bf16.vlgmr.msra.gmra.mrb[0].mxu0 %v325_v17  ;;  %209 = vmatmul.mubr.bf16.vlgmr.msra.gmra.mrb[0].mxu1 %v326_v18 }
  0x23   :  { %198 = vmatprep.mubr.bf16.mxu0 %v353_v2  ;;  %218 = vmatprep.mubr.bf16.mxu1 %v353_v2 }
  0x2a   :  { %199 = vmatmul.mubr.bf16.gmra.mrb[4].mxu0 %v327_v19  ;;  %219 = vmatmul.mubr.bf16.gmra.mrb[4].mxu1 %v328_v20 }
  0xf5   :  { %v190_v28 = vpop.f32.mrb[0].mxu0  ;;  %v210_v29 = vpop.f32.mrb[0].mxu1 }
  0xf6   :  { %v191_v30 = vadd.f32 %v190_v28, %v45_v26  ;;  %v211_v31 = vadd.f32 %v210_v29, %v45_v26  ;;  %v192_v32 = vpop.f32.mrb[1].mxu0  ;;  %v212_v33 = vpop.f32.mrb[1].mxu1 }
  0xf7   :  { %v193_v34 = vadd.f32 %v192_v32, %v49_v27  ;;  %v213_v35 = vadd.f32 %v212_v33, %v49_v27  ;;  %v194_v36 = vpop.f32.mrb[2].mxu0  ;;  %v214_v37 = vpop.f32.mrb[2].mxu1 }
  0xf8   :  { %229 = vst [vmem:[#allocation2] sm:$0xff] %v191_v30  ;;  %237 = vst [vmem:[#allocation2 + $0x40] sm:$0xff] %v211_v31  ;;  %v195_v38 = vadd.f32 %v194_v36, %v45_v26  ;;  %v215_v39 = vadd.f32 %v214_v37, %v45_v26  ;;  %v196_v40 = vpop.f32.mrb[3].mxu0  ;;  %v216_v41 = vpop.f32.mrb[3].mxu1 }
  0xf9   :  { %230 = vst [vmem:[#allocation2 + $0x8] sm:$0xff] %v193_v34  ;;  %238 = vst [vmem:[#allocation2 + $0x48] sm:$0xff] %v213_v35  ;;  %v197_v42 = vadd.f32 %v196_v40, %v49_v27  ;;  %v217_v43 = vadd.f32 %v216_v41, %v49_v27 }
  0xfa   :  { %231 = vst [vmem:[#allocation2 + $0x10] sm:$0xff] %v195_v38  ;;  %239 = vst [vmem:[#allocation2 + $0x50] sm:$0xff] %v215_v39 }
  0xfb   :  { %232 = vst [vmem:[#allocation2 + $0x18] sm:$0xff] %v197_v42  ;;  %240 = vst [vmem:[#allocation2 + $0x58] sm:$0xff] %v217_v43 }
  0xfd   :  { %v200_v44 = vpop.f32.mrb[4].mxu0  ;;  %v220_v45 = vpop.f32.mrb[4].mxu1 }
  0xfe   :  { %v201_v46 = vadd.f32 %v200_v44, %v45_v26  ;;  %v221_v47 = vadd.f32 %v220_v45, %v45_v26  ;;  %v202_v48 = vpop.f32.mrb[5].mxu0  ;;  %v222_v49 = vpop.f32.mrb[5].mxu1 }
  0xff   :  { %v203_v50 = vadd.f32 %v202_v48, %v49_v27  ;;  %v223_v51 = vadd.f32 %v222_v49, %v49_v27  ;;  %v204_v52 = vpop.f32.mrb[6].mxu0  ;;  %v224_v53 = vpop.f32.mrb[6].mxu1 }
 0x100   :  { %233 = vst [vmem:[#allocation2 + $0x20] sm:$0xff] %v201_v46  ;;  %241 = vst [vmem:[#allocation2 + $0x60] sm:$0xff] %v221_v47  ;;  %v205_v54 = vadd.f32 %v204_v52, %v45_v26  ;;  %v225_v55 = vadd.f32 %v224_v53, %v45_v26  ;;  %v206_v56 = vpop.f32.mrb[7].mxu0  ;;  %v226_v57 = vpop.f32.mrb[7].mxu1 }
 0x101   :  { %234 = vst [vmem:[#allocation2 + $0x28] sm:$0xff] %v203_v50  ;;  %242 = vst [vmem:[#allocation2 + $0x68] sm:$0xff] %v223_v51  ;;  %v207_v58 = vadd.f32 %v206_v56, %v49_v27  ;;  %v227_v59 = vadd.f32 %v226_v57, %v49_v27 }
 0x102   :  { %235 = vst [vmem:[#allocation2 + $0x30] sm:$0xff] %v205_v54  ;;  %243 = vst [vmem:[#allocation2 + $0x70] sm:$0xff] %v225_v55 }
 0x103   :  { %236 = vst [vmem:[#allocation2 + $0x38] sm:$0xff] %v207_v58  ;;  %244 = vst [vmem:[#allocation2 + $0x78] sm:$0xff] %v227_v59 }
 0x104   :  { %340 = shalt.err (!%p337_p4)
}
 0x105   :  { %s341_s29 = scalar_lea.hbm %s455_s3, 2048 }
 0x106   :  { %p342_p5 = scmp.ne.s32.totalorder %s455_s3, %s341_s29  ;;  %p345_p6 = scmp.lt.u32.totalorder %s341_s29, %s455_s3 }
 0x108   :  { %p347_p7 = pnand %p345_p6, %p342_p5 }
 0x10a   :  { %350 = shalt.err (!%p347_p7)
}
 0x10b   :  { %s355_s7 = smov 256   ;;  %s356_s8 = smov 16  }
 0x10c   :  { %256 = dma.vmem_to_hbm [thread:$0]  %s251_s2, 2048, %s455_s3, [#allocation3], %s355_s7, %s355_s7, %s356_s8  }
 0x10d   :  { %351 = dma.done.wait [#allocation3], 2048  }
 0x10e   :  { %352 = vsyncadd [#allocation3], 4294965248 }
 0x10f   :  { %260 = vsyncpa [#allocation3], 1 }

// kernel: definition_modeling_forward.2
= control target key start
LH: loop header
LB: loop body
LE: loop exit
PB: predicated region body
PF: predicated region fallthrough
CT: control target
= control target key end

     0   :  { %13 = vsyncpa [#allocation3], 0  ;;  %s4646_s0 = inlined_call_operand.vmem [shape: bf16[8,8,128], index: 0, kind: input, shape index: {}]   ;;  %s4647_s1 = inlined_call_operand.vmem [shape: s32[8,1], index: 1, kind: input, shape index: {}]   ;;  %s4648_s2 = inlined_call_operand.vmem [shape: bf16[128,512], index: 2, kind: input, shape index: {}]   ;;  %s4649_s3 = inlined_call_operand.vmem [shape: f32[1,512], index: 3, kind: input, shape index: {}]   ;;  %s4650_s4 = inlined_call_operand.hbm [shape: bf16[128,512], index: 4, kind: input, shape index: {}]   ;;  %s4651_s5 = inlined_call_operand.vmem [shape: bf16[8,8,128], index: 5, kind: output, shape index: {0}]   ;;  %s4652_s6 = inlined_call_operand.hbm [shape: f32[8,128], index: 6, kind: output, shape index: {1}]   ;;  %s4653_s7 = inlined_call_operand.hbm [shape: f32[8,128], index: 7, kind: output, shape index: {2}]  }
   0x1   :  { %14 = vsyncpa [#allocation4], 0 }
   0x2   :  { %15 = vsyncpa [#allocation7], 0  ;;  %s3182_s24 = smov [#allocation2]   ;;  %s3110_s28 = scalar_lea.hbm %s4650_s4, 4096 }
   0x3   :  { %s29_s25 = sshll.u32 %s3182_s24, 4  ;;  %p3111_p0 = scmp.ne.s32.totalorder %s4650_s4, %s3110_s28  ;;  %s30_s25 = int_to_ptr.vmem [resolvable:$true] %s29_s25 }
   0x4   :  { %p3114_p1 = scmp.lt.u32.totalorder %s3110_s28, %s4650_s4 }
   0x6   :  { %p3116_p2 = pnand %p3114_p1, %p3111_p0 }
   0x8   :  { %3119 = shalt.err (!%p3116_p2)
}
   0x9   :  { %s3120_s10 = scalar_lea.vmem %s30_s25, 4096  ;;  %p3125_p4 = scmp.lt.s32.totalorder %s30_s25, %s30_s25 }
   0xa   :  { %p3121_p3 = scmp.ne.s32.totalorder %s30_s25, %s3120_s10  ;;  %p3126_p5 = scmp.lt.s32.totalorder %s3120_s10, %s3120_s10 }
   0xc   :  { %p3127_p6 = por %p3126_p5, %p3125_p4 }
   0xe   :  { %p3128_p7 = pnand %p3127_p6, %p3121_p3 }
  0x10   :  { %3131 = shalt.err (!%p3128_p7)
}
  0x11   :  { %s3183_s11 = smov 256   ;;  %s3184_s12 = smov 16  }
  0x12   :  { %35 = dma.hbm_to_vmem [thread:$0]  %s4650_s4, 4096, %s30_s25, [#allocation3], %s3183_s11, %s3183_s11, %s3184_s12  }
  0x13   :  { %3176 = dma.done.wait [#allocation3], 4096  }
  0x14   :  { %3177 = vsyncadd [#allocation3], 4294963200  ;;  %v4654_v0 = vmov 0   ;;  %v2850_v1 = vld [vmem:[%s4648_s2 + $0x4] ss:$16 sps:$4 sm:$0xff]   ;;  %v2911_v44 = vld [vmem:[%s4646_s0 + $0x8] sm:$0xff]  }
  0x15   :  { %324 = vmatprep.mubr.bf16.mxu0 %v4654_v0  ;;  %397 = vmatprep.mubr.bf16.mxu1 %v4654_v0  ;;  %v2852_v2 = vld [vmem:[%s4648_s2 + $0xc] ss:$16 sps:$4 sm:$0xff]   ;;  %v2854_v3 = vld [vmem:[%s4648_s2] ss:$16 sps:$4 sm:$0xff]   ;;  %v2855_v4 = vld [vmem:[%s4648_s2 + $0x8] ss:$16 sps:$4 sm:$0xff]  }
  0x16   :  { %2849 = vset.pattern.permute.xlu0 %v4654_v0  ;;  %292 = vmatprep.subr.bf16.mxu0 %v2850_v1  ;;  %v2856_v5 = vld [vmem:[%s4648_s2 + $0x24] ss:$16 sps:$4 sm:$0xff]   ;;  %v2858_v6 = vld [vmem:[%s4648_s2 + $0x2c] ss:$16 sps:$4 sm:$0xff]   ;;  %v2860_v7 = vld [vmem:[%s4648_s2 + $0x20] ss:$16 sps:$4 sm:$0xff]  }
  0x17   :  { %365 = vmatprep.subr.bf16.mxu1 %v2852_v2  ;;  %293 = vmatpush1.bf16.msra.mxu0 %v2854_v3  ;;  %v2861_v8 = vld [vmem:[%s4648_s2 + $0x28] ss:$16 sps:$4 sm:$0xff]   ;;  %v2862_v9 = vld [vmem:[%s4648_s2 + $0x44] ss:$16 sps:$4 sm:$0xff]   ;;  %v2864_v10 = vld [vmem:[%s4648_s2 + $0x4c] ss:$16 sps:$4 sm:$0xff]  }
  0x18   :  { %366 = vmatpush1.bf16.msra.mxu1 %v2855_v4  ;;  %294 = vmatprep.subr.bf16.mxu0 %v2856_v5  ;;  %v2866_v11 = vld [vmem:[%s4648_s2 + $0x40] ss:$16 sps:$4 sm:$0xff]   ;;  %v2867_v12 = vld [vmem:[%s4648_s2 + $0x48] ss:$16 sps:$4 sm:$0xff]   ;;  %v2868_v13 = vld [vmem:[%s4648_s2 + $0x64] ss:$16 sps:$4 sm:$0xff]  }
  0x19   :  { %367 = vmatprep.subr.bf16.mxu1 %v2858_v6  ;;  %v2870_v14 = vld [vmem:[%s4648_s2 + $0x6c] ss:$16 sps:$4 sm:$0xff]   ;;  %v2872_v15 = vld [vmem:[%s4648_s2 + $0x60] ss:$16 sps:$4 sm:$0xff]   ;;  %v2873_v16 = vld [vmem:[%s4648_s2 + $0x68] ss:$16 sps:$4 sm:$0xff]  }
  0x1a   :  { %v2874_v17 = vld [vmem:[%s4648_s2 + $0x84] ss:$16 sps:$4 sm:$0xff]   ;;  %v2876_v18 = vld [vmem:[%s4648_s2 + $0x8c] ss:$16 sps:$4 sm:$0xff]   ;;  %v2878_v19 = vld [vmem:[%s4648_s2 + $0x80] ss:$16 sps:$4 sm:$0xff]  }
  0x1b   :  { %295 = vmatpush1.bf16.msra.mxu0 %v2860_v7  ;;  %v2879_v20 = vld [vmem:[%s4648_s2 + $0x88] ss:$16 sps:$4 sm:$0xff]   ;;  %v2880_v21 = vld [vmem:[%s4648_s2 + $0xa4] ss:$16 sps:$4 sm:$0xff]   ;;  %v2882_v22 = vld [vmem:[%s4648_s2 + $0xac] ss:$16 sps:$4 sm:$0xff]  }
  0x1c   :  { %368 = vmatpush1.bf16.msra.mxu1 %v2861_v8  ;;  %296 = vmatprep.subr.bf16.mxu0 %v2862_v9  ;;  %v2884_v23 = vld [vmem:[%s4648_s2 + $0xa0] ss:$16 sps:$4 sm:$0xff]   ;;  %v2885_v24 = vld [vmem:[%s4648_s2 + $0xa8] ss:$16 sps:$4 sm:$0xff]   ;;  %v2886_v25 = vld [vmem:[%s4648_s2 + $0xc4] ss:$16 sps:$4 sm:$0xff]   ;;  %v88_v8 = vlaneseq }
  0x1d   :  { %369 = vmatprep.subr.bf16.mxu1 %v2864_v10  ;;  %v2888_v26 = vld [vmem:[%s4648_s2 + $0xcc] ss:$16 sps:$4 sm:$0xff]   ;;  %v2890_v27 = vld [vmem:[%s4648_s2 + $0xc0] ss:$16 sps:$4 sm:$0xff]   ;;  %v2891_v28 = vld [vmem:[%s4648_s2 + $0xc8] ss:$16 sps:$4 sm:$0xff]  }
  0x1e   :  { %v2892_v29 = vld [vmem:[%s4648_s2 + $0xe4] ss:$16 sps:$4 sm:$0xff]   ;;  %v2894_v30 = vld [vmem:[%s4648_s2 + $0xec] ss:$16 sps:$4 sm:$0xff]   ;;  %v2896_v31 = vld [vmem:[%s4648_s2 + $0xe0] ss:$16 sps:$4 sm:$0xff]  }
  0x1f   :  { %297 = vmatpush1.bf16.msra.mxu0 %v2866_v11  ;;  %v2897_v32 = vld [vmem:[%s4648_s2 + $0xe8] ss:$16 sps:$4 sm:$0xff]   ;;  %v3343_v33 = vld [vmem:[#allocation2 + $0x4] ss:$16 sps:$4 sm:$0xff]   ;;  %v3345_v34 = vld [vmem:[#allocation2 + $0xc] ss:$16 sps:$4 sm:$0xff]  }
  0x20   :  { %370 = vmatpush1.bf16.msra.mxu1 %v2867_v12  ;;  %298 = vmatprep.subr.bf16.mxu0 %v2868_v13  ;;  %v2898_v35 = vld [vmem:[%s4646_s0] sm:$0xff]   ;;  %v3352_v37 = vld [vmem:[#allocation2 + $0x8] ss:$16 sps:$4 sm:$0xff]   ;;  %v3358_v39 = vld [vmem:[#allocation2 + $0x2c] ss:$16 sps:$4 sm:$0xff]   ;;  %v3186_v7 = vmov 0.0|0.0  }
  0x21   :  { %371 = vmatprep.subr.bf16.mxu1 %v2870_v14  ;;  %v3350_v36 = vld [vmem:[#allocation2] ss:$16 sps:$4 sm:$0xff]   ;;  %v3356_v38 = vld [vmem:[#allocation2 + $0x24] ss:$16 sps:$4 sm:$0xff]   ;;  %v3364_v41 = vld [vmem:[#allocation2 + $0x28] ss:$16 sps:$4 sm:$0xff]  }
  0x22   :  { %v3360_v40 = vld [vmem:[#allocation2 + $0x20] ss:$16 sps:$4 sm:$0xff]   ;;  %v3368_v42 = vld [vmem:[#allocation2 + $0x44] ss:$16 sps:$4 sm:$0xff]   ;;  %v3370_v43 = vld [vmem:[#allocation2 + $0x4c] ss:$16 sps:$4 sm:$0xff]  }
  0x23   :  { %299 = vmatpush1.bf16.msra.mxu0 %v2872_v15  ;;  %v3377_v45 = vld [vmem:[#allocation2 + $0x40] ss:$16 sps:$4 sm:$0xff]   ;;  %v3379_v46 = vld [vmem:[#allocation2 + $0x48] ss:$16 sps:$4 sm:$0xff]   ;;  %v3383_v47 = vld [vmem:[#allocation2 + $0x64] ss:$16 sps:$4 sm:$0xff]  }
  0x24   :  { %372 = vmatpush1.bf16.msra.mxu1 %v2873_v16  ;;  %300 = vmatprep.subr.bf16.mxu0 %v2874_v17  ;;  %v3387_v48 = vld [vmem:[#allocation2 + $0x6c] ss:$16 sps:$4 sm:$0xff]   ;;  %v3389_v49 = vld [vmem:[#allocation2 + $0x60] ss:$16 sps:$4 sm:$0xff]   ;;  %v3391_v50 = vld [vmem:[#allocation2 + $0x68] ss:$16 sps:$4 sm:$0xff]  }
  0x25   :  { %373 = vmatprep.subr.bf16.mxu1 %v2876_v18  ;;  %v3395_v51 = vld [vmem:[#allocation2 + $0x84] ss:$16 sps:$4 sm:$0xff]   ;;  %v3399_v52 = vld [vmem:[#allocation2 + $0x8c] ss:$16 sps:$4 sm:$0xff]   ;;  %v3411_v55 = vld [vmem:[#allocation2 + $0x80] ss:$16 sps:$4 sm:$0xff]  }
  0x26   :  { %v447_v53 = vld [vmem:[%s4647_s1] sm:$0xff]  ;;  %v2924_v54 = vld [vmem:[%s4646_s0 + $0x10] sm:$0xff]   ;;  %v3413_v56 = vld [vmem:[#allocation2 + $0x88] ss:$16 sps:$4 sm:$0xff]   ;;  %v3498_v9 = vshrl.u32 %v88_v8, 7  ;;  %vm895_vm1 = vcmask 1040384  }
  0x27   :  { %301 = vmatpush1.bf16.msra.mxu0 %v2878_v19  ;;  %449 = vperm.xlu0 %2849, %v447_v53   ;;  %v3417_v57 = vld [vmem:[#allocation2 + $0xa4] ss:$16 sps:$4 sm:$0xff]   ;;  %v3419_v58 = vld [vmem:[#allocation2 + $0xac] ss:$16 sps:$4 sm:$0xff]   ;;  %v3423_v59 = vld [vmem:[#allocation2 + $0xa0] ss:$16 sps:$4 sm:$0xff]  }
  0x28   :  { %374 = vmatpush1.bf16.msra.mxu1 %v2879_v20  ;;  %302 = vmatprep.subr.bf16.mxu0 %v2880_v21  ;;  %v3425_v60 = vld [vmem:[#allocation2 + $0xa8] ss:$16 sps:$4 sm:$0xff]   ;;  %v3429_v61 = vld [vmem:[#allocation2 + $0xc4] ss:$16 sps:$4 sm:$0xff]   ;;  %v3431_v62 = vld [vmem:[#allocation2 + $0xcc] ss:$16 sps:$4 sm:$0xff]  }
  0x29   :  { %375 = vmatprep.subr.bf16.mxu1 %v2882_v22  ;;  %v2937_v63 = vld [vmem:[%s4646_s0 + $0x18] sm:$0xff]   ;;  %v3440_v1 = vld [vmem:[#allocation2 + $0xc0] ss:$16 sps:$4 sm:$0xff]   ;;  %v3446_v3 = vld [vmem:[#allocation2 + $0xe4] ss:$16 sps:$4 sm:$0xff]   ;;  %v98_v10 = vsub.s32 2, %v3498_v9 }
  0x2a   :  { %v3442_v2 = vld [vmem:[#allocation2 + $0xc8] ss:$16 sps:$4 sm:$0xff]   ;;  %v3448_v4 = vld [vmem:[#allocation2 + $0xec] ss:$16 sps:$4 sm:$0xff]   ;;  %v3452_v5 = vld [vmem:[#allocation2 + $0xe0] ss:$16 sps:$4 sm:$0xff]  }
  0x2b   :  { %303 = vmatpush1.bf16.msra.mxu0 %v2884_v23  ;;  %v3454_v6 = vld [vmem:[#allocation2 + $0xe8] ss:$16 sps:$4 sm:$0xff]   ;;  %v102_v11 = vsub.s32 3, %v3498_v9  ;;  %v90_v12 = vsub.s32 0, %v3498_v9  ;;  %v86_v13 = vld [vmem:[%s4649_s3] sm:$0xf] }
  0x2c   :  { %376 = vmatpush1.bf16.msra.mxu1 %v2885_v24  ;;  %304 = vmatprep.subr.bf16.mxu0 %v2886_v25  ;;  %v94_v14 = vsub.s32 1, %v3498_v9  ;;  %v3507_v15 = vrot.slane %v86_v13, %v98_v10  ;;  %vm896_vm2 = vsmask.f32 256  ;;  %vm1145_vm5 = vsmask.f32 7938  ;;  %s3190_s3 = smov [#allocation6]  }
  0x2d   :  { %377 = vmatprep.subr.bf16.mxu1 %v2888_v26  ;;  %v3513_v18 = vrot.slane %v86_v13, %v102_v11  ;;  %v91_v19 = vrot.slane %v86_v13, %v90_v12  ;;  %vm3616_vm3 = vmand %vm895_vm1, %vm896_vm2  ;;  %vm1394_vm8 = vcmask 1041409   ;;  %vm1395_vm9 = vsmask.f32 1280  ;;  %s2693_s16 = sshll.u32 %s3190_s3, 4  ;;  %s2694_s16 = int_to_ptr.vmem [resolvable:$true] %s2693_s16 }
  0x2e   :  { %v95_v22 = vrot.slane %v86_v13, %v94_v14  ;;  %vm3746_vm6 = vmand %vm895_vm1, %vm1145_vm5  ;;  %vm1644_vm12 = vsmask.f32 7942  ;;  %vm1893_vm15 = vcmask 1042434   ;;  %s3132_s17 = scalar_lea.vmem %s2694_s16, 128  ;;  %p3137_p9 = scmp.lt.s32.totalorder %s2694_s16, %s2694_s16 }
  0x2f   :  { %305 = vmatpush1.bf16.msra.mxu0 %v2890_v27  ;;  %vm3886_vm10 = vmand %vm1394_vm8, %vm1395_vm9  ;;  %p3133_p8 = scmp.ne.s32.totalorder %s2694_s16, %s3132_s17  ;;  %p3138_p10 = scmp.lt.s32.totalorder %s3132_s17, %s3132_s17 }
  0x30   :  { %378 = vmatpush1.bf16.msra.mxu1 %v2891_v28  ;;  %306 = vmatprep.subr.bf16.mxu0 %v2892_v29  ;;  %vm4070_vm13 = vmand %vm1394_vm8, %vm1644_vm12  ;;  %vm2393_vm8 = vsmask.f32 3328 }
  0x31   :  { %379 = vmatprep.subr.bf16.mxu1 %v2894_v30  ;;  %p3139_p11 = por %p3138_p10, %p3137_p9 }
  0x33   :  { %307 = vmatpush1.bf16.msra.mxu0 %v2896_v31  ;;  %p3140_p12 = pnand %p3139_p11, %p3133_p8 }
  0x34   :  { %380 = vmatpush1.bf16.msra.mxu1 %v2897_v32  ;;  %678 = vmatprep.subr.bf16.mxu0 %v3343_v33 }
  0x35   :  { %719 = vmatprep.subr.bf16.mxu1 %v3345_v34 }
  0x36   :  { %325 = vmatmul.mubr.bf16.vlgmr.msra.gmra.mrb[0].mxu0 %v2898_v35 }
  0x37   :  { %398 = vmatmul.mubr.bf16.vlgmr.msra.gmra.mrb[0].mxu1 %v2898_v35  ;;  %679 = vmatpush1.bf16.msra.mxu0 %v3350_v36 }
  0x38   :  { %720 = vmatpush1.bf16.msra.mxu1 %v3352_v37  ;;  %680 = vmatprep.subr.bf16.mxu0 %v3356_v38 }
  0x39   :  { %721 = vmatprep.subr.bf16.mxu1 %v3358_v39  ;;  %334 = vmatprep.mubr.bf16.mxu0 %v4654_v0 }
  0x3a   :  { %407 = vmatprep.mubr.bf16.mxu1 %v4654_v0 }
  0x3b   :  { %681 = vmatpush1.bf16.msra.mxu0 %v3360_v40 }
  0x3c   :  { %722 = vmatpush1.bf16.msra.mxu1 %v3364_v41  ;;  %682 = vmatprep.subr.bf16.mxu0 %v3368_v42 }
  0x3d   :  { %723 = vmatprep.subr.bf16.mxu1 %v3370_v43 }
  0x3e   :  { %335 = vmatmul.mubr.bf16.gmra.mrb[4].mxu0 %v2911_v44 }
  0x3f   :  { %408 = vmatmul.mubr.bf16.gmra.mrb[4].mxu1 %v2911_v44  ;;  %683 = vmatpush1.bf16.msra.mxu0 %v3377_v45 }
  0x40   :  { %724 = vmatpush1.bf16.msra.mxu1 %v3379_v46  ;;  %684 = vmatprep.subr.bf16.mxu0 %v3383_v47 }
  0x41   :  { %725 = vmatprep.subr.bf16.mxu1 %v3387_v48  ;;  %344 = vmatprep.mubr.bf16.mxu0 %v4654_v0 }
  0x42   :  { %417 = vmatprep.mubr.bf16.mxu1 %v4654_v0 }
  0x43   :  { %685 = vmatpush1.bf16.msra.mxu0 %v3389_v49 }
  0x44   :  { %726 = vmatpush1.bf16.msra.mxu1 %v3391_v50  ;;  %686 = vmatprep.subr.bf16.mxu0 %v3395_v51 }
  0x45   :  { %727 = vmatprep.subr.bf16.mxu1 %v3399_v52 }
  0x46   :  { %345 = vmatmul.mubr.bf16.gmra.mrb[8].mxu0 %v2924_v54 }
  0x47   :  { %418 = vmatmul.mubr.bf16.gmra.mrb[8].mxu1 %v2924_v54  ;;  %687 = vmatpush1.bf16.msra.mxu0 %v3411_v55 }
  0x48   :  { %728 = vmatpush1.bf16.msra.mxu1 %v3413_v56  ;;  %688 = vmatprep.subr.bf16.mxu0 %v3417_v57 }
  0x49   :  { %729 = vmatprep.subr.bf16.mxu1 %v3419_v58  ;;  %354 = vmatprep.mubr.bf16.mxu0 %v4654_v0 }
  0x4a   :  { %427 = vmatprep.mubr.bf16.mxu1 %v4654_v0 }
  0x4b   :  { %689 = vmatpush1.bf16.msra.mxu0 %v3423_v59 }
  0x4c   :  { %730 = vmatpush1.bf16.msra.mxu1 %v3425_v60  ;;  %690 = vmatprep.subr.bf16.mxu0 %v3429_v61 }
  0x4d   :  { %731 = vmatprep.subr.bf16.mxu1 %v3431_v62 }
  0x4e   :  { %355 = vmatmul.mubr.bf16.gmra.mrb[12].mxu0 %v2937_v63 }
  0x4f   :  { %428 = vmatmul.mubr.bf16.gmra.mrb[12].mxu1 %v2937_v63  ;;  %691 = vmatpush1.bf16.msra.mxu0 %v3440_v1 }
  0x50   :  { %732 = vmatpush1.bf16.msra.mxu1 %v3442_v2  ;;  %692 = vmatprep.subr.bf16.mxu0 %v3446_v3 }
  0x51   :  { %733 = vmatprep.subr.bf16.mxu1 %v3448_v4  ;;  %710 = vmatprep.mubr.bf16.mxu0 %v4654_v0 }
  0x52   :  { %751 = vmatprep.mubr.bf16.mxu1 %v4654_v0 }
  0x53   :  { %693 = vmatpush1.bf16.msra.mxu0 %v3452_v5 }
  0x54   :  { %734 = vmatpush1.bf16.msra.mxu1 %v3454_v6  ;;  %928 = vmatprep.subr.bf16.mxu0 %v3343_v33 }
  0x55   :  { %969 = vmatprep.subr.bf16.mxu1 %v3345_v34 }
  0x56   :  { %711 = vmatmul.mubr.bf16.vlgmr.msra.gmra.mrb[16].mxu0 %v3186_v7 }
  0x57   :  { %752 = vmatmul.mubr.bf16.vlgmr.msra.gmra.mrb[16].mxu1 %v3186_v7  ;;  %929 = vmatpush1.bf16.msra.mxu0 %v3350_v36 }
  0x58   :  { %970 = vmatpush1.bf16.msra.mxu1 %v3352_v37  ;;  %930 = vmatprep.subr.bf16.mxu0 %v3356_v38 }
  0x59   :  { %971 = vmatprep.subr.bf16.mxu1 %v3358_v39  ;;  %960 = vmatprep.mubr.bf16.mxu0 %v4654_v0 }
  0x5a   :  { %1001 = vmatprep.mubr.bf16.mxu1 %v4654_v0 }
  0x5b   :  { %931 = vmatpush1.bf16.msra.mxu0 %v3360_v40 }
  0x5c   :  { %972 = vmatpush1.bf16.msra.mxu1 %v3364_v41  ;;  %932 = vmatprep.subr.bf16.mxu0 %v3368_v42 }
  0x5d   :  { %973 = vmatprep.subr.bf16.mxu1 %v3370_v43 }
  0x5f   :  { %933 = vmatpush1.bf16.msra.mxu0 %v3377_v45 }
  0x60   :  { %974 = vmatpush1.bf16.msra.mxu1 %v3379_v46  ;;  %934 = vmatprep.subr.bf16.mxu0 %v3383_v47 }
  0x61   :  { %975 = vmatprep.subr.bf16.mxu1 %v3387_v48 }
  0x63   :  { %935 = vmatpush1.bf16.msra.mxu0 %v3389_v49 }
  0x64   :  { %976 = vmatpush1.bf16.msra.mxu1 %v3391_v50  ;;  %936 = vmatprep.subr.bf16.mxu0 %v3395_v51 }
  0x65   :  { %977 = vmatprep.subr.bf16.mxu1 %v3399_v52 }
  0x67   :  { %937 = vmatpush1.bf16.msra.mxu0 %v3411_v55 }
  0x68   :  { %978 = vmatpush1.bf16.msra.mxu1 %v3413_v56  ;;  %938 = vmatprep.subr.bf16.mxu0 %v3417_v57 }
  0x69   :  { %979 = vmatprep.subr.bf16.mxu1 %v3419_v58 }
  0x6b   :  { %939 = vmatpush1.bf16.msra.mxu0 %v3423_v59 }
  0x6c   :  { %980 = vmatpush1.bf16.msra.mxu1 %v3425_v60  ;;  %940 = vmatprep.subr.bf16.mxu0 %v3429_v61 }
  0x6d   :  { %981 = vmatprep.subr.bf16.mxu1 %v3431_v62 }
  0x6f   :  { %941 = vmatpush1.bf16.msra.mxu0 %v3440_v1 }
  0x70   :  { %982 = vmatpush1.bf16.msra.mxu1 %v3442_v2  ;;  %942 = vmatprep.subr.bf16.mxu0 %v3446_v3 }
  0x71   :  { %983 = vmatprep.subr.bf16.mxu1 %v3448_v4 }
  0x73   :  { %943 = vmatpush1.bf16.msra.mxu0 %v3452_v5 }
  0x74   :  { %984 = vmatpush1.bf16.msra.mxu1 %v3454_v6  ;;  %1177 = vmatprep.subr.bf16.mxu0 %v3343_v33 }
  0x75   :  { %1218 = vmatprep.subr.bf16.mxu1 %v3345_v34 }
 0x109   :  { %v3509_v16 = vpop.f32.mrb[0].mxu0 }
 0x10a   :  { %v3511_v17 = vpop.f32.mrb[0].mxu1  ;;  %v328_v20 = vpop.f32.mrb[1].mxu0 }
 0x10b   :  { %v401_v21 = vpop.f32.mrb[1].mxu1  ;;  %v330_v23 = vpop.f32.mrb[2].mxu0 }
 0x10c   :  { %v403_v24 = vpop.f32.mrb[2].mxu1  ;;  %v3515_v25 = vadd.f32 %v330_v23, %v91_v19  ;;  %v332_v26 = vpop.f32.mrb[3].mxu0 }
 0x10d   :  { %v3518_v27 = vadd.f32 %v403_v24, %v3507_v15  ;;  %v405_v28 = vpop.f32.mrb[3].mxu1  ;;  %v3520_v29 = vadd.f32 %v332_v26, %v95_v22 }
 0x10e   :  { %v3523_v30 = vadd.f32 %v405_v28, %v3513_v18 }
 0x111   :  { %v336_v31 = vpop.f32.mrb[4].mxu0 }
 0x112   :  { %v409_v32 = vpop.f32.mrb[4].mxu1  ;;  %v3525_v35 = vadd.f32 %v336_v31, %v91_v19  ;;  %v338_v44 = vpop.f32.mrb[5].mxu0 }
 0x113   :  { %v3528_v53 = vadd.f32 %v409_v32, %v3507_v15  ;;  %v411_v54 = vpop.f32.mrb[5].mxu1  ;;  %v3530_v63 = vadd.f32 %v338_v44, %v95_v22  ;;  %v340_v7 = vpop.f32.mrb[6].mxu0 }
 0x114   :  { %4658 = vst [vmem:[#allocation11_spill] sm:$0xff] %v3525_v35  ;;  %v3533_v8 = vadd.f32 %v411_v54, %v3513_v18  ;;  %v413_v10 = vpop.f32.mrb[6].mxu1  ;;  %v3535_v11 = vadd.f32 %v340_v7, %v91_v19  ;;  %v342_v12 = vpop.f32.mrb[7].mxu0 }
 0x115   :  { %4659 = vst [vmem:[#allocation12_spill] sm:$0xff] %v3528_v53  ;;  %4660 = vst [vmem:[#allocation13_spill] sm:$0xff] %v3530_v63  ;;  %v3538_v13 = vadd.f32 %v413_v10, %v3507_v15  ;;  %v415_v14 = vpop.f32.mrb[7].mxu1  ;;  %v3540_v23 = vadd.f32 %v342_v12, %v95_v22 }
 0x116   :  { %4661 = vst [vmem:[#allocation14_spill] sm:$0xff] %v3533_v8  ;;  %4662 = vst [vmem:[#allocation15_spill] sm:$0xff] %v3535_v11  ;;  %v3543_v24 = vadd.f32 %v415_v14, %v3513_v18 }
 0x117   :  { %4663 = vst [vmem:[#allocation16_spill] sm:$0xff] %v3538_v13  ;;  %4664 = vst [vmem:[#allocation17_spill] sm:$0xff] %v3540_v23 }
 0x118   :  { %4665 = vst [vmem:[#allocation18_spill] sm:$0xff] %v3543_v24 }
 0x119   :  { %v346_v26 = vpop.f32.mrb[8].mxu0 }
 0x11a   :  { %v419_v28 = vpop.f32.mrb[8].mxu1  ;;  %v3545_v31 = vadd.f32 %v346_v26, %v91_v19  ;;  %v348_v32 = vpop.f32.mrb[9].mxu0 }
 0x11b   :  { %v3548_v44 = vadd.f32 %v419_v28, %v3507_v15  ;;  %v421_v54 = vpop.f32.mrb[9].mxu1  ;;  %v3550_v7 = vadd.f32 %v348_v32, %v95_v22  ;;  %v350_v0 = vpop.f32.mrb[10].mxu0 }
 0x11c   :  { %4666 = vst [vmem:[#allocation19_spill] sm:$0xff] %v3545_v31  ;;  %v3553_v10 = vadd.f32 %v421_v54, %v3513_v18  ;;  %v423_v12 = vpop.f32.mrb[10].mxu1  ;;  %v3555_v23 = vadd.f32 %v350_v0, %v91_v19  ;;  %v352_v14 = vpop.f32.mrb[11].mxu0 }
 0x11d   :  { %4667 = vst [vmem:[#allocation20_spill] sm:$0xff] %v3548_v44  ;;  %4668 = vst [vmem:[#allocation21_spill] sm:$0xff] %v3550_v7  ;;  %v3558_v24 = vadd.f32 %v423_v12, %v3507_v15  ;;  %v425_v26 = vpop.f32.mrb[11].mxu1  ;;  %v3560_v31 = vadd.f32 %v352_v14, %v95_v22 }
 0x11e   :  { %4669 = vst [vmem:[#allocation22_spill] sm:$0xff] %v3553_v10  ;;  %4670 = vst [vmem:[#allocation23_spill] sm:$0xff] %v3555_v23  ;;  %v3563_v28 = vadd.f32 %v425_v26, %v3513_v18 }
 0x11f   :  { %4671 = vst [vmem:[#allocation24_spill] sm:$0xff] %v3558_v24  ;;  %4672 = vst [vmem:[#allocation25_spill] sm:$0xff] %v3560_v31 }
 0x120   :  { %4673 = vst [vmem:[#allocation26_spill] sm:$0xff] %v3563_v28 }
 0x121   :  { %v356_v44 = vpop.f32.mrb[12].mxu0 }
 0x122   :  { %v429_v32 = vpop.f32.mrb[12].mxu1  ;;  %v3565_v7 = vadd.f32 %v356_v44, %v91_v19  ;;  %v358_v13 = vpop.f32.mrb[13].mxu0 }
 0x123   :  { %v3568_v54 = vadd.f32 %v429_v32, %v3507_v15  ;;  %v431_v0 = vpop.f32.mrb[13].mxu1  ;;  %v3570_v23 = vadd.f32 %v358_v13, %v95_v22  ;;  %v360_v10 = vpop.f32.mrb[14].mxu0  ;;  %v327_v13 = vadd.f32 %v3509_v16, %v91_v19 }
 0x124   :  { %4674 = vst [vmem:[#allocation27_spill] sm:$0xff] %v3565_v7  ;;  %v3573_v12 = vadd.f32 %v431_v0, %v3513_v18  ;;  %v433_v14 = vpop.f32.mrb[14].mxu1  ;;  %v3575_v31 = vadd.f32 %v360_v10, %v91_v19  ;;  %v362_v26 = vpop.f32.mrb[15].mxu0  ;;  %v329_v0 = vadd.f32 %v328_v20, %v95_v22 }
 0x125   :  { %4675 = vst [vmem:[#allocation28_spill] sm:$0xff] %v3568_v54  ;;  %4676 = vst [vmem:[#allocation29_spill] sm:$0xff] %v3570_v23  ;;  %v3578_v28 = vadd.f32 %v433_v14, %v3507_v15  ;;  %v435_v44 = vpop.f32.mrb[15].mxu1  ;;  %v3580_v7 = vadd.f32 %v362_v26, %v95_v22  ;;  %v400_v23 = vadd.f32 %v3511_v17, %v3507_v15  ;;  %v4656_v22 = vmov 0.0  }
 0x126   :  { %4677 = vst [vmem:[#allocation30_spill] sm:$0xff] %v3573_v12  ;;  %4678 = vst [vmem:[#allocation31_spill] sm:$0xff] %v3575_v31  ;;  %v3583_v32 = vadd.f32 %v435_v44, %v3513_v18  ;;  %v402_v12 = vadd.f32 %v401_v21, %v3513_v18  ;;  %v3589_v21 = vpop.permute.xlu0 %449 }
 0x127   :  { %4679 = vst [vmem:[#allocation32_spill] sm:$0xff] %v3578_v28  ;;  %4680 = vst [vmem:[#allocation33_spill] sm:$0xff] %v3580_v7  ;;  %vm451_vm0 = vcmp.gt.s32.totalorder %v3589_v21, 0  ;;  %vm452_vm4 = vcmp.gt.s32.totalorder %v3589_v21, 1  ;;  %vm453_vm7 = vcmp.gt.s32.totalorder %v3589_v21, 2  ;;  %vm454_vm11 = vcmp.gt.s32.totalorder %v3589_v21, 3 }
 0x128   :  { %4681 = vst [vmem:[#allocation34_spill] sm:$0xff] %v3583_v32  ;;  %vm455_vm14 = vcmp.gt.s32.totalorder %v3589_v21, 4  ;;  %vm456_vm2 = vcmp.gt.s32.totalorder %v3589_v21, 5  ;;  %vm457_vm5 = vcmp.gt.s32.totalorder %v3589_v21, 6 }
 0x129   :  { %v712_v10 = vpop.f32.mrb[16].mxu0 }
 0x12a   :  { %v753_v31 = vpop.f32.mrb[16].mxu1  ;;  %v760_v54 = vadd.f32 %v712_v10, %v327_v13  ;;  %v714_v14 = vpop.f32.mrb[17].mxu0  ;;  %v3188_v10 = vmov 1966171168  }
 0x12b   :  { %v762_v24 = vadd.f32 %v753_v31, %v400_v23  ;;  %v755_v28 = vpop.f32.mrb[17].mxu1  ;;  %v761_v11 = vadd.f32 %v714_v14, %v329_v0  ;;  %v716_v7 = vpop.f32.mrb[18].mxu0  ;;  %v792_v14 = vunpack.c.l.s4 %v3188_v10  ;;  %v4682_v10 = vmov 0  }
 0x12c   :  { %v763_v26 = vadd.f32 %v755_v28, %v402_v12  ;;  %v757_v8 = vpop.f32.mrb[18].mxu1  ;;  %v2784_v44 = vmul.f32 -1.442695, %v760_v54  ;;  %v717_v32 = vpop.f32.mrb[19].mxu0 }
 0x12d   :  { %v758_v63 = vpop.f32.mrb[19].mxu1  ;;  %v2785_v16 = vmul.f32 -1.442695, %v761_v11  ;;  %v2744_v8 = vsel %vm451_vm0, 1.0, %v4656_v22  ;;  %v916_v22 = vld [vmem:[%s4651_s5 + $0x18] sm:$0x1] }
 0x12e   :  { %2950 = vpow2.f32 %v2784_v44  ;;  %v2786_v15 = vmul.f32 -1.442695, %v763_v26  ;;  %v475_v31 = vsub.f32 1.0, %v2744_v8  ;;  %v793_v44 = vunpack.c.0.s8 %v792_v14 }
 0x12f   :  { %2952 = vpow2.f32 %v2785_v16  ;;  %vm1894_vm0 = vsmask.f32 2304 }
 0x130   :  { %2954 = vpow2.f32 %v2786_v15  ;;  %vm4200_vm1 = vmand %vm1893_vm15, %vm1894_vm0 }
 0x131   :  { %2956 = vtanh.f32 %v762_v24  ;;  %v922_v24 = vmul.f32 0.0, %v475_v31 }
 0x138   :  { %v2951_v17 = vpop.eup %2950 }
 0x139   :  { %v2953_v19 = vpop.eup %2952  ;;  %v767_v18 = vadd.f32 1.0, %v2951_v17  ;;  %v3189_v17 = vmov 286326784  }
 0x13a   :  { %v773_v20 = vadd.f32 1.0, %v2953_v19  ;;  %v2955_v63 = vpop.eup %2954  ;;  %v832_v19 = vunpack.c.l.s4 %v3189_v17 }
 0x13b   :  { %2958 = vrcp.f32 %v767_v18  ;;  %v2957_v11 = vpop.eup %2956  ;;  %v780_v54 = vadd.f32 1.0, %v2955_v63 }
 0x13c   :  { %2960 = vrcp.f32 %v773_v20  ;;  %v3596_v20 = vsub.s32 %v793_v44, %v3498_v9 }
 0x13d   :  { %2962 = vrcp.f32 %v780_v54 }
 0x145   :  { %v2959_v23 = vpop.eup %2958 }
 0x146   :  { %v2961_v7 = vpop.eup %2960  ;;  %v784_v28 = vmul.f32 %v2959_v23, %v2957_v11  ;;  %v833_v23 = vunpack.c.0.s8 %v832_v19 }
 0x147   :  { %v783_v12 = vmul.f32 0.0, %v2961_v7  ;;  %v2963_v26 = vpop.eup %2962 }
 0x149   :  { %v785_v32 = vadd.f32 %v784_v28, %v783_v12  ;;  %v3605_v12 = vsub.s32 %v833_v23, %v3498_v9 }
 0x14b   :  { %2964 = vtanh.f32 %v785_v32  ;;  %v924_v13 = vmul.f32 %v2744_v8, %v785_v32 }
 0x14d   :  { %v3593_v0 = vadd.f32 %v924_v13, %v922_v24 }
 0x155   :  { %v2965_v16 = vpop.eup %2964 }
 0x156   :  { %v787_v15 = vmul.f32 %v2965_v16, %v2963_v26 }
 0x158   :  { %v788_v18 = vmul.f32 %v2744_v8, %v787_v15  ;;  %v898_v15 = vld [vmem:[%s4651_s5] sm:$0x1] }
 0x15a   :  { %v789_v63 = vpack.c.bf16 %v788_v18, %v788_v18  ;;  %v3598_v11 = vadd.f32 %v922_v24, %v788_v18 }
 0x15c   :  { %v797_v31 = vrot.slane %v789_v63, %v3596_v20  ;;  %v927_v7 = vpack.c.bf16 %v3598_v11, %v3598_v11 }
 0x15e   :  { %v798_v28 = vcombine.high %v797_v31, %v797_v31  ;;  %v805_v54 = vrot.slane %v797_v31, %v3596_v20  ;;  %961 = vmatmul.mubr.bf16.vlgmr.msra.gmra.mrb[20].mxu0 %v927_v7  ;;  %1002 = vmatmul.mubr.bf16.vlgmr.msra.gmra.mrb[20].mxu1 %v927_v7 }
 0x15f   :  { %1178 = vmatpush1.bf16.msra.mxu0 %v3350_v36  ;;  %1219 = vmatpush1.bf16.msra.mxu1 %v3352_v37 }
 0x160   :  { %v812_v8 = vrot.slane %v798_v28, %v3596_v20  ;;  %v813_v32 = vcombine.high %v805_v54, %v805_v54  ;;  %v816_v24 = vunpack.i.h.s16 %v805_v54  ;;  %v2787_v13 = vpack.i.b16 %v805_v54, %v805_v54  ;;  %1179 = vmatprep.subr.bf16.mxu0 %v3356_v38  ;;  %1220 = vmatprep.subr.bf16.mxu1 %v3358_v39  ;;  %v901_v28 = vld [vmem:[%s4651_s5 + $0x4] sm:$0x1]  ;;  %v904_v54 = vld [vmem:[%s4651_s5 + $0x8] sm:$0x1] }
 0x161   :  { %1209 = vmatprep.mubr.bf16.mxu0 %v4682_v10  ;;  %1250 = vmatprep.mubr.bf16.mxu1 %v4682_v10 }
 0x162   :  { %v814_v9 = vcombine.high %v812_v8, %v812_v8  ;;  %v818_v14 = vunpack.i.h.s16 %v812_v8  ;;  %v820_v26 = vunpack.i.h.s16 %v813_v32  ;;  %v824_v44 = vpack.i.b16 %v816_v24, %v816_v24 }
 0x163   :  { %v2788_v17 = vpack.i.b16 %v812_v8, %v812_v8  ;;  %v2789_v19 = vpack.i.b16 %v813_v32, %v813_v32  ;;  %v837_v18 = vrot.slane %v2787_v13, %v3605_v12  ;;  %1180 = vmatpush1.bf16.msra.mxu0 %v3360_v40  ;;  %1221 = vmatpush1.bf16.msra.mxu1 %v3364_v41  ;;  %v910_v8 = vld [vmem:[%s4651_s5 + $0x10] sm:$0x1] }
 0x164   :  { %v822_v63 = vunpack.i.h.s16 %v814_v9  ;;  %v826_v23 = vpack.i.b16 %v818_v14, %v818_v14  ;;  %v828_v31 = vpack.i.b16 %v820_v26, %v820_v26  ;;  %v2790_v7 = vpack.i.b16 %v814_v9, %v814_v9  ;;  %1181 = vmatprep.subr.bf16.mxu0 %v3368_v42  ;;  %1222 = vmatprep.subr.bf16.mxu1 %v3370_v43  ;;  %v907_v14 = vld [vmem:[%s4651_s5 + $0xc] sm:$0x1]  ;;  %v913_v26 = vld [vmem:[%s4651_s5 + $0x14] sm:$0x1] }
 0x165   :  { %v844_v32 = vrot.slane %v824_v44, %v3605_v12  ;;  %v851_v24 = vrot.slane %v2788_v17, %v3605_v12  ;;  %v865_v13 = vrot.slane %v2789_v19, %v3605_v12  ;;  %v899_v9 = vsel %vm3616_vm3, %v837_v18, %v898_v15 }
 0x166   :  { %v830_v44 = vpack.i.b16 %v822_v63, %v822_v63  ;;  %v858_v17 = vrot.slane %v826_v23, %v3605_v12  ;;  %v872_v19 = vrot.slane %v828_v31, %v3605_v12  ;;  %v879_v53 = vrot.slane %v2790_v7, %v3605_v12  ;;  %900 = vst [vmem:[%s4651_s5] sm:$0x1] %v899_v9  ;;  %v919_v63 = vld [vmem:[%s4651_s5 + $0x1c] sm:$0x1] }
 0x167   :  { %v902_v15 = vsel %vm3616_vm3, %v844_v32, %v901_v28  ;;  %v905_v18 = vsel %vm3616_vm3, %v851_v24, %v904_v54  ;;  %v911_v35 = vsel %vm3616_vm3, %v865_v13, %v910_v8  ;;  %1182 = vmatpush1.bf16.msra.mxu0 %v3377_v45  ;;  %1223 = vmatpush1.bf16.msra.mxu1 %v3379_v46 }
 0x168   :  { %v886_v23 = vrot.slane %v830_v44, %v3605_v12  ;;  %903 = vst [vmem:[%s4651_s5 + $0x4] sm:$0x1] %v902_v15  ;;  %906 = vst [vmem:[%s4651_s5 + $0x8] sm:$0x1] %v905_v18  ;;  %v908_v31 = vsel %vm3616_vm3, %v858_v17, %v907_v14  ;;  %v914_v7 = vsel %vm3616_vm3, %v872_v19, %v913_v26  ;;  %1183 = vmatprep.subr.bf16.mxu0 %v3383_v47 }
 0x169   :  { %912 = vst [vmem:[%s4651_s5 + $0x10] sm:$0x1] %v911_v35  ;;  %v917_v28 = vsel %vm3616_vm3, %v879_v53, %v916_v22  ;;  %909 = vst [vmem:[%s4651_s5 + $0xc] sm:$0x1] %v908_v31  ;;  %1224 = vmatprep.subr.bf16.mxu1 %v3387_v48 }
 0x16a   :  { %915 = vst [vmem:[%s4651_s5 + $0x14] sm:$0x1] %v914_v7  ;;  %918 = vst [vmem:[%s4651_s5 + $0x18] sm:$0x1] %v917_v28  ;;  %v920_v35 = vsel %vm3616_vm3, %v886_v23, %v919_v63  ;;  %v4685_v63 = vmov 0.0  }
 0x16b   :  { %921 = vst [vmem:[%s4651_s5 + $0x1c] sm:$0x1] %v920_v35  ;;  %1184 = vmatpush1.bf16.msra.mxu0 %v3389_v49  ;;  %1225 = vmatpush1.bf16.msra.mxu1 %v3391_v50  ;;  %v2745_v23 = vsel %vm452_vm4, 1.0, %v4685_v63  ;;  %vm2143_vm3 = vsmask.f32 7946 }
 0x16c   :  { %1185 = vmatprep.subr.bf16.mxu0 %v3395_v51  ;;  %1226 = vmatprep.subr.bf16.mxu1 %v3399_v52  ;;  %vm4330_vm4 = vmand %vm1893_vm15, %vm2143_vm3 }
 0x16f   :  { %1186 = vmatpush1.bf16.msra.mxu0 %v3411_v55  ;;  %1227 = vmatpush1.bf16.msra.mxu1 %v3413_v56 }
 0x170   :  { %1187 = vmatprep.subr.bf16.mxu0 %v3417_v57  ;;  %1228 = vmatprep.subr.bf16.mxu1 %v3419_v58 }
 0x173   :  { %1188 = vmatpush1.bf16.msra.mxu0 %v3423_v59  ;;  %1229 = vmatpush1.bf16.msra.mxu1 %v3425_v60 }
 0x174   :  { %1189 = vmatprep.subr.bf16.mxu0 %v3429_v61  ;;  %1230 = vmatprep.subr.bf16.mxu1 %v3431_v62 }
 0x177   :  { %1190 = vmatpush1.bf16.msra.mxu0 %v3440_v1  ;;  %1231 = vmatpush1.bf16.msra.mxu1 %v3442_v2 }
 0x178   :  { %1191 = vmatprep.subr.bf16.mxu0 %v3446_v3  ;;  %1232 = vmatprep.subr.bf16.mxu1 %v3448_v4 }
 0x17b   :  { %1192 = vmatpush1.bf16.msra.mxu0 %v3452_v5  ;;  %1233 = vmatpush1.bf16.msra.mxu1 %v3454_v6 }
 0x17c   :  { %1427 = vmatprep.subr.bf16.mxu0 %v3343_v33  ;;  %1468 = vmatprep.subr.bf16.mxu1 %v3345_v34 }
 0x231   :  { %v962_v53 = vpop.f32.mrb[20].mxu0  ;;  %v1003_v22 = vpop.f32.mrb[20].mxu1 }
 0x232   :  { %v1010_v16 = vadd.f32 %v962_v53, %v3515_v25  ;;  %v1012_v54 = vadd.f32 %v1003_v22, %v3518_v27  ;;  %v964_v8 = vpop.f32.mrb[21].mxu0  ;;  %v1005_v32 = vpop.f32.mrb[21].mxu1  ;;  %v476_v22 = vsub.f32 1.0, %v2745_v23 }
 0x233   :  { %v1011_v24 = vadd.f32 %v964_v8, %v3520_v29  ;;  %v1013_v13 = vadd.f32 %v1005_v32, %v3523_v30  ;;  %v966_v9 = vpop.f32.mrb[22].mxu0  ;;  %v1007_v14 = vpop.f32.mrb[22].mxu1 }
 0x234   :  { %v2791_v26 = vmul.f32 -1.442695, %v1010_v16  ;;  %v967_v44 = vpop.f32.mrb[23].mxu0  ;;  %v1008_v17 = vpop.f32.mrb[23].mxu1  ;;  %v1174_v8 = vmul.f32 %v3593_v0, %v476_v22 }
 0x235   :  { %v2792_v33 = vmul.f32 -1.442695, %v1011_v24  ;;  %v2793_v19 = vmul.f32 -1.442695, %v1013_v13 }
 0x236   :  { %2966 = vpow2.f32 %v2791_v26  ;;  %v1171_v26 = vmul.f32 %v3598_v11, %v476_v22  ;;  %v1147_v22 = vld [vmem:[%s4651_s5] sm:$0x1] }
 0x237   :  { %2968 = vpow2.f32 %v2792_v33 }
 0x238   :  { %2970 = vpow2.f32 %v2793_v19 }
 0x239   :  { %2972 = vtanh.f32 %v1012_v54 }
 0x240   :  { %v2967_v15 = vpop.eup %2966 }
 0x241   :  { %v2969_v18 = vpop.eup %2968  ;;  %v1017_v25 = vadd.f32 1.0, %v2967_v15 }
 0x242   :  { %v1023_v27 = vadd.f32 1.0, %v2969_v18  ;;  %v2971_v29 = vpop.eup %2970 }
 0x243   :  { %2974 = vrcp.f32 %v1017_v25  ;;  %v2973_v30 = vpop.eup %2972  ;;  %v1030_v35 = vadd.f32 1.0, %v2971_v29 }
 0x244   :  { %2976 = vrcp.f32 %v1023_v27 }
 0x245   :  { %2978 = vrcp.f32 %v1030_v35 }
 0x24d   :  { %v2975_v31 = vpop.eup %2974 }
 0x24e   :  { %v2977_v7 = vpop.eup %2976  ;;  %v1034_v28 = vmul.f32 %v2975_v31, %v2973_v30 }
 0x24f   :  { %v1033_v53 = vmul.f32 %v2977_v7, %v3593_v0  ;;  %v2979_v24 = vpop.eup %2978 }
 0x251   :  { %v1035_v16 = vadd.f32 %v1034_v28, %v1033_v53 }
 0x253   :  { %2980 = vtanh.f32 %v1035_v16  ;;  %v1173_v54 = vmul.f32 %v2745_v23, %v1035_v16 }
 0x255   :  { %v3728_v32 = vadd.f32 %v1174_v8, %v1173_v54 }
 0x25d   :  { %v2981_v13 = vpop.eup %2980 }
 0x25e   :  { %v1037_v9 = vmul.f32 %v2981_v13, %v2979_v24 }
 0x260   :  { %v1038_v14 = vmul.f32 %v2745_v23, %v1037_v9 }
 0x262   :  { %v1039_v44 = vpack.c.bf16 %v1038_v14, %v1038_v14  ;;  %v3731_v17 = vadd.f32 %v1171_v26, %v1038_v14  ;;  %v1159_v14 = vld [vmem:[%s4651_s5 + $0x10] sm:$0x1] }
 0x264   :  { %v1047_v33 = vrot.slane %v1039_v44, %v3596_v20  ;;  %v1176_v19 = vpack.c.bf16 %v3731_v17, %v3731_v17 }
 0x266   :  { %v1048_v15 = vcombine.high %v1047_v33, %v1047_v33  ;;  %v1055_v18 = vrot.slane %v1047_v33, %v3596_v20  ;;  %1210 = vmatmul.mubr.bf16.vlgmr.msra.gmra.mrb[24].mxu0 %v1176_v19  ;;  %1251 = vmatmul.mubr.bf16.vlgmr.msra.gmra.mrb[24].mxu1 %v1176_v19  ;;  %v1156_v33 = vld [vmem:[%s4651_s5 + $0xc] sm:$0x1] }
 0x267   :  { %1428 = vmatpush1.bf16.msra.mxu0 %v3350_v36  ;;  %1469 = vmatpush1.bf16.msra.mxu1 %v3352_v37 }
 0x268   :  { %v1062_v0 = vrot.slane %v1048_v15, %v3596_v20  ;;  %v1063_v11 = vcombine.high %v1055_v18, %v1055_v18  ;;  %v1066_v25 = vunpack.i.h.s16 %v1055_v18  ;;  %v2794_v27 = vpack.i.b16 %v1055_v18, %v1055_v18  ;;  %1429 = vmatprep.subr.bf16.mxu0 %v3356_v38  ;;  %1470 = vmatprep.subr.bf16.mxu1 %v3358_v39  ;;  %v1162_v15 = vld [vmem:[%s4651_s5 + $0x14] sm:$0x1]  ;;  %v1165_v18 = vld [vmem:[%s4651_s5 + $0x18] sm:$0x1] }
 0x269   :  { %1459 = vmatprep.mubr.bf16.mxu0 %v4682_v10  ;;  %1500 = vmatprep.mubr.bf16.mxu1 %v4682_v10 }
 0x26a   :  { %v1064_v29 = vcombine.high %v1062_v0, %v1062_v0  ;;  %v1068_v30 = vunpack.i.h.s16 %v1062_v0  ;;  %v1070_v23 = vunpack.i.h.s16 %v1063_v11  ;;  %v1074_v31 = vpack.i.b16 %v1066_v25, %v1066_v25  ;;  %v1168_v25 = vld [vmem:[%s4651_s5 + $0x1c] sm:$0x1] }
 0x26b   :  { %v2795_v37 = vpack.i.b16 %v1062_v0, %v1062_v0  ;;  %v2796_v7 = vpack.i.b16 %v1063_v11, %v1063_v11  ;;  %v1087_v38 = vrot.slane %v2794_v27, %v3605_v12  ;;  %1430 = vmatpush1.bf16.msra.mxu0 %v3360_v40  ;;  %1471 = vmatpush1.bf16.msra.mxu1 %v3364_v41 }
 0x26c   :  { %v1072_v39 = vunpack.i.h.s16 %v1064_v29  ;;  %v1076_v28 = vpack.i.b16 %v1068_v30, %v1068_v30  ;;  %v1078_v35 = vpack.i.b16 %v1070_v23, %v1070_v23  ;;  %v2797_v53 = vpack.i.b16 %v1064_v29, %v1064_v29  ;;  %1431 = vmatprep.subr.bf16.mxu0 %v3368_v42  ;;  %1472 = vmatprep.subr.bf16.mxu1 %v3370_v43  ;;  %v1150_v42 = vld [vmem:[%s4651_s5 + $0x4] sm:$0x1]  ;;  %v1153_v43 = vld [vmem:[%s4651_s5 + $0x8] sm:$0x1] }
 0x26d   :  { %v1094_v16 = vrot.slane %v1074_v31, %v3605_v12  ;;  %v1101_v54 = vrot.slane %v2795_v37, %v3605_v12  ;;  %v1115_v40 = vrot.slane %v2796_v7, %v3605_v12  ;;  %v1148_v41 = vsel %vm3746_vm6, %v1087_v38, %v1147_v22 }
 0x26e   :  { %v1080_v8 = vpack.i.b16 %v1072_v39, %v1072_v39  ;;  %v1108_v24 = vrot.slane %v1076_v28, %v3605_v12  ;;  %v1122_v13 = vrot.slane %v1078_v35, %v3605_v12  ;;  %v1129_v9 = vrot.slane %v2797_v53, %v3605_v12  ;;  %1149 = vst [vmem:[%s4651_s5] sm:$0x1] %v1148_v41 }
 0x26f   :  { %v1151_v26 = vsel %vm3746_vm6, %v1094_v16, %v1150_v42  ;;  %v1154_v44 = vsel %vm3746_vm6, %v1101_v54, %v1153_v43  ;;  %v1160_v19 = vsel %vm3746_vm6, %v1115_v40, %v1159_v14  ;;  %1432 = vmatpush1.bf16.msra.mxu0 %v3377_v45  ;;  %1473 = vmatpush1.bf16.msra.mxu1 %v3379_v46  ;;  %v2746_v28 = vsel %vm453_vm7, 1.0, %v4685_v63 }
 0x270   :  { %v1136_v0 = vrot.slane %v1080_v8, %v3605_v12  ;;  %1152 = vst [vmem:[%s4651_s5 + $0x4] sm:$0x1] %v1151_v26  ;;  %1155 = vst [vmem:[%s4651_s5 + $0x8] sm:$0x1] %v1154_v44  ;;  %v1157_v11 = vsel %vm3746_vm6, %v1108_v24, %v1156_v33  ;;  %v1163_v45 = vsel %vm3746_vm6, %v1122_v13, %v1162_v15  ;;  %1433 = vmatprep.subr.bf16.mxu0 %v3383_v47  ;;  %vm2392_vm7 = vcmask 1043459  }
 0x271   :  { %1161 = vst [vmem:[%s4651_s5 + $0x10] sm:$0x1] %v1160_v19  ;;  %v1166_v46 = vsel %vm3746_vm6, %v1129_v9, %v1165_v18  ;;  %1158 = vst [vmem:[%s4651_s5 + $0xc] sm:$0x1] %v1157_v11  ;;  %1474 = vmatprep.subr.bf16.mxu1 %v3387_v48  ;;  %v3848_v48 = vld [vmem:[#allocation2 + $0x4] ss:$16 sps:$4 sm:$0xff]  }
 0x272   :  { %1164 = vst [vmem:[%s4651_s5 + $0x14] sm:$0x1] %v1163_v45  ;;  %1167 = vst [vmem:[%s4651_s5 + $0x18] sm:$0x1] %v1166_v46  ;;  %v1169_v47 = vsel %vm3746_vm6, %v1136_v0, %v1168_v25  ;;  %v477_v22 = vsub.f32 1.0, %v2746_v28  ;;  %vm458_vm6 = vcmp.gt.s32.totalorder %v3589_v21, 7 }
 0x273   :  { %1170 = vst [vmem:[%s4651_s5 + $0x1c] sm:$0x1] %v1169_v47  ;;  %1434 = vmatpush1.bf16.msra.mxu0 %v3389_v49  ;;  %1475 = vmatpush1.bf16.msra.mxu1 %v3391_v50  ;;  %v3876_v11 = vld [vmem:[#allocation2 + $0x24] ss:$16 sps:$4 sm:$0xff]   ;;  %v3879_v45 = vld [vmem:[#allocation2 + $0x2c] ss:$16 sps:$4 sm:$0xff]   ;;  %vm4457_vm9 = vmand %vm2392_vm7, %vm2393_vm8 }
 0x274   :  { %1435 = vmatprep.subr.bf16.mxu0 %v3395_v51  ;;  %1476 = vmatprep.subr.bf16.mxu1 %v3399_v52  ;;  %v4688_v51 = vld [vmem:[#allocation11_spill] sm:$0xff]  ;;  %v1424_v54 = vmul.f32 %v3728_v32, %v477_v22  ;;  %v1421_v9 = vmul.f32 %v3731_v17, %v477_v22  ;;  %v3872_v17 = vld [vmem:[#allocation2 + $0x8] ss:$16 sps:$4 sm:$0xff]  }
 0x275   :  { %v3944_v22 = vld [vmem:[#allocation2 + $0x40] ss:$16 sps:$4 sm:$0xff]  }
 0x277   :  { %1436 = vmatpush1.bf16.msra.mxu0 %v3411_v55  ;;  %1477 = vmatpush1.bf16.msra.mxu1 %v3413_v56  ;;  %v4689_v55 = vld [vmem:[#allocation12_spill] sm:$0xff] }
 0x278   :  { %1437 = vmatprep.subr.bf16.mxu0 %v3417_v57  ;;  %1478 = vmatprep.subr.bf16.mxu1 %v3419_v58 }
 0x27b   :  { %1438 = vmatpush1.bf16.msra.mxu0 %v3423_v59  ;;  %1479 = vmatpush1.bf16.msra.mxu1 %v3425_v60  ;;  %v4690_v59 = vld [vmem:[#allocation13_spill] sm:$0xff] }
 0x27c   :  { %1439 = vmatprep.subr.bf16.mxu0 %v3429_v61  ;;  %1480 = vmatprep.subr.bf16.mxu1 %v3431_v62  ;;  %v4691_v61 = vld [vmem:[#allocation14_spill] sm:$0xff] }
 0x27f   :  { %1440 = vmatpush1.bf16.msra.mxu0 %v3440_v1  ;;  %1481 = vmatpush1.bf16.msra.mxu1 %v3442_v2 }
 0x280   :  { %1441 = vmatprep.subr.bf16.mxu0 %v3446_v3  ;;  %1482 = vmatprep.subr.bf16.mxu1 %v3448_v4 }
 0x283   :  { %1442 = vmatpush1.bf16.msra.mxu0 %v3452_v5  ;;  %1483 = vmatpush1.bf16.msra.mxu1 %v3454_v6 }
 0x284   :  { %1676 = vmatprep.subr.bf16.mxu0 %v3848_v48  ;;  %1717 = vmatprep.subr.bf16.mxu1 %v3345_v34 }
 0x339   :  { %v1211_v49 = vpop.f32.mrb[24].mxu0  ;;  %v1252_v50 = vpop.f32.mrb[24].mxu1 }
 0x33a   :  { %v1259_v52 = vadd.f32 %v1211_v49, %v4688_v51  ;;  %v1261_v56 = vadd.f32 %v1252_v50, %v4689_v55  ;;  %v1213_v57 = vpop.f32.mrb[25].mxu0  ;;  %v1254_v58 = vpop.f32.mrb[25].mxu1  ;;  %v1397_v51 = vld [vmem:[%s4651_s5] sm:$0x2] }
 0x33b   :  { %v1260_v60 = vadd.f32 %v1213_v57, %v4690_v59  ;;  %v1262_v62 = vadd.f32 %v1254_v58, %v4691_v61  ;;  %v1215_v1 = vpop.f32.mrb[26].mxu0  ;;  %v1256_v2 = vpop.f32.mrb[26].mxu1  ;;  %v3894_v57 = vld [vmem:[#allocation2 + $0x20] ss:$16 sps:$4 sm:$0xff]   ;;  %v3897_v58 = vld [vmem:[#allocation2 + $0x28] ss:$16 sps:$4 sm:$0xff]  }
 0x33c   :  { %v2798_v3 = vmul.f32 -1.442695, %v1259_v52  ;;  %v1216_v4 = vpop.f32.mrb[27].mxu0  ;;  %v1257_v5 = vpop.f32.mrb[27].mxu1  ;;  %v1400_v1 = vld [vmem:[%s4651_s5 + $0x4] sm:$0x2] }
 0x33d   :  { %v2799_v6 = vmul.f32 -1.442695, %v1260_v60  ;;  %v2800_v34 = vmul.f32 -1.442695, %v1262_v62  ;;  %v1403_v2 = vld [vmem:[%s4651_s5 + $0x8] sm:$0x2] }
 0x33e   :  { %2982 = vpow2.f32 %v2798_v3  ;;  %v1409_v3 = vld [vmem:[%s4651_s5 + $0x10] sm:$0x2]  ;;  %v3909_v4 = vld [vmem:[#allocation2 + $0x44] ss:$16 sps:$4 sm:$0xff]   ;;  %v3912_v5 = vld [vmem:[#allocation2 + $0x4c] ss:$16 sps:$4 sm:$0xff]  }
 0x33f   :  { %2984 = vpow2.f32 %v2799_v6  ;;  %v4022_v50 = vld [vmem:[#allocation2 + $0xc0] ss:$16 sps:$4 sm:$0xff]  }
 0x340   :  { %2986 = vpow2.f32 %v2800_v34 }
 0x341   :  { %2988 = vtanh.f32 %v1261_v56 }
 0x348   :  { %v2983_v27 = vpop.eup %2982 }
 0x349   :  { %v2985_v29 = vpop.eup %2984  ;;  %v1266_v30 = vadd.f32 1.0, %v2983_v27 }
 0x34a   :  { %v1272_v23 = vadd.f32 1.0, %v2985_v29  ;;  %v2987_v31 = vpop.eup %2986 }
 0x34b   :  { %2990 = vrcp.f32 %v1266_v30  ;;  %v2989_v36 = vpop.eup %2988  ;;  %v1279_v39 = vadd.f32 1.0, %v2987_v31  ;;  %v1406_v30 = vld [vmem:[%s4651_s5 + $0xc] sm:$0x2]  ;;  %v1415_v31 = vld [vmem:[%s4651_s5 + $0x18] sm:$0x2] }
 0x34c   :  { %2992 = vrcp.f32 %v1272_v23  ;;  %v1412_v23 = vld [vmem:[%s4651_s5 + $0x14] sm:$0x2] }
 0x34d   :  { %2994 = vrcp.f32 %v1279_v39 }
 0x355   :  { %v2991_v37 = vpop.eup %2990 }
 0x356   :  { %v2993_v7 = vpop.eup %2992  ;;  %v1283_v38 = vmul.f32 %v2991_v37, %v2989_v36 }
 0x357   :  { %v1282_v35 = vmul.f32 %v2993_v7, %v3728_v32  ;;  %v2995_v41 = vpop.eup %2994  ;;  %v3869_v32 = vld [vmem:[#allocation2] ss:$16 sps:$4 sm:$0xff]  }
 0x359   :  { %v1284_v53 = vadd.f32 %v1283_v38, %v1282_v35 }
 0x35b   :  { %2996 = vtanh.f32 %v1284_v53  ;;  %v1423_v16 = vmul.f32 %v2746_v28, %v1284_v53  ;;  %v1418_v53 = vld [vmem:[%s4651_s5 + $0x1c] sm:$0x2] }
 0x35d   :  { %v3860_v40 = vadd.f32 %v1424_v54, %v1423_v16  ;;  %v3947_v16 = vld [vmem:[#allocation2 + $0x48] ss:$16 sps:$4 sm:$0xff]  }
 0x365   :  { %v2997_v8 = vpop.eup %2996 }
 0x366   :  { %v1286_v24 = vmul.f32 %v2997_v8, %v2995_v41 }
 0x368   :  { %v1287_v13 = vmul.f32 %v2746_v28, %v1286_v24 }
 0x36a   :  { %v1288_v42 = vpack.c.bf16 %v1287_v13, %v1287_v13  ;;  %v3863_v43 = vadd.f32 %v1421_v9, %v1287_v13  ;;  %v3966_v13 = vld [vmem:[#allocation2 + $0x64] ss:$16 sps:$4 sm:$0xff]   ;;  %v3978_v9 = vld [vmem:[#allocation2 + $0x6c] ss:$16 sps:$4 sm:$0xff]  }
 0x36c   :  { %v1296_v14 = vrot.slane %v1288_v42, %v3596_v20  ;;  %v1426_v26 = vpack.c.bf16 %v3863_v43, %v3863_v43 }
 0x36e   :  { %v1297_v44 = vcombine.high %v1296_v14, %v1296_v14  ;;  %v1304_v33 = vrot.slane %v1296_v14, %v3596_v20  ;;  %1460 = vmatmul.mubr.bf16.vlgmr.msra.gmra.mrb[28].mxu0 %v1426_v26  ;;  %1501 = vmatmul.mubr.bf16.vlgmr.msra.gmra.mrb[28].mxu1 %v1426_v26  ;;  %v3986_v14 = vld [vmem:[#allocation2 + $0x60] ss:$16 sps:$4 sm:$0xff]   ;;  %v3989_v26 = vld [vmem:[#allocation2 + $0x68] ss:$16 sps:$4 sm:$0xff]  }
 0x36f   :  { %1677 = vmatpush1.bf16.msra.mxu0 %v3869_v32  ;;  %1718 = vmatpush1.bf16.msra.mxu1 %v3872_v17 }
 0x370   :  { %v1311_v19 = vrot.slane %v1297_v44, %v3596_v20  ;;  %v1312_v15 = vcombine.high %v1304_v33, %v1304_v33  ;;  %v1315_v18 = vunpack.i.h.s16 %v1304_v33  ;;  %v2801_v0 = vpack.i.b16 %v1304_v33, %v1304_v33  ;;  %1678 = vmatprep.subr.bf16.mxu0 %v3876_v11  ;;  %1719 = vmatprep.subr.bf16.mxu1 %v3879_v45  ;;  %v3992_v44 = vld [vmem:[#allocation2 + $0x84] ss:$16 sps:$4 sm:$0xff]   ;;  %v3995_v33 = vld [vmem:[#allocation2 + $0x8c] ss:$16 sps:$4 sm:$0xff]  }
 0x371   :  { %1708 = vmatprep.mubr.bf16.mxu0 %v4682_v10  ;;  %1749 = vmatprep.mubr.bf16.mxu1 %v4682_v10 }
 0x372   :  { %v1313_v46 = vcombine.high %v1311_v19, %v1311_v19  ;;  %v1317_v25 = vunpack.i.h.s16 %v1311_v19  ;;  %v1319_v47 = vunpack.i.h.s16 %v1312_v15  ;;  %v1323_v49 = vpack.i.b16 %v1315_v18, %v1315_v18  ;;  %v4004_v18 = vld [vmem:[#allocation2 + $0xa4] ss:$16 sps:$4 sm:$0xff]  }
 0x373   :  { %v2802_v52 = vpack.i.b16 %v1311_v19, %v1311_v19  ;;  %v2803_v55 = vpack.i.b16 %v1312_v15, %v1312_v15  ;;  %v1336_v56 = vrot.slane %v2801_v0, %v3605_v12  ;;  %1679 = vmatpush1.bf16.msra.mxu0 %v3894_v57  ;;  %1720 = vmatpush1.bf16.msra.mxu1 %v3897_v58  ;;  %v3998_v19 = vld [vmem:[#allocation2 + $0x80] ss:$16 sps:$4 sm:$0xff]   ;;  %v4001_v15 = vld [vmem:[#allocation2 + $0x88] ss:$16 sps:$4 sm:$0xff]   ;;  %v4007_v0 = vld [vmem:[#allocation2 + $0xac] ss:$16 sps:$4 sm:$0xff]  }
 0x374   :  { %v1321_v59 = vunpack.i.h.s16 %v1313_v46  ;;  %v1325_v60 = vpack.i.b16 %v1317_v25, %v1317_v25  ;;  %v1327_v61 = vpack.i.b16 %v1319_v47, %v1319_v47  ;;  %v2804_v62 = vpack.i.b16 %v1313_v46, %v1313_v46  ;;  %1680 = vmatprep.subr.bf16.mxu0 %v3909_v4  ;;  %1721 = vmatprep.subr.bf16.mxu1 %v3912_v5  ;;  %v4010_v46 = vld [vmem:[#allocation2 + $0xa0] ss:$16 sps:$4 sm:$0xff]   ;;  %v4013_v25 = vld [vmem:[#allocation2 + $0xa8] ss:$16 sps:$4 sm:$0xff]   ;;  %v4016_v47 = vld [vmem:[#allocation2 + $0xc4] ss:$16 sps:$4 sm:$0xff]  }
 0x375   :  { %v1343_v6 = vrot.slane %v1323_v49, %v3605_v12  ;;  %v1350_v34 = vrot.slane %v2802_v52, %v3605_v12  ;;  %v1364_v27 = vrot.slane %v2803_v55, %v3605_v12  ;;  %v1398_v29 = vsel %vm3886_vm10, %v1336_v56, %v1397_v51  ;;  %v4019_v49 = vld [vmem:[#allocation2 + $0xcc] ss:$16 sps:$4 sm:$0xff]   ;;  %v4025_v51 = vld [vmem:[#allocation2 + $0xc8] ss:$16 sps:$4 sm:$0xff]   ;;  %v4028_v52 = vld [vmem:[#allocation2 + $0xe4] ss:$16 sps:$4 sm:$0xff]  }
 0x376   :  { %v1329_v36 = vpack.i.b16 %v1321_v59, %v1321_v59  ;;  %v1357_v37 = vrot.slane %v1325_v60, %v3605_v12  ;;  %v1371_v7 = vrot.slane %v1327_v61, %v3605_v12  ;;  %v1378_v38 = vrot.slane %v2804_v62, %v3605_v12  ;;  %1399 = vst [vmem:[%s4651_s5] sm:$0x2] %v1398_v29  ;;  %v4031_v55 = vld [vmem:[#allocation2 + $0xec] ss:$16 sps:$4 sm:$0xff]   ;;  %v4034_v56 = vld [vmem:[#allocation2 + $0xe0] ss:$16 sps:$4 sm:$0xff]  }
 0x377   :  { %v1401_v39 = vsel %vm3886_vm10, %v1343_v6, %v1400_v1  ;;  %v1404_v28 = vsel %vm3886_vm10, %v1350_v34, %v1403_v2  ;;  %v1410_v35 = vsel %vm3886_vm10, %v1364_v27, %v1409_v3  ;;  %1681 = vmatpush1.bf16.msra.mxu0 %v3944_v22  ;;  %1722 = vmatpush1.bf16.msra.mxu1 %v3947_v16  ;;  %v4037_v59 = vld [vmem:[#allocation2 + $0xe8] ss:$16 sps:$4 sm:$0xff]   ;;  %v4041_v60 = vld [vmem:[#allocation2 + $0xc] ss:$16 sps:$4 sm:$0xff]   ;;  %v4694_v1 = vld [vmem:[#allocation15_spill] sm:$0xff] }
 0x378   :  { %v1385_v54 = vrot.slane %v1329_v36, %v3605_v12  ;;  %1402 = vst [vmem:[%s4651_s5 + $0x4] sm:$0x2] %v1401_v39  ;;  %1405 = vst [vmem:[%s4651_s5 + $0x8] sm:$0x2] %v1404_v28  ;;  %v1407_v41 = vsel %vm3886_vm10, %v1357_v37, %v1406_v30  ;;  %v1413_v8 = vsel %vm3886_vm10, %v1371_v7, %v1412_v23  ;;  %1682 = vmatprep.subr.bf16.mxu0 %v3966_v13  ;;  %v4695_v3 = vld [vmem:[#allocation16_spill] sm:$0xff]  ;;  %v4696_v29 = vld [vmem:[#allocation17_spill] sm:$0xff] }
 0x379   :  { %1411 = vst [vmem:[%s4651_s5 + $0x10] sm:$0x2] %v1410_v35  ;;  %v1416_v24 = vsel %vm3886_vm10, %v1378_v38, %v1415_v31  ;;  %1408 = vst [vmem:[%s4651_s5 + $0xc] sm:$0x2] %v1407_v41  ;;  %1723 = vmatprep.subr.bf16.mxu1 %v3978_v9  ;;  %v4697_v23 = vld [vmem:[#allocation18_spill] sm:$0xff] }
 0x37a   :  { %1414 = vst [vmem:[%s4651_s5 + $0x14] sm:$0x2] %v1413_v8  ;;  %1417 = vst [vmem:[%s4651_s5 + $0x18] sm:$0x2] %v1416_v24  ;;  %v1419_v42 = vsel %vm3886_vm10, %v1385_v54, %v1418_v53 }
 0x37b   :  { %1420 = vst [vmem:[%s4651_s5 + $0x1c] sm:$0x2] %v1419_v42  ;;  %1683 = vmatpush1.bf16.msra.mxu0 %v3986_v14  ;;  %1724 = vmatpush1.bf16.msra.mxu1 %v3989_v26 }
 0x37c   :  { %1684 = vmatprep.subr.bf16.mxu0 %v3992_v44  ;;  %1725 = vmatprep.subr.bf16.mxu1 %v3995_v33 }
 0x37f   :  { %1685 = vmatpush1.bf16.msra.mxu0 %v3998_v19  ;;  %1726 = vmatpush1.bf16.msra.mxu1 %v4001_v15 }
 0x380   :  { %1686 = vmatprep.subr.bf16.mxu0 %v4004_v18  ;;  %1727 = vmatprep.subr.bf16.mxu1 %v4007_v0 }
 0x383   :  { %1687 = vmatpush1.bf16.msra.mxu0 %v4010_v46  ;;  %1728 = vmatpush1.bf16.msra.mxu1 %v4013_v25 }
 0x384   :  { %1688 = vmatprep.subr.bf16.mxu0 %v4016_v47  ;;  %1729 = vmatprep.subr.bf16.mxu1 %v4019_v49 }
 0x387   :  { %1689 = vmatpush1.bf16.msra.mxu0 %v4022_v50  ;;  %1730 = vmatpush1.bf16.msra.mxu1 %v4025_v51 }
 0x388   :  { %1690 = vmatprep.subr.bf16.mxu0 %v4028_v52  ;;  %1731 = vmatprep.subr.bf16.mxu1 %v4031_v55 }
 0x38b   :  { %1691 = vmatpush1.bf16.msra.mxu0 %v4034_v56  ;;  %1732 = vmatpush1.bf16.msra.mxu1 %v4037_v59 }
 0x38c   :  { %1926 = vmatprep.subr.bf16.mxu0 %v3848_v48  ;;  %1967 = vmatprep.subr.bf16.mxu1 %v4041_v60 }
 0x441   :  { %v1461_v61 = vpop.f32.mrb[28].mxu0  ;;  %v1502_v62 = vpop.f32.mrb[28].mxu1 }
 0x442   :  { %v1509_v2 = vadd.f32 %v1461_v61, %v4694_v1  ;;  %v1511_v6 = vadd.f32 %v1502_v62, %v4695_v3  ;;  %v1463_v34 = vpop.f32.mrb[29].mxu0  ;;  %v1504_v27 = vpop.f32.mrb[29].mxu1  ;;  %v2747_v3 = vsel %vm454_vm11, 1.0, %v4685_v63 }
 0x443   :  { %v1510_v30 = vadd.f32 %v1463_v34, %v4696_v29  ;;  %v1512_v31 = vadd.f32 %v1504_v27, %v4697_v23  ;;  %v1465_v36 = vpop.f32.mrb[30].mxu0  ;;  %v1506_v37 = vpop.f32.mrb[30].mxu1  ;;  %v478_v29 = vsub.f32 1.0, %v2747_v3 }
 0x444   :  { %v2805_v7 = vmul.f32 -1.442695, %v1509_v2  ;;  %v1466_v38 = vpop.f32.mrb[31].mxu0  ;;  %v1507_v39 = vpop.f32.mrb[31].mxu1 }
 0x445   :  { %v2806_v28 = vmul.f32 -1.442695, %v1510_v30  ;;  %v2807_v35 = vmul.f32 -1.442695, %v1512_v31  ;;  %v1673_v30 = vmul.f32 %v3860_v40, %v478_v29  ;;  %v1670_v38 = vmul.f32 %v3863_v43, %v478_v29 }
 0x446   :  { %2998 = vpow2.f32 %v2805_v7 }
 0x447   :  { %3000 = vpow2.f32 %v2806_v28 }
 0x448   :  { %3002 = vpow2.f32 %v2807_v35 }
 0x449   :  { %3004 = vtanh.f32 %v1511_v6 }
 0x450   :  { %v2999_v53 = vpop.eup %2998 }
 0x451   :  { %v3001_v54 = vpop.eup %3000  ;;  %v1516_v41 = vadd.f32 1.0, %v2999_v53 }
 0x452   :  { %v1522_v8 = vadd.f32 1.0, %v3001_v54  ;;  %v3003_v24 = vpop.eup %3002 }
 0x453   :  { %3006 = vrcp.f32 %v1516_v41  ;;  %v3005_v42 = vpop.eup %3004  ;;  %v1529_v2 = vadd.f32 1.0, %v3003_v24 }
 0x454   :  { %3008 = vrcp.f32 %v1522_v8 }
 0x455   :  { %3010 = vrcp.f32 %v1529_v2 }
 0x45d   :  { %v3007_v61 = vpop.eup %3006 }
 0x45e   :  { %v3009_v62 = vpop.eup %3008  ;;  %v1533_v1 = vmul.f32 %v3007_v61, %v3005_v42 }
 0x45f   :  { %v1532_v34 = vmul.f32 %v3009_v62, %v3860_v40  ;;  %v3011_v31 = vpop.eup %3010 }
 0x461   :  { %v1534_v27 = vadd.f32 %v1533_v1, %v1532_v34 }
 0x463   :  { %3012 = vtanh.f32 %v1534_v27  ;;  %v1672_v6 = vmul.f32 %v2747_v3, %v1534_v27 }
 0x465   :  { %v4052_v23 = vadd.f32 %v1673_v30, %v1672_v6 }
 0x46d   :  { %v3013_v36 = vpop.eup %3012 }
 0x46e   :  { %v1536_v37 = vmul.f32 %v3013_v36, %v3011_v31  ;;  %v1646_v36 = vld [vmem:[%s4651_s5] sm:$0x2] }
 0x470   :  { %v1537_v7 = vmul.f32 %v2747_v3, %v1536_v37 }
 0x472   :  { %v1538_v39 = vpack.c.bf16 %v1537_v7, %v1537_v7  ;;  %v4055_v28 = vadd.f32 %v1670_v38, %v1537_v7 }
 0x474   :  { %v1546_v35 = vrot.slane %v1538_v39, %v3596_v20  ;;  %v1675_v53 = vpack.c.bf16 %v4055_v28, %v4055_v28 }
 0x476   :  { %v1547_v54 = vcombine.high %v1546_v35, %v1546_v35  ;;  %v1554_v41 = vrot.slane %v1546_v35, %v3596_v20  ;;  %1709 = vmatmul.mubr.bf16.vlgmr.msra.gmra.mrb[32].mxu0 %v1675_v53  ;;  %1750 = vmatmul.mubr.bf16.vlgmr.msra.gmra.mrb[32].mxu1 %v1675_v53 }
 0x477   :  { %1927 = vmatpush1.bf16.msra.mxu0 %v3869_v32  ;;  %1968 = vmatpush1.bf16.msra.mxu1 %v3872_v17 }
 0x478   :  { %v1561_v40 = vrot.slane %v1547_v54, %v3596_v20  ;;  %v1562_v43 = vcombine.high %v1554_v41, %v1554_v41  ;;  %v1565_v8 = vunpack.i.h.s16 %v1554_v41  ;;  %v2808_v24 = vpack.i.b16 %v1554_v41, %v1554_v41  ;;  %1928 = vmatprep.subr.bf16.mxu0 %v3876_v11  ;;  %1969 = vmatprep.subr.bf16.mxu1 %v3879_v45 }
 0x479   :  { %1958 = vmatprep.mubr.bf16.mxu0 %v4682_v10  ;;  %1999 = vmatprep.mubr.bf16.mxu1 %v4682_v10 }
 0x47a   :  { %v1563_v42 = vcombine.high %v1561_v40, %v1561_v40  ;;  %v1567_v61 = vunpack.i.h.s16 %v1561_v40  ;;  %v1569_v62 = vunpack.i.h.s16 %v1562_v43  ;;  %v1573_v1 = vpack.i.b16 %v1565_v8, %v1565_v8  ;;  %v1658_v8 = vld [vmem:[%s4651_s5 + $0x10] sm:$0x2] }
 0x47b   :  { %v2809_v3 = vpack.i.b16 %v1561_v40, %v1561_v40  ;;  %v2810_v34 = vpack.i.b16 %v1562_v43, %v1562_v43  ;;  %v1586_v27 = vrot.slane %v2808_v24, %v3605_v12  ;;  %1929 = vmatpush1.bf16.msra.mxu0 %v3894_v57  ;;  %1970 = vmatpush1.bf16.msra.mxu1 %v3897_v58  ;;  %v1649_v40 = vld [vmem:[%s4651_s5 + $0x4] sm:$0x2]  ;;  %v1652_v43 = vld [vmem:[%s4651_s5 + $0x8] sm:$0x2] }
 0x47c   :  { %v1571_v29 = vunpack.i.h.s16 %v1563_v42  ;;  %v1575_v6 = vpack.i.b16 %v1567_v61, %v1567_v61  ;;  %v1577_v30 = vpack.i.b16 %v1569_v62, %v1569_v62  ;;  %v2811_v31 = vpack.i.b16 %v1563_v42, %v1563_v42  ;;  %1930 = vmatprep.subr.bf16.mxu0 %v3909_v4  ;;  %1971 = vmatprep.subr.bf16.mxu1 %v3912_v5  ;;  %v1655_v61 = vld [vmem:[%s4651_s5 + $0xc] sm:$0x2] }
 0x47d   :  { %v1593_v37 = vrot.slane %v1573_v1, %v3605_v12  ;;  %v1600_v7 = vrot.slane %v2809_v3, %v3605_v12  ;;  %v1614_v38 = vrot.slane %v2810_v34, %v3605_v12  ;;  %v1647_v39 = vsel %vm4070_vm13, %v1586_v27, %v1646_v36  ;;  %v1661_v1 = vld [vmem:[%s4651_s5 + $0x14] sm:$0x2]  ;;  %v1664_v3 = vld [vmem:[%s4651_s5 + $0x18] sm:$0x2] }
 0x47e   :  { %v1579_v35 = vpack.i.b16 %v1571_v29, %v1571_v29  ;;  %v1607_v53 = vrot.slane %v1575_v6, %v3605_v12  ;;  %v1621_v54 = vrot.slane %v1577_v30, %v3605_v12  ;;  %v1628_v41 = vrot.slane %v2811_v31, %v3605_v12  ;;  %1648 = vst [vmem:[%s4651_s5] sm:$0x2] %v1647_v39  ;;  %v1667_v30 = vld [vmem:[%s4651_s5 + $0x1c] sm:$0x2] }
 0x47f   :  { %v1650_v24 = vsel %vm4070_vm13, %v1593_v37, %v1649_v40  ;;  %v1653_v42 = vsel %vm4070_vm13, %v1600_v7, %v1652_v43  ;;  %v1659_v62 = vsel %vm4070_vm13, %v1614_v38, %v1658_v8  ;;  %1931 = vmatpush1.bf16.msra.mxu0 %v3944_v22  ;;  %1972 = vmatpush1.bf16.msra.mxu1 %v3947_v16  ;;  %v4700_v37 = vld [vmem:[#allocation19_spill] sm:$0xff]  ;;  %v4701_v38 = vld [vmem:[#allocation20_spill] sm:$0xff]  ;;  %v4703_v40 = vld [vmem:[#allocation22_spill] sm:$0xff] }
 0x480   :  { %v1635_v34 = vrot.slane %v1579_v35, %v3605_v12  ;;  %1651 = vst [vmem:[%s4651_s5 + $0x4] sm:$0x2] %v1650_v24  ;;  %1654 = vst [vmem:[%s4651_s5 + $0x8] sm:$0x2] %v1653_v42  ;;  %v1656_v27 = vsel %vm4070_vm13, %v1607_v53, %v1655_v61  ;;  %v1662_v29 = vsel %vm4070_vm13, %v1621_v54, %v1661_v1  ;;  %1932 = vmatprep.subr.bf16.mxu0 %v3966_v13  ;;  %v4702_v54 = vld [vmem:[#allocation21_spill] sm:$0xff] }
 0x481   :  { %1660 = vst [vmem:[%s4651_s5 + $0x10] sm:$0x2] %v1659_v62  ;;  %v1665_v6 = vsel %vm4070_vm13, %v1628_v41, %v1664_v3  ;;  %1657 = vst [vmem:[%s4651_s5 + $0xc] sm:$0x2] %v1656_v27  ;;  %1973 = vmatprep.subr.bf16.mxu1 %v3978_v9 }
 0x482   :  { %1663 = vst [vmem:[%s4651_s5 + $0x14] sm:$0x2] %v1662_v29  ;;  %1666 = vst [vmem:[%s4651_s5 + $0x18] sm:$0x2] %v1665_v6  ;;  %v1668_v31 = vsel %vm4070_vm13, %v1635_v34, %v1667_v30 }
 0x483   :  { %1669 = vst [vmem:[%s4651_s5 + $0x1c] sm:$0x2] %v1668_v31  ;;  %1933 = vmatpush1.bf16.msra.mxu0 %v3986_v14  ;;  %1974 = vmatpush1.bf16.msra.mxu1 %v3989_v26 }
 0x484   :  { %1934 = vmatprep.subr.bf16.mxu0 %v3992_v44  ;;  %1975 = vmatprep.subr.bf16.mxu1 %v3995_v33 }
 0x487   :  { %1935 = vmatpush1.bf16.msra.mxu0 %v3998_v19  ;;  %1976 = vmatpush1.bf16.msra.mxu1 %v4001_v15 }
 0x488   :  { %1936 = vmatprep.subr.bf16.mxu0 %v4004_v18  ;;  %1977 = vmatprep.subr.bf16.mxu1 %v4007_v0 }
 0x48b   :  { %1937 = vmatpush1.bf16.msra.mxu0 %v4010_v46  ;;  %1978 = vmatpush1.bf16.msra.mxu1 %v4013_v25 }
 0x48c   :  { %1938 = vmatprep.subr.bf16.mxu0 %v4016_v47  ;;  %1979 = vmatprep.subr.bf16.mxu1 %v4019_v49 }
 0x48f   :  { %1939 = vmatpush1.bf16.msra.mxu0 %v4022_v50  ;;  %1980 = vmatpush1.bf16.msra.mxu1 %v4025_v51 }
 0x490   :  { %1940 = vmatprep.subr.bf16.mxu0 %v4028_v52  ;;  %1981 = vmatprep.subr.bf16.mxu1 %v4031_v55 }
 0x493   :  { %1941 = vmatpush1.bf16.msra.mxu0 %v4034_v56  ;;  %1982 = vmatpush1.bf16.msra.mxu1 %v4037_v59 }
 0x494   :  { %2175 = vmatprep.subr.bf16.mxu0 %v3848_v48  ;;  %2216 = vmatprep.subr.bf16.mxu1 %v4041_v60 }
 0x549   :  { %v1710_v2 = vpop.f32.mrb[32].mxu0  ;;  %v1751_v36 = vpop.f32.mrb[32].mxu1 }
 0x54a   :  { %v1758_v7 = vadd.f32 %v1710_v2, %v4700_v37  ;;  %v1760_v39 = vadd.f32 %v1751_v36, %v4701_v38  ;;  %v1712_v35 = vpop.f32.mrb[33].mxu0  ;;  %v1753_v53 = vpop.f32.mrb[33].mxu1  ;;  %v2748_v38 = vsel %vm455_vm14, 1.0, %v4685_v63 }
 0x54b   :  { %v1759_v41 = vadd.f32 %v1712_v35, %v4702_v54  ;;  %v1761_v43 = vadd.f32 %v1753_v53, %v4703_v40  ;;  %v1714_v8 = vpop.f32.mrb[34].mxu0  ;;  %v1755_v24 = vpop.f32.mrb[34].mxu1  ;;  %v479_v54 = vsub.f32 1.0, %v2748_v38 }
 0x54c   :  { %v2812_v42 = vmul.f32 -1.442695, %v1758_v7  ;;  %v1715_v61 = vpop.f32.mrb[35].mxu0  ;;  %v1756_v62 = vpop.f32.mrb[35].mxu1 }
 0x54d   :  { %v2813_v1 = vmul.f32 -1.442695, %v1759_v41  ;;  %v2814_v3 = vmul.f32 -1.442695, %v1761_v43  ;;  %v1923_v41 = vmul.f32 %v4052_v23, %v479_v54  ;;  %v1920_v61 = vmul.f32 %v4055_v28, %v479_v54 }
 0x54e   :  { %3014 = vpow2.f32 %v2812_v42 }
 0x54f   :  { %3016 = vpow2.f32 %v2813_v1 }
 0x550   :  { %3018 = vpow2.f32 %v2814_v3 }
 0x551   :  { %3020 = vtanh.f32 %v1760_v39 }
 0x558   :  { %v3015_v34 = vpop.eup %3014 }
 0x559   :  { %v3017_v27 = vpop.eup %3016  ;;  %v1765_v29 = vadd.f32 1.0, %v3015_v34 }
 0x55a   :  { %v1771_v6 = vadd.f32 1.0, %v3017_v27  ;;  %v3019_v30 = vpop.eup %3018 }
 0x55b   :  { %3022 = vrcp.f32 %v1765_v29  ;;  %v3021_v31 = vpop.eup %3020  ;;  %v1778_v7 = vadd.f32 1.0, %v3019_v30 }
 0x55c   :  { %3024 = vrcp.f32 %v1771_v6 }
 0x55d   :  { %3026 = vrcp.f32 %v1778_v7 }
 0x565   :  { %v3023_v2 = vpop.eup %3022 }
 0x566   :  { %v3025_v36 = vpop.eup %3024  ;;  %v1782_v37 = vmul.f32 %v3023_v2, %v3021_v31 }
 0x567   :  { %v1781_v35 = vmul.f32 %v3025_v36, %v4052_v23  ;;  %v3027_v43 = vpop.eup %3026 }
 0x569   :  { %v1783_v53 = vadd.f32 %v1782_v37, %v1781_v35 }
 0x56b   :  { %3028 = vtanh.f32 %v1783_v53  ;;  %v1922_v39 = vmul.f32 %v2748_v38, %v1783_v53 }
 0x56d   :  { %v4182_v40 = vadd.f32 %v1923_v41, %v1922_v39 }
 0x575   :  { %v3029_v8 = vpop.eup %3028 }
 0x576   :  { %v1785_v24 = vmul.f32 %v3029_v8, %v3027_v43 }
 0x578   :  { %v1786_v42 = vmul.f32 %v2748_v38, %v1785_v24  ;;  %v1896_v38 = vld [vmem:[%s4651_s5] sm:$0x4]  ;;  %v1899_v24 = vld [vmem:[%s4651_s5 + $0x4] sm:$0x4] }
 0x57a   :  { %v1787_v62 = vpack.c.bf16 %v1786_v42, %v1786_v42  ;;  %v4185_v1 = vadd.f32 %v1920_v61, %v1786_v42  ;;  %v1902_v42 = vld [vmem:[%s4651_s5 + $0x8] sm:$0x4]  ;;  %v1908_v61 = vld [vmem:[%s4651_s5 + $0x10] sm:$0x4] }
 0x57c   :  { %v1795_v3 = vrot.slane %v1787_v62, %v3596_v20  ;;  %v1925_v34 = vpack.c.bf16 %v4185_v1, %v4185_v1 }
 0x57e   :  { %v1796_v27 = vcombine.high %v1795_v3, %v1795_v3  ;;  %v1803_v29 = vrot.slane %v1795_v3, %v3596_v20  ;;  %1959 = vmatmul.mubr.bf16.vlgmr.msra.gmra.mrb[36].mxu0 %v1925_v34  ;;  %2000 = vmatmul.mubr.bf16.vlgmr.msra.gmra.mrb[36].mxu1 %v1925_v34 }
 0x57f   :  { %2176 = vmatpush1.bf16.msra.mxu0 %v3869_v32  ;;  %2217 = vmatpush1.bf16.msra.mxu1 %v3872_v17 }
 0x580   :  { %v1810_v23 = vrot.slane %v1796_v27, %v3596_v20  ;;  %v1811_v28 = vcombine.high %v1803_v29, %v1803_v29  ;;  %v1814_v6 = vunpack.i.h.s16 %v1803_v29  ;;  %v2815_v30 = vpack.i.b16 %v1803_v29, %v1803_v29  ;;  %2177 = vmatprep.subr.bf16.mxu0 %v3876_v11  ;;  %2218 = vmatprep.subr.bf16.mxu1 %v3879_v45  ;;  %v1905_v29 = vld [vmem:[%s4651_s5 + $0xc] sm:$0x4] }
 0x581   :  { %2207 = vmatprep.mubr.bf16.mxu0 %v4682_v10  ;;  %2248 = vmatprep.mubr.bf16.mxu1 %v4682_v10 }
 0x582   :  { %v1812_v31 = vcombine.high %v1810_v23, %v1810_v23  ;;  %v1816_v2 = vunpack.i.h.s16 %v1810_v23  ;;  %v1818_v36 = vunpack.i.h.s16 %v1811_v28  ;;  %v1822_v37 = vpack.i.b16 %v1814_v6, %v1814_v6 }
 0x583   :  { %v2816_v35 = vpack.i.b16 %v1810_v23, %v1810_v23  ;;  %v2817_v53 = vpack.i.b16 %v1811_v28, %v1811_v28  ;;  %v1835_v54 = vrot.slane %v2815_v30, %v3605_v12  ;;  %2178 = vmatpush1.bf16.msra.mxu0 %v3894_v57  ;;  %2219 = vmatpush1.bf16.msra.mxu1 %v3897_v58  ;;  %v1911_v23 = vld [vmem:[%s4651_s5 + $0x14] sm:$0x4]  ;;  %v1914_v28 = vld [vmem:[%s4651_s5 + $0x18] sm:$0x4] }
 0x584   :  { %v1820_v39 = vunpack.i.h.s16 %v1812_v31  ;;  %v1824_v41 = vpack.i.b16 %v1816_v2, %v1816_v2  ;;  %v1826_v43 = vpack.i.b16 %v1818_v36, %v1818_v36  ;;  %v2818_v8 = vpack.i.b16 %v1812_v31, %v1812_v31  ;;  %2179 = vmatprep.subr.bf16.mxu0 %v3909_v4  ;;  %2220 = vmatprep.subr.bf16.mxu1 %v3912_v5 }
 0x585   :  { %v1842_v62 = vrot.slane %v1822_v37, %v3605_v12  ;;  %v1849_v3 = vrot.slane %v2816_v35, %v3605_v12  ;;  %v1863_v34 = vrot.slane %v2817_v53, %v3605_v12  ;;  %v1897_v27 = vsel %vm4200_vm1, %v1835_v54, %v1896_v38  ;;  %v1917_v35 = vld [vmem:[%s4651_s5 + $0x1c] sm:$0x4] }
 0x586   :  { %v1828_v6 = vpack.i.b16 %v1820_v39, %v1820_v39  ;;  %v1856_v30 = vrot.slane %v1824_v41, %v3605_v12  ;;  %v1870_v31 = vrot.slane %v1826_v43, %v3605_v12  ;;  %v1877_v2 = vrot.slane %v2818_v8, %v3605_v12  ;;  %1898 = vst [vmem:[%s4651_s5] sm:$0x4] %v1897_v27  ;;  %v4708_v27 = vld [vmem:[#allocation25_spill] sm:$0xff] }
 0x587   :  { %v1900_v36 = vsel %vm4200_vm1, %v1842_v62, %v1899_v24  ;;  %v1903_v37 = vsel %vm4200_vm1, %v1849_v3, %v1902_v42  ;;  %v1909_v38 = vsel %vm4200_vm1, %v1863_v34, %v1908_v61  ;;  %2180 = vmatpush1.bf16.msra.mxu0 %v3944_v22  ;;  %2221 = vmatpush1.bf16.msra.mxu1 %v3947_v16  ;;  %v4706_v24 = vld [vmem:[#allocation23_spill] sm:$0xff]  ;;  %v4707_v61 = vld [vmem:[#allocation24_spill] sm:$0xff] }
 0x588   :  { %v1884_v53 = vrot.slane %v1828_v6, %v3605_v12  ;;  %1901 = vst [vmem:[%s4651_s5 + $0x4] sm:$0x4] %v1900_v36  ;;  %1904 = vst [vmem:[%s4651_s5 + $0x8] sm:$0x4] %v1903_v37  ;;  %v1906_v54 = vsel %vm4200_vm1, %v1856_v30, %v1905_v29  ;;  %v1912_v39 = vsel %vm4200_vm1, %v1870_v31, %v1911_v23  ;;  %2181 = vmatprep.subr.bf16.mxu0 %v3966_v13  ;;  %v4709_v23 = vld [vmem:[#allocation26_spill] sm:$0xff] }
 0x589   :  { %1910 = vst [vmem:[%s4651_s5 + $0x10] sm:$0x4] %v1909_v38  ;;  %v1915_v41 = vsel %vm4200_vm1, %v1877_v2, %v1914_v28  ;;  %1907 = vst [vmem:[%s4651_s5 + $0xc] sm:$0x4] %v1906_v54  ;;  %2222 = vmatprep.subr.bf16.mxu1 %v3978_v9 }
 0x58a   :  { %1913 = vst [vmem:[%s4651_s5 + $0x14] sm:$0x4] %v1912_v39  ;;  %1916 = vst [vmem:[%s4651_s5 + $0x18] sm:$0x4] %v1915_v41  ;;  %v1918_v43 = vsel %vm4200_vm1, %v1884_v53, %v1917_v35 }
 0x58b   :  { %1919 = vst [vmem:[%s4651_s5 + $0x1c] sm:$0x4] %v1918_v43  ;;  %2182 = vmatpush1.bf16.msra.mxu0 %v3986_v14  ;;  %2223 = vmatpush1.bf16.msra.mxu1 %v3989_v26 }
 0x58c   :  { %2183 = vmatprep.subr.bf16.mxu0 %v3992_v44  ;;  %2224 = vmatprep.subr.bf16.mxu1 %v3995_v33 }
 0x58f   :  { %2184 = vmatpush1.bf16.msra.mxu0 %v3998_v19  ;;  %2225 = vmatpush1.bf16.msra.mxu1 %v4001_v15 }
 0x590   :  { %2185 = vmatprep.subr.bf16.mxu0 %v4004_v18  ;;  %2226 = vmatprep.subr.bf16.mxu1 %v4007_v0 }
 0x593   :  { %2186 = vmatpush1.bf16.msra.mxu0 %v4010_v46  ;;  %2227 = vmatpush1.bf16.msra.mxu1 %v4013_v25 }
 0x594   :  { %2187 = vmatprep.subr.bf16.mxu0 %v4016_v47  ;;  %2228 = vmatprep.subr.bf16.mxu1 %v4019_v49 }
 0x597   :  { %2188 = vmatpush1.bf16.msra.mxu0 %v4022_v50  ;;  %2229 = vmatpush1.bf16.msra.mxu1 %v4025_v51 }
 0x598   :  { %2189 = vmatprep.subr.bf16.mxu0 %v4028_v52  ;;  %2230 = vmatprep.subr.bf16.mxu1 %v4031_v55 }
 0x59b   :  { %2190 = vmatpush1.bf16.msra.mxu0 %v4034_v56  ;;  %2231 = vmatpush1.bf16.msra.mxu1 %v4037_v59 }
 0x59c   :  { %2425 = vmatprep.subr.bf16.mxu0 %v3848_v48  ;;  %2466 = vmatprep.subr.bf16.mxu1 %v4041_v60 }
 0x651   :  { %v1960_v7 = vpop.f32.mrb[36].mxu0  ;;  %v2001_v8 = vpop.f32.mrb[36].mxu1 }
 0x652   :  { %v2008_v42 = vadd.f32 %v1960_v7, %v4706_v24  ;;  %v2010_v62 = vadd.f32 %v2001_v8, %v4707_v61  ;;  %v1962_v3 = vpop.f32.mrb[37].mxu0  ;;  %v2003_v34 = vpop.f32.mrb[37].mxu1  ;;  %v2749_v24 = vsel %vm456_vm2, 1.0, %v4685_v63 }
 0x653   :  { %v2009_v29 = vadd.f32 %v1962_v3, %v4708_v27  ;;  %v2011_v28 = vadd.f32 %v2003_v34, %v4709_v23  ;;  %v1964_v6 = vpop.f32.mrb[38].mxu0  ;;  %v2005_v30 = vpop.f32.mrb[38].mxu1  ;;  %v480_v3 = vsub.f32 1.0, %v2749_v24 }
 0x654   :  { %v2819_v31 = vmul.f32 -1.442695, %v2008_v42  ;;  %v1965_v2 = vpop.f32.mrb[39].mxu0  ;;  %v2006_v36 = vpop.f32.mrb[39].mxu1 }
 0x655   :  { %v2820_v48 = vmul.f32 -1.442695, %v2009_v29  ;;  %v2821_v60 = vmul.f32 -1.442695, %v2011_v28  ;;  %v2172_v34 = vmul.f32 %v4182_v40, %v480_v3  ;;  %v2169_v30 = vmul.f32 %v4185_v1, %v480_v3 }
 0x656   :  { %3030 = vpow2.f32 %v2819_v31 }
 0x657   :  { %3032 = vpow2.f32 %v2820_v48 }
 0x658   :  { %3034 = vpow2.f32 %v2821_v60 }
 0x659   :  { %3036 = vtanh.f32 %v2010_v62 }
 0x660   :  { %v3031_v37 = vpop.eup %3030 }
 0x661   :  { %v3033_v38 = vpop.eup %3032  ;;  %v2015_v35 = vadd.f32 1.0, %v3031_v37 }
 0x662   :  { %v2021_v53 = vadd.f32 1.0, %v3033_v38  ;;  %v3035_v54 = vpop.eup %3034 }
 0x663   :  { %3038 = vrcp.f32 %v2015_v35  ;;  %v3037_v39 = vpop.eup %3036  ;;  %v2028_v8 = vadd.f32 1.0, %v3035_v54 }
 0x664   :  { %3040 = vrcp.f32 %v2021_v53 }
 0x665   :  { %3042 = vrcp.f32 %v2028_v8 }
 0x66d   :  { %v3039_v41 = vpop.eup %3038 }
 0x66e   :  { %v3041_v43 = vpop.eup %3040  ;;  %v2032_v7 = vmul.f32 %v3039_v41, %v3037_v39 }
 0x66f   :  { %v2031_v42 = vmul.f32 %v3041_v43, %v4182_v40  ;;  %v3043_v29 = vpop.eup %3042 }
 0x671   :  { %v2033_v61 = vadd.f32 %v2032_v7, %v2031_v42 }
 0x673   :  { %3044 = vtanh.f32 %v2033_v61  ;;  %v2171_v62 = vmul.f32 %v2749_v24, %v2033_v61 }
 0x675   :  { %v4312_v27 = vadd.f32 %v2172_v34, %v2171_v62 }
 0x67d   :  { %v3045_v23 = vpop.eup %3044 }
 0x67e   :  { %v2035_v28 = vmul.f32 %v3045_v23, %v3043_v29  ;;  %v2157_v23 = vld [vmem:[%s4651_s5 + $0x10] sm:$0x4] }
 0x680   :  { %v2036_v6 = vmul.f32 %v2749_v24, %v2035_v28  ;;  %v2145_v24 = vld [vmem:[%s4651_s5] sm:$0x4] }
 0x682   :  { %v2037_v31 = vpack.c.bf16 %v2036_v6, %v2036_v6  ;;  %v4315_v2 = vadd.f32 %v2169_v30, %v2036_v6  ;;  %v2154_v30 = vld [vmem:[%s4651_s5 + $0xc] sm:$0x4] }
 0x684   :  { %v2045_v36 = vrot.slane %v2037_v31, %v3596_v20  ;;  %v2174_v48 = vpack.c.bf16 %v4315_v2, %v4315_v2 }
 0x686   :  { %v2046_v60 = vcombine.high %v2045_v36, %v2045_v36  ;;  %v2053_v37 = vrot.slane %v2045_v36, %v3596_v20  ;;  %2208 = vmatmul.mubr.bf16.vlgmr.msra.gmra.mrb[40].mxu0 %v2174_v48  ;;  %2249 = vmatmul.mubr.bf16.vlgmr.msra.gmra.mrb[40].mxu1 %v2174_v48  ;;  %v2160_v36 = vld [vmem:[%s4651_s5 + $0x14] sm:$0x4]  ;;  %v2163_v48 = vld [vmem:[%s4651_s5 + $0x18] sm:$0x4] }
 0x687   :  { %2426 = vmatpush1.bf16.msra.mxu0 %v3869_v32  ;;  %2467 = vmatpush1.bf16.msra.mxu1 %v3872_v17 }
 0x688   :  { %v2060_v40 = vrot.slane %v2046_v60, %v3596_v20  ;;  %v2061_v1 = vcombine.high %v2053_v37, %v2053_v37  ;;  %v2064_v38 = vunpack.i.h.s16 %v2053_v37  ;;  %v2822_v35 = vpack.i.b16 %v2053_v37, %v2053_v37  ;;  %2427 = vmatprep.subr.bf16.mxu0 %v3876_v11  ;;  %2468 = vmatprep.subr.bf16.mxu1 %v3879_v45 }
 0x689   :  { %2457 = vmatprep.mubr.bf16.mxu0 %v4682_v10  ;;  %2498 = vmatprep.mubr.bf16.mxu1 %v4682_v10 }
 0x68a   :  { %v2062_v53 = vcombine.high %v2060_v40, %v2060_v40  ;;  %v2066_v54 = vunpack.i.h.s16 %v2060_v40  ;;  %v2068_v39 = vunpack.i.h.s16 %v2061_v1  ;;  %v2072_v41 = vpack.i.b16 %v2064_v38, %v2064_v38 }
 0x68b   :  { %v2823_v17 = vpack.i.b16 %v2060_v40, %v2060_v40  ;;  %v2824_v43 = vpack.i.b16 %v2061_v1, %v2061_v1  ;;  %v2085_v11 = vrot.slane %v2822_v35, %v3605_v12  ;;  %2428 = vmatpush1.bf16.msra.mxu0 %v3894_v57  ;;  %2469 = vmatpush1.bf16.msra.mxu1 %v3897_v58  ;;  %v2166_v40 = vld [vmem:[%s4651_s5 + $0x1c] sm:$0x4] }
 0x68c   :  { %v2070_v45 = vunpack.i.h.s16 %v2062_v53  ;;  %v2074_v10 = vpack.i.b16 %v2066_v54, %v2066_v54  ;;  %v2076_v7 = vpack.i.b16 %v2068_v39, %v2068_v39  ;;  %v2825_v8 = vpack.i.b16 %v2062_v53, %v2062_v53  ;;  %2429 = vmatprep.subr.bf16.mxu0 %v3909_v4  ;;  %2470 = vmatprep.subr.bf16.mxu1 %v3912_v5  ;;  %v2148_v4 = vld [vmem:[%s4651_s5 + $0x4] sm:$0x4]  ;;  %v2151_v5 = vld [vmem:[%s4651_s5 + $0x8] sm:$0x4] }
 0x68d   :  { %v2092_v42 = vrot.slane %v2072_v41, %v3605_v12  ;;  %v2099_v61 = vrot.slane %v2823_v17, %v3605_v12  ;;  %v2113_v57 = vrot.slane %v2824_v43, %v3605_v12  ;;  %v2146_v58 = vsel %vm4330_vm4, %v2085_v11, %v2145_v24 }
 0x68e   :  { %v2078_v3 = vpack.i.b16 %v2070_v45, %v2070_v45  ;;  %v2106_v62 = vrot.slane %v2074_v10, %v3605_v12  ;;  %v2120_v34 = vrot.slane %v2076_v7, %v3605_v12  ;;  %v2127_v29 = vrot.slane %v2825_v8, %v3605_v12  ;;  %2147 = vst [vmem:[%s4651_s5] sm:$0x4] %v2146_v58 }
 0x68f   :  { %v2149_v28 = vsel %vm4330_vm4, %v2092_v42, %v2148_v4  ;;  %v2152_v6 = vsel %vm4330_vm4, %v2099_v61, %v2151_v5  ;;  %v2158_v31 = vsel %vm4330_vm4, %v2113_v57, %v2157_v23  ;;  %2430 = vmatpush1.bf16.msra.mxu0 %v3944_v22  ;;  %2471 = vmatpush1.bf16.msra.mxu1 %v3947_v16  ;;  %v2750_v11 = vsel %vm457_vm5, 1.0, %v4685_v63 }
 0x690   :  { %v2134_v60 = vrot.slane %v2078_v3, %v3605_v12  ;;  %2150 = vst [vmem:[%s4651_s5 + $0x4] sm:$0x4] %v2149_v28  ;;  %2153 = vst [vmem:[%s4651_s5 + $0x8] sm:$0x4] %v2152_v6  ;;  %v2155_v37 = vsel %vm4330_vm4, %v2106_v62, %v2154_v30  ;;  %v2161_v22 = vsel %vm4330_vm4, %v2120_v34, %v2160_v36  ;;  %2431 = vmatprep.subr.bf16.mxu0 %v3966_v13 }
 0x691   :  { %2159 = vst [vmem:[%s4651_s5 + $0x10] sm:$0x4] %v2158_v31  ;;  %v2164_v16 = vsel %vm4330_vm4, %v2127_v29, %v2163_v48  ;;  %2156 = vst [vmem:[%s4651_s5 + $0xc] sm:$0x4] %v2155_v37  ;;  %2472 = vmatprep.subr.bf16.mxu1 %v3978_v9  ;;  %v481_v7 = vsub.f32 1.0, %v2750_v11  ;;  %v4441_v8 = vsel %vm458_vm6, 1.0, %v4685_v63 }
 0x692   :  { %2162 = vst [vmem:[%s4651_s5 + $0x14] sm:$0x4] %v2161_v22  ;;  %2165 = vst [vmem:[%s4651_s5 + $0x18] sm:$0x4] %v2164_v16  ;;  %v2167_v13 = vsel %vm4330_vm4, %v2134_v60, %v2166_v40  ;;  %v482_v61 = vsub.f32 1.0, %v4441_v8 }
 0x693   :  { %2168 = vst [vmem:[%s4651_s5 + $0x1c] sm:$0x4] %v2167_v13  ;;  %2432 = vmatpush1.bf16.msra.mxu0 %v3986_v14  ;;  %2473 = vmatpush1.bf16.msra.mxu1 %v3989_v26  ;;  %v4712_v26 = vld [vmem:[#allocation27_spill] sm:$0xff]  ;;  %v2422_v42 = vmul.f32 %v4312_v27, %v481_v7  ;;  %v2419_v29 = vmul.f32 %v4315_v2, %v481_v7  ;;  %v2395_v40 = vld [vmem:[%s4651_s5] sm:$0x8] }
 0x694   :  { %2433 = vmatprep.subr.bf16.mxu0 %v3992_v44  ;;  %2474 = vmatprep.subr.bf16.mxu1 %v3995_v33  ;;  %v4713_v33 = vld [vmem:[#allocation28_spill] sm:$0xff] }
 0x697   :  { %2434 = vmatpush1.bf16.msra.mxu0 %v3998_v19  ;;  %2475 = vmatpush1.bf16.msra.mxu1 %v4001_v15 }
 0x698   :  { %2435 = vmatprep.subr.bf16.mxu0 %v4004_v18  ;;  %2476 = vmatprep.subr.bf16.mxu1 %v4007_v0  ;;  %v4714_v0 = vld [vmem:[#allocation29_spill] sm:$0xff] }
 0x69b   :  { %2436 = vmatpush1.bf16.msra.mxu0 %v4010_v46  ;;  %2477 = vmatpush1.bf16.msra.mxu1 %v4013_v25  ;;  %v4715_v25 = vld [vmem:[#allocation30_spill] sm:$0xff] }
 0x69c   :  { %2437 = vmatprep.subr.bf16.mxu0 %v4016_v47  ;;  %2478 = vmatprep.subr.bf16.mxu1 %v4019_v49 }
 0x69f   :  { %2438 = vmatpush1.bf16.msra.mxu0 %v4022_v50  ;;  %2479 = vmatpush1.bf16.msra.mxu1 %v4025_v51 }
 0x6a0   :  { %2439 = vmatprep.subr.bf16.mxu0 %v4028_v52  ;;  %2480 = vmatprep.subr.bf16.mxu1 %v4031_v55 }
 0x6a3   :  { %2440 = vmatpush1.bf16.msra.mxu0 %v4034_v56  ;;  %2481 = vmatpush1.bf16.msra.mxu1 %v4037_v59 }
 0x759   :  { %v2209_v9 = vpop.f32.mrb[40].mxu0  ;;  %v2250_v14 = vpop.f32.mrb[40].mxu1 }
 0x75a   :  { %v2257_v44 = vadd.f32 %v2209_v9, %v4712_v26  ;;  %v2259_v19 = vadd.f32 %v2250_v14, %v4713_v33  ;;  %v2211_v15 = vpop.f32.mrb[41].mxu0  ;;  %v2252_v18 = vpop.f32.mrb[41].mxu1 }
 0x75b   :  { %v2258_v46 = vadd.f32 %v2211_v15, %v4714_v0  ;;  %v2260_v47 = vadd.f32 %v2252_v18, %v4715_v25  ;;  %v2213_v49 = vpop.f32.mrb[42].mxu0  ;;  %v2254_v50 = vpop.f32.mrb[42].mxu1  ;;  %v2398_v15 = vld [vmem:[%s4651_s5 + $0x4] sm:$0x8]  ;;  %v2401_v18 = vld [vmem:[%s4651_s5 + $0x8] sm:$0x8] }
 0x75c   :  { %v2826_v51 = vmul.f32 -1.442695, %v2257_v44  ;;  %v2214_v52 = vpop.f32.mrb[43].mxu0  ;;  %v2255_v55 = vpop.f32.mrb[43].mxu1  ;;  %v2407_v0 = vld [vmem:[%s4651_s5 + $0x10] sm:$0x8] }
 0x75d   :  { %v2827_v56 = vmul.f32 -1.442695, %v2258_v46  ;;  %v2828_v59 = vmul.f32 -1.442695, %v2260_v47  ;;  %v2404_v50 = vld [vmem:[%s4651_s5 + $0xc] sm:$0x8] }
 0x75e   :  { %3046 = vpow2.f32 %v2826_v51  ;;  %v2410_v51 = vld [vmem:[%s4651_s5 + $0x14] sm:$0x8]  ;;  %v2413_v52 = vld [vmem:[%s4651_s5 + $0x18] sm:$0x8] }
 0x75f   :  { %3048 = vpow2.f32 %v2827_v56 }
 0x760   :  { %3050 = vpow2.f32 %v2828_v59 }
 0x761   :  { %3052 = vtanh.f32 %v2259_v19 }
 0x768   :  { %v3047_v1 = vpop.eup %3046 }
 0x769   :  { %v3049_v38 = vpop.eup %3048  ;;  %v2264_v35 = vadd.f32 1.0, %v3047_v1 }
 0x76a   :  { %v2270_v53 = vadd.f32 1.0, %v3049_v38  ;;  %v3051_v54 = vpop.eup %3050 }
 0x76b   :  { %3054 = vrcp.f32 %v2264_v35  ;;  %v3053_v39 = vpop.eup %3052  ;;  %v2277_v43 = vadd.f32 1.0, %v3051_v54  ;;  %v2416_v54 = vld [vmem:[%s4651_s5 + $0x1c] sm:$0x8] }
 0x76c   :  { %3056 = vrcp.f32 %v2270_v53 }
 0x76d   :  { %3058 = vrcp.f32 %v2277_v43 }
 0x775   :  { %v3055_v41 = vpop.eup %3054 }
 0x776   :  { %v3057_v32 = vpop.eup %3056  ;;  %v2281_v17 = vmul.f32 %v3055_v41, %v3053_v39 }
 0x777   :  { %v2280_v45 = vmul.f32 %v3057_v32, %v4312_v27  ;;  %v3059_v21 = vpop.eup %3058 }
 0x779   :  { %v2282_v10 = vadd.f32 %v2281_v17, %v2280_v45 }
 0x77b   :  { %3060 = vtanh.f32 %v2282_v10  ;;  %v2421_v24 = vmul.f32 %v2750_v11, %v2282_v10  ;;  %v4718_v10 = vld [vmem:[#allocation31_spill] sm:$0xff] }
 0x77d   :  { %v4445_v57 = vadd.f32 %v2422_v42, %v2421_v24  ;;  %v4719_v24 = vld [vmem:[#allocation32_spill] sm:$0xff] }
 0x77f   :  { %v4448_v58 = vmul.f32 %v4445_v57, %v482_v61 }
 0x785   :  { %v3061_v3 = vpop.eup %3060 }
 0x786   :  { %v2284_v62 = vmul.f32 %v3061_v3, %v3059_v21  ;;  %v4720_v3 = vld [vmem:[#allocation33_spill] sm:$0xff] }
 0x788   :  { %v2285_v34 = vmul.f32 %v2750_v11, %v2284_v62 }
 0x78a   :  { %v2286_v4 = vpack.c.bf16 %v2285_v34, %v2285_v34  ;;  %v2420_v63 = vadd.f32 %v2419_v29, %v2285_v34  ;;  %v4721_v34 = vld [vmem:[#allocation34_spill] sm:$0xff] }
 0x78c   :  { %v2294_v5 = vrot.slane %v2286_v4, %v3596_v20  ;;  %v2424_v23 = vpack.c.bf16 %v2420_v63, %v2420_v63  ;;  %v4452_v28 = vmul.f32 %v2420_v63, %v482_v61 }
 0x78e   :  { %v2295_v27 = vcombine.high %v2294_v5, %v2294_v5  ;;  %v2302_v6 = vrot.slane %v2294_v5, %v3596_v20  ;;  %2458 = vmatmul.mubr.bf16.vlgmr.msra.gmra.mrb[44].mxu0 %v2424_v23  ;;  %2499 = vmatmul.mubr.bf16.vlgmr.msra.gmra.mrb[44].mxu1 %v2424_v23 }
 0x790   :  { %v2309_v30 = vrot.slane %v2295_v27, %v3596_v20  ;;  %v2310_v31 = vcombine.high %v2302_v6, %v2302_v6  ;;  %v2313_v36 = vunpack.i.h.s16 %v2302_v6  ;;  %v2829_v48 = vpack.i.b16 %v2302_v6, %v2302_v6 }
 0x792   :  { %v2311_v2 = vcombine.high %v2309_v30, %v2309_v30  ;;  %v2315_v60 = vunpack.i.h.s16 %v2309_v30  ;;  %v2317_v37 = vunpack.i.h.s16 %v2310_v31  ;;  %v2321_v22 = vpack.i.b16 %v2313_v36, %v2313_v36 }
 0x793   :  { %v2830_v13 = vpack.i.b16 %v2309_v30, %v2309_v30  ;;  %v2831_v9 = vpack.i.b16 %v2310_v31, %v2310_v31  ;;  %v2334_v14 = vrot.slane %v2829_v48, %v3605_v12 }
 0x794   :  { %v2319_v26 = vunpack.i.h.s16 %v2311_v2  ;;  %v2323_v44 = vpack.i.b16 %v2315_v60, %v2315_v60  ;;  %v2325_v33 = vpack.i.b16 %v2317_v37, %v2317_v37  ;;  %v2832_v19 = vpack.i.b16 %v2311_v2, %v2311_v2 }
 0x795   :  { %v2341_v46 = vrot.slane %v2321_v22, %v3605_v12  ;;  %v2348_v25 = vrot.slane %v2830_v13, %v3605_v12  ;;  %v2362_v47 = vrot.slane %v2831_v9, %v3605_v12  ;;  %v2396_v49 = vsel %vm4457_vm9, %v2334_v14, %v2395_v40 }
 0x796   :  { %v2327_v55 = vpack.i.b16 %v2319_v26, %v2319_v26  ;;  %v2355_v56 = vrot.slane %v2323_v44, %v3605_v12  ;;  %v2369_v59 = vrot.slane %v2325_v33, %v3605_v12  ;;  %v2376_v1 = vrot.slane %v2832_v19, %v3605_v12  ;;  %2397 = vst [vmem:[%s4651_s5] sm:$0x8] %v2396_v49 }
 0x797   :  { %v2399_v38 = vsel %vm4457_vm9, %v2341_v46, %v2398_v15  ;;  %v2402_v35 = vsel %vm4457_vm9, %v2348_v25, %v2401_v18  ;;  %v2408_v53 = vsel %vm4457_vm9, %v2362_v47, %v2407_v0 }
 0x798   :  { %v2383_v39 = vrot.slane %v2327_v55, %v3605_v12  ;;  %2400 = vst [vmem:[%s4651_s5 + $0x4] sm:$0x8] %v2399_v38  ;;  %2403 = vst [vmem:[%s4651_s5 + $0x8] sm:$0x8] %v2402_v35  ;;  %v2405_v41 = vsel %vm4457_vm9, %v2355_v56, %v2404_v50  ;;  %v2411_v32 = vsel %vm4457_vm9, %v2369_v59, %v2410_v51 }
 0x799   :  { %2409 = vst [vmem:[%s4651_s5 + $0x10] sm:$0x8] %v2408_v53  ;;  %v2414_v17 = vsel %vm4457_vm9, %v2376_v1, %v2413_v52  ;;  %2406 = vst [vmem:[%s4651_s5 + $0xc] sm:$0x8] %v2405_v41 }
 0x79a   :  { %2412 = vst [vmem:[%s4651_s5 + $0x14] sm:$0x8] %v2411_v32  ;;  %2415 = vst [vmem:[%s4651_s5 + $0x18] sm:$0x8] %v2414_v17  ;;  %v2417_v43 = vsel %vm4457_vm9, %v2383_v39, %v2416_v54 }
 0x79b   :  { %2418 = vst [vmem:[%s4651_s5 + $0x1c] sm:$0x8] %v2417_v43 }
 0x861   :  { %v2459_v11 = vpop.f32.mrb[44].mxu0  ;;  %v2500_v45 = vpop.f32.mrb[44].mxu1 }
 0x862   :  { %v2507_v7 = vadd.f32 %v2459_v11, %v4718_v10  ;;  %v2509_v42 = vadd.f32 %v2500_v45, %v4719_v24  ;;  %v2461_v61 = vpop.f32.mrb[45].mxu0  ;;  %v2502_v21 = vpop.f32.mrb[45].mxu1 }
 0x863   :  { %v2508_v62 = vadd.f32 %v2461_v61, %v4720_v3  ;;  %v2510_v29 = vadd.f32 %v2502_v21, %v4721_v34  ;;  %v2463_v4 = vpop.f32.mrb[46].mxu0  ;;  %v2504_v63 = vpop.f32.mrb[46].mxu1 }
 0x864   :  { %v2833_v5 = vmul.f32 -1.442695, %v2507_v7  ;;  %v2464_v23 = vpop.f32.mrb[47].mxu0  ;;  %v2505_v27 = vpop.f32.mrb[47].mxu1 }
 0x865   :  { %v2834_v6 = vmul.f32 -1.442695, %v2508_v62  ;;  %v2835_v30 = vmul.f32 -1.442695, %v2510_v29 }
 0x866   :  { %3062 = vpow2.f32 %v2833_v5 }
 0x867   :  { %3064 = vpow2.f32 %v2834_v6 }
 0x868   :  { %3066 = vpow2.f32 %v2835_v30 }
 0x869   :  { %3068 = vtanh.f32 %v2509_v42 }
 0x870   :  { %v3063_v31 = vpop.eup %3062 }
 0x871   :  { %v3065_v36 = vpop.eup %3064  ;;  %v2514_v48 = vadd.f32 1.0, %v3063_v31 }
 0x872   :  { %v2520_v2 = vadd.f32 1.0, %v3065_v36  ;;  %v3067_v60 = vpop.eup %3066 }
 0x873   :  { %3070 = vrcp.f32 %v2514_v48  ;;  %v3069_v37 = vpop.eup %3068  ;;  %v2527_v13 = vadd.f32 1.0, %v3067_v60 }
 0x874   :  { %3072 = vrcp.f32 %v2520_v2 }
 0x875   :  { %3074 = vrcp.f32 %v2527_v13 }
 0x87d   :  { %v3071_v22 = vpop.eup %3070 }
 0x87e   :  { %v3073_v16 = vpop.eup %3072  ;;  %v2531_v40 = vmul.f32 %v3071_v22, %v3069_v37 }
 0x87f   :  { %v2530_v9 = vmul.f32 %v3073_v16, %v4445_v57 }
 0x881   :  { %v2532_v14 = vadd.f32 %v2531_v40, %v2530_v9 }
 0x883   :  { %3076 = vtanh.f32 %v2532_v14  ;;  %v2670_v26 = vmul.f32 %v4441_v8, %v2532_v14 }
 0x885   :  { %v2672_v44 = vadd.f32 %v4448_v58, %v2670_v26 }
 0x887   :  { %2674 = vst [vmem:[#allocation6] sm:$0xff] %v2672_v44 }
 0x888   :  { %3143 = shalt.err (!%p3140_p12)
}
 0x889   :  { %s3144_s4 = scalar_lea.hbm %s4653_s7, 128 }
 0x88a   :  { %p3145_p13 = scmp.ne.s32.totalorder %s4653_s7, %s3144_s4  ;;  %p3148_p0 = scmp.lt.u32.totalorder %s3144_s4, %s4653_s7 }
 0x88c   :  { %p3150_p1 = pnand %p3148_p0, %p3145_p13 }
 0x88e   :  { %3153 = shalt.err (!%p3150_p1)
}
 0x88f   :  { %2696 = dma.vmem_to_hbm [thread:$0]  %s2694_s16, 128, %s4653_s7, [#allocation7]   ;;  %v3075_v57 = vpop.eup %3074 }
 0x890   :  { %v3077_v58 = vpop.eup %3076  ;;  %s3191_s26 = smov [#allocation5]  }
 0x891   :  { %v2534_v33 = vmul.f32 %v3077_v58, %v3075_v57  ;;  %s2683_s27 = sshll.u32 %s3191_s26, 4  ;;  %s2684_s27 = int_to_ptr.vmem [resolvable:$true] %s2683_s27 }
 0x892   :  { %s3154_s28 = scalar_lea.vmem %s2684_s27, 128  ;;  %p3159_p3 = scmp.lt.s32.totalorder %s2684_s27, %s2684_s27 }
 0x893   :  { %v2535_v19 = vmul.f32 %v4441_v8, %v2534_v33  ;;  %p3155_p2 = scmp.ne.s32.totalorder %s2684_s27, %s3154_s28  ;;  %p3160_p4 = scmp.lt.s32.totalorder %s3154_s28, %s3154_s28 }
 0x895   :  { %v2536_v15 = vpack.c.bf16 %v2535_v19, %v2535_v19  ;;  %v2669_v18 = vadd.f32 %v4452_v28, %v2535_v19  ;;  %p3161_p5 = por %p3160_p4, %p3159_p3 }
 0x897   :  { %v2544_v0 = vrot.slane %v2536_v15, %v3596_v20  ;;  %2673 = vst [vmem:[#allocation5] sm:$0xff] %v2669_v18  ;;  %p3162_p6 = pnand %p3161_p5, %p3155_p2 }
 0x899   :  { %3165 = shalt.err (!%p3162_p6)
}
 0x89a   :  { %s3166_s30 = scalar_lea.hbm %s4652_s6, 128 }
 0x89b   :  { %p3167_p7 = scmp.ne.s32.totalorder %s4652_s6, %s3166_s30  ;;  %p3170_p8 = scmp.lt.u32.totalorder %s3166_s30, %s4652_s6 }
 0x89d   :  { %p3172_p9 = pnand %p3170_p8, %p3167_p7 }
 0x89f   :  { %3175 = shalt.err (!%p3172_p9)
}
 0x8a0   :  { %2686 = dma.vmem_to_hbm [thread:$0]  %s2684_s27, 128, %s4652_s6, [#allocation4]   ;;  %v2545_v8 = vcombine.high %v2544_v0, %v2544_v0  ;;  %v2552_v28 = vrot.slane %v2544_v0, %v3596_v20  ;;  %vm2642_vm10 = vsmask.f32 7950  ;;  %v2644_v39 = vld [vmem:[%s4651_s5] sm:$0x8] }
 0x8a1   :  { %vm4570_vm11 = vmand %vm2392_vm7, %vm2642_vm10  ;;  %v2647_v24 = vld [vmem:[%s4651_s5 + $0x4] sm:$0x8]  ;;  %v2650_v42 = vld [vmem:[%s4651_s5 + $0x8] sm:$0x8] }
 0x8a2   :  { %v2559_v46 = vrot.slane %v2545_v8, %v3596_v20  ;;  %v2560_v25 = vcombine.high %v2552_v28, %v2552_v28  ;;  %v2563_v47 = vunpack.i.h.s16 %v2552_v28  ;;  %v2836_v49 = vpack.i.b16 %v2552_v28, %v2552_v28  ;;  %v2656_v61 = vld [vmem:[%s4651_s5 + $0x10] sm:$0x8]  ;;  %v2653_v62 = vld [vmem:[%s4651_s5 + $0xc] sm:$0x8]  ;;  %v2659_v29 = vld [vmem:[%s4651_s5 + $0x14] sm:$0x8] }
 0x8a3   :  { %v2662_v4 = vld [vmem:[%s4651_s5 + $0x18] sm:$0x8]  ;;  %v2665_v27 = vld [vmem:[%s4651_s5 + $0x1c] sm:$0x8] }
 0x8a4   :  { %v2561_v50 = vcombine.high %v2559_v46, %v2559_v46  ;;  %v2565_v51 = vunpack.i.h.s16 %v2559_v46  ;;  %v2567_v52 = vunpack.i.h.s16 %v2560_v25  ;;  %v2571_v55 = vpack.i.b16 %v2563_v47, %v2563_v47 }
 0x8a5   :  { %v2837_v59 = vpack.i.b16 %v2559_v46, %v2559_v46  ;;  %v2838_v1 = vpack.i.b16 %v2560_v25, %v2560_v25  ;;  %v2584_v38 = vrot.slane %v2836_v49, %v3605_v12 }
 0x8a6   :  { %v2569_v35 = vunpack.i.h.s16 %v2561_v50  ;;  %v2573_v53 = vpack.i.b16 %v2565_v51, %v2565_v51  ;;  %v2575_v54 = vpack.i.b16 %v2567_v52, %v2567_v52  ;;  %v2839_v20 = vpack.i.b16 %v2561_v50, %v2561_v50 }
 0x8a7   :  { %v2591_v41 = vrot.slane %v2571_v55, %v3605_v12  ;;  %v2598_v32 = vrot.slane %v2837_v59, %v3605_v12  ;;  %v2612_v17 = vrot.slane %v2838_v1, %v3605_v12  ;;  %v2645_v43 = vsel %vm4570_vm11, %v2584_v38, %v2644_v39 }
 0x8a8   :  { %v2577_v11 = vpack.i.b16 %v2569_v35, %v2569_v35  ;;  %v2605_v45 = vrot.slane %v2573_v53, %v3605_v12  ;;  %v2619_v10 = vrot.slane %v2575_v54, %v3605_v12  ;;  %v2626_v7 = vrot.slane %v2839_v20, %v3605_v12  ;;  %2646 = vst [vmem:[%s4651_s5] sm:$0x8] %v2645_v43 }
 0x8a9   :  { %v2648_v21 = vsel %vm4570_vm11, %v2591_v41, %v2647_v24  ;;  %v2651_v3 = vsel %vm4570_vm11, %v2598_v32, %v2650_v42  ;;  %v2657_v34 = vsel %vm4570_vm11, %v2612_v17, %v2656_v61 }
 0x8aa   :  { %v2633_v63 = vrot.slane %v2577_v11, %v3605_v12  ;;  %2649 = vst [vmem:[%s4651_s5 + $0x4] sm:$0x8] %v2648_v21  ;;  %2652 = vst [vmem:[%s4651_s5 + $0x8] sm:$0x8] %v2651_v3  ;;  %v2654_v5 = vsel %vm4570_vm11, %v2605_v45, %v2653_v62  ;;  %v2660_v23 = vsel %vm4570_vm11, %v2619_v10, %v2659_v29 }
 0x8ab   :  { %2658 = vst [vmem:[%s4651_s5 + $0x10] sm:$0x8] %v2657_v34  ;;  %v2663_v12 = vsel %vm4570_vm11, %v2626_v7, %v2662_v4  ;;  %2655 = vst [vmem:[%s4651_s5 + $0xc] sm:$0x8] %v2654_v5 }
 0x8ac   :  { %2661 = vst [vmem:[%s4651_s5 + $0x14] sm:$0x8] %v2660_v23  ;;  %2664 = vst [vmem:[%s4651_s5 + $0x18] sm:$0x8] %v2663_v12  ;;  %v2666_v6 = vsel %vm4570_vm11, %v2633_v63, %v2665_v27 }
 0x8ad   :  { %2667 = vst [vmem:[%s4651_s5 + $0x1c] sm:$0x8] %v2666_v6 }
 0x8ae   :  { %3178 = dma.done.wait [#allocation4], 128  }
 0x8af   :  { %3179 = vsyncadd [#allocation4], 4294967168 }
 0x8b0   :  { %3180 = dma.done.wait [#allocation7], 128  }
 0x8b1   :  { %3181 = vsyncadd [#allocation7], 4294967168 }
 0x8b2   :  { %2705 = vsyncpa [#allocation3], 1 }
 0x8b3   :  { %2706 = vsyncpa [#allocation4], 1 }
 0x8b4   :  { %2707 = vsyncpa [#allocation7], 1 }

</bundles_post_ra>
